<compile_context>
chip_gen: v7x
topology: tpu7x:2x2x1
jax: 0.10.0
libtpu: 0.0.40
codegen_flags: <defaults>
</compile_context>

<pallas_src>
import jax
import jax.numpy as jnp
from jax import lax
from jax.experimental import pallas as pl
from jax.experimental.pallas import tpu as pltpu

LANE = 128
SUBLANE = 8

_MAX_TILE_ROWS = 8192           # rows of 128 lanes per grid step (4 MiB f32 / 2 MiB bf16)
_MIN_PALLAS_BYTES = 512 * 1024  # below this a fused XLA reduce beats kernel launch overhead
_MIN_ROWS = 64                  # below this many 128-lane rows/sample, just use XLA

assert _MAX_TILE_ROWS % 1024 == 0


def _sublane_multiple(itemsize: int) -> int:
    # Minimum second-to-last block multiple per dtype: f32 -> 8, bf16 -> 16, i8/fp8 -> 32.
    return max(SUBLANE, 32 // itemsize)


def _sumsq_pallas_impl(g: jax.Array) -> jax.Array:
    """g: (B, F) with F % 128 == 0 and F // 128 >= _MIN_ROWS. Returns (B,) f32 sum(g^2)."""
    B, F = g.shape
    itemsize = g.dtype.itemsize
    sub = _sublane_multiple(itemsize)
    rows = F // LANE
    x3 = g.reshape(B, rows, LANE)            # row-major split of trailing dim: no copy

    # Fixed-target tile size; never collapses to sublane-sized slivers.
    if rows >= _MAX_TILE_ROWS:
        tile_r = _MAX_TILE_ROWS
    elif rows >= 512:
        tile_r = (rows // 512) * 512         # multiple of 512 -> chunkable, dtype-aligned
    else:
        tile_r = (rows // sub) * sub         # rows >= 64 >= sub, so tile_r >= sub
    chunk_r = 1024 if tile_r % 1024 == 0 else (512 if tile_r % 512 == 0 else tile_r)
    n_chunks = tile_r // chunk_r

    num_k = pl.cdiv(rows, tile_r)

    # v7x: when B == 1 also split the reduction range across two "parallel" slots
    # so both TensorCores get work; size-1 axis costs nothing on v5e/v6e.
    n_split = 2 if (B == 1 and num_k >= 2) else 1
    k_per_split = pl.cdiv(num_k, n_split)

    full_blocks = rows // tile_r                       # blocks needing no row mask
    needs_mask = (rows % tile_r != 0) or (n_split * k_per_split != num_k)

    def kernel(x_ref, out_ref):
        s = pl.program_id(1)
        k = pl.program_id(2)
        kb = s * k_per_split + k                       # logical row-block index

        @pl.when(k == 0)
        def _init():
            out_ref[...] = jnp.zeros_like(out_ref)

        def accumulate(masked):
            if masked:
                valid = rows - kb * tile_r             # real rows in this block (may be <= 0)

            def body(c, acc):
                off = pl.multiple_of(c * chunk_r, chunk_r)
                d = x_ref[0, pl.ds(off, chunk_r), :].astype(jnp.float32)   # cast on VPU
                d2 = d * d
                if masked:
                    rid = off + lax.broadcasted_iota(jnp.int32, (chunk_r, LANE), 0)
                    d2 = jnp.where(rid < valid, d2, 0.0)
                # Fold chunk rows into an (8,128) partial: layout-preserving reshape
                # + pure VPU vreg adds (no cross-lane XLU reduce).
                return acc + d2.reshape(-1, SUBLANE, LANE).sum(axis=0)

            acc = lax.fori_loop(0, n_chunks, body,
                                jnp.zeros((SUBLANE, LANE), jnp.float32))
            out_ref[0, 0] += acc

        if not needs_mask:
            accumulate(False)
        else:
            @pl.when(kb < full_blocks)
            def _full():
                accumulate(False)

            @pl.when(kb >= full_blocks)
            def _partial():
                accumulate(True)

    # Explicit VMEM budget: double-buffered input block + per-chunk f32 temporaries
    # + slack; floored at 16 MiB, capped well inside v7x's 64 MiB physical VMEM.
    block_bytes = tile_r * LANE * itemsize
    chunk_f32 = chunk_r * LANE * 4
    vmem_budget = int(min(40 * 2**20,
                          max(16 * 2**20, 2 * block_bytes + 6 * chunk_f32 + 2 * 2**20)))

    cost = pl.CostEstimate(
        flops=2 * B * rows * LANE,
        transcendentals=0,
        bytes_accessed=B * rows * LANE * itemsize + B * n_split * SUBLANE * LANE * 4,
    )

    # Out-of-range phantom blocks (from the B==1 split) are clamped onto the last
    # real block; the kernel fully masks them, so they contribute exactly zero.
    in_map = lambda b, s, k: (b, jnp.minimum(s * k_per_split + k, num_k - 1), 0)
    out_map = lambda b, s, k: (b, s, 0, 0)

    partial = pl.pallas_call(
        kernel,
        out_shape=jax.ShapeDtypeStruct((B, n_split, SUBLANE, LANE), jnp.float32),
        grid_spec=pltpu.PrefetchScalarGridSpec(
            num_scalar_prefetch=0,
            grid=(B, n_split, k_per_split),                     # reduction axis last
            in_specs=[pl.BlockSpec((1, tile_r, LANE), in_map)],
            out_specs=pl.BlockSpec((1, 1, SUBLANE, LANE), out_map),
        ),
        compiler_params=pltpu.CompilerParams(
            dimension_semantics=("parallel", "parallel", "arbitrary"),
            vmem_limit_bytes=vmem_budget,
        ),
        cost_estimate=cost,
    )(x3)

    # Tiny (B, n_split, 8, 128) -> (B,) fold in XLA; negligible next to the HBM read.
    return jnp.sum(partial, axis=(1, 2, 3))


# pallas_call has no autodiff rule; define the trivial VJP d sum(g^2)/dg = 2g so the
# penalty can be differentiated w.r.t. model parameters in real GAN training.
@jax.custom_vjp
def _sumsq_pallas(g):
    return _sumsq_pallas_impl(g)


def _sumsq_fwd(g):
    return _sumsq_pallas_impl(g), g


def _sumsq_bwd(g, ct):
    return (((2.0 * ct)[:, None] * g.astype(jnp.float32)).astype(g.dtype),)


_sumsq_pallas.defvjp(_sumsq_fwd, _sumsq_bwd)


def gradient_penalty_sumsq(dydx_flat: jax.Array) -> jax.Array:
    """Per-sample sum of squared gradient entries. dydx_flat: (B, F) native dtype -> (B,) f32."""
    B, F = dydx_flat.shape
    itemsize = dydx_flat.dtype.itemsize
    rows = F // LANE

    # Small-input fast path: kernel launch + grid overhead would dominate.
    if B * F * itemsize < _MIN_PALLAS_BYTES or rows < _MIN_ROWS:
        d = dydx_flat.astype(jnp.float32)
        return jnp.sum(d * d, axis=1)

    F_main = rows * LANE
    # F % 128 == 0 (the common case): zero-copy reshape.  Otherwise the lane-aligned
    # slice materializes one copy of the main region (no zero-copy lane-aligned view
    # exists for ragged F without manual DMA); the tiny tail is reduced in XLA.
    main = dydx_flat if F_main == F else dydx_flat[:, :F_main]
    ss = _sumsq_pallas(main)
    if F_main != F:
        tail = dydx_flat[:, F_main:].astype(jnp.float32)
        ss = ss + jnp.sum(tail * tail, axis=1)
    return ss


def gradient_penalty_from_grads(dydx_flat: jax.Array) -> jax.Array:
    """Scalar loss mean_b((||dydx_b||_2 - 1)^2) from flattened per-sample grads."""
    ss = gradient_penalty_sumsq(dydx_flat)
    norm = jnp.sqrt(ss)   # NOTE: like torch, grad is unbounded at ss == 0; add eps if needed.
    return jnp.mean((norm - 1.0) ** 2)


def gradient_penalty_loss(f, x: jax.Array) -> jax.Array:
    """Equivalent of GradientPaneltyLoss.forward(y=f(x), x)."""
    # TODO(synk): torch.autograd.grad has no in-kernel Pallas equivalent; done via jax.vjp here.
    y, vjp_fn = jax.vjp(f, x)
    (dydx,) = vjp_fn(jnp.ones_like(y))
    B = dydx.shape[0]
    return gradient_penalty_from_grads(dydx.reshape(B, -1))   # native dtype, no f32 copy


if __name__ == "__main__":
    key = jax.random.PRNGKey(0)
    k1, k2, k3, k4, k5, k6 = jax.random.split(key, 6)

    def ref_loss(d):
        df = d.astype(jnp.float32)
        return jnp.mean((jnp.sqrt(jnp.sum(df * df, axis=1)) - 1.0) ** 2)

    # 1) Full module-equivalent path at the spec's small (B, C, H, W) shape (fast path).
    B, C, H, W = 2, 4, 16, 16
    x = jax.random.normal(k1, (B, C, H, W), dtype=jnp.float32)
    w = jax.random.normal(k2, (C, H, W), dtype=jnp.float32)

    def f(xx):
        return jnp.tanh(xx * w[None]) + 0.5 * xx

    loss = jax.block_until_ready(gradient_penalty_loss(f, x))
    y, vjp_fn = jax.vjp(f, x)
    (dydx_ref,) = vjp_fn(jnp.ones_like(y))
    dflat = dydx_ref.reshape(B, -1)
    assert jnp.allclose(loss, ref_loss(dflat), rtol=1e-5, atol=1e-5), (loss, ref_loss(dflat))

    # 2) Pallas path, f32: multi-block reduction with a masked partial last block,
    #    plus jax.grad through the custom VJP.
    g2 = jax.random.normal(k3, (2, (8192 + 300) * LANE), dtype=jnp.float32)
    l2 = jax.block_until_ready(gradient_penalty_from_grads(g2))
    assert jnp.allclose(l2, ref_loss(g2), rtol=1e-4, atol=1e-4), (l2, ref_loss(g2))
    dg2 = jax.block_until_ready(jax.grad(gradient_penalty_from_grads)(g2))
    dg2_ref = jax.grad(ref_loss)(g2)
    assert jnp.allclose(dg2, dg2_ref, rtol=1e-4, atol=1e-5)

    # 3) Native-bf16 gradients, row count not a sublane multiple (masked tail, no pad copy).
    g3 = jax.random.normal(k4, (3, 1000 * LANE), dtype=jnp.float32).astype(jnp.bfloat16)
    l3 = jax.block_until_ready(gradient_penalty_from_grads(g3))
    assert jnp.allclose(l3, ref_loss(g3), rtol=1e-3, atol=1e-3), (l3, ref_loss(g3))

    # 4) Ragged feature count (F not a multiple of 128): Pallas main + tiny XLA tail.
    g4 = jax.random.normal(k5, (2, 2048 * LANE + 77), dtype=jnp.float32)
    l4 = jax.block_until_ready(gradient_penalty_from_grads(g4))
    assert jnp.allclose(l4, ref_loss(g4), rtol=1e-4, atol=1e-4), (l4, ref_loss(g4))

    # 5) B == 1: reduction range split across two "parallel" slots (v7x 2-TC path),
    #    including a fully-masked phantom block.
    g5 = jax.random.normal(k6, (1, 20000 * LANE), dtype=jnp.float32)
    l5 = jax.block_until_ready(gradient_penalty_from_grads(g5))
    assert jnp.allclose(l5, ref_loss(g5), rtol=1e-4, atol=1e-4), (l5, ref_loss(g5))

    print("KERNEL_OK")
</pallas_src>

<mosaic_0001>
module attributes {stable_mosaic.version = 11 : i64} {
  func.func @kernel(%arg0: i32, %arg1: i32, %arg2: i32, %arg3: memref<1x8192x128xf32, #tpu.memory_space<vmem>>, %arg4: memref<1x1x8x128xf32, #tpu.memory_space<vmem>>) attributes {dimension_semantics = [#tpu.dimension_semantics<parallel>, #tpu.dimension_semantics<parallel>, #tpu.dimension_semantics<arbitrary>], iteration_bounds = array<i64: 2, 1, 2>, scalar_prefetch = 0 : i64, scratch_operands = 0 : i64, tpu.core_type = #tpu.core_type<tc>, window_params = [{transform_indices = @transform_0, window_bounds = array<i64: 1, 8192, 128>}, {transform_indices = @transform_1, window_bounds = array<i64: 1, 1, 8, 128>}]} {
    %c2_i32 = arith.constant 2 : i32
    %0 = arith.muli %arg1, %c2_i32 : i32
    %1 = arith.addi %0, %arg2 : i32
    %c0_i32 = arith.constant 0 : i32
    %2 = arith.cmpi eq, %arg2, %c0_i32 : i32
    %3 = arith.extui %2 : i1 to i32
    %c0_i32_0 = arith.constant 0 : i32
    %4 = arith.cmpi ne, %3, %c0_i32_0 : i32
    scf.if %4 {
      %cst = arith.constant 0.000000e+00 : f32
      %11 = vector.broadcast %cst : f32 to vector<1x1x8x128xf32>
      %c0 = arith.constant 0 : index
      %c0_4 = arith.constant 0 : index
      %c0_5 = arith.constant 0 : index
      %c0_6 = arith.constant 0 : index
      %12 = vector.load %arg4[%c0, %c0_4, %c0_5, %c0_6] : memref<1x1x8x128xf32, #tpu.memory_space<vmem>>, vector<1x1x8x128xf32>
      tpu.vector_store %arg4[%c0, %c0_4, %c0_5, %c0_6], %11 {strides = array<i32>} : memref<1x1x8x128xf32, #tpu.memory_space<vmem>>, vector<1x1x8x128xf32>,
    } else {
    }
    %c1_i32 = arith.constant 1 : i32
    %5 = arith.cmpi slt, %1, %c1_i32 : i32
    %6 = arith.extui %5 : i1 to i32
    %c0_i32_1 = arith.constant 0 : i32
    %7 = arith.cmpi ne, %6, %c0_i32_1 : i32
    scf.if %7 {
      %cst = arith.constant 0.000000e+00 : f32
      %11 = vector.broadcast %cst : f32 to vector<8x128xf32>
      %c0_i32_4 = arith.constant 0 : i32
      %c8_i32 = arith.constant 8 : i32
      %12 = arith.addi %c0_i32_4, %c8_i32 : i32
      %c1_i32_5 = arith.constant 1 : i32
      %13 = scf.for %arg5 = %c0_i32_4 to %12 step %c1_i32_5 iter_args(%arg6 = %11) -> (vector<8x128xf32>)  : i32 {
        %c1024_i32 = arith.constant 1024 : i32
        %20 = arith.muli %arg5, %c1024_i32 : i32
        %21 = tpu.assume_multiple %20, 1024 : i32
        %c0_14 = arith.constant 0 : index
        %22 = arith.index_cast %21 : i32 to index
        %c0_15 = arith.constant 0 : index
        %23 = vector.load %arg3[%c0_14, %22, %c0_15] : memref<1x8192x128xf32, #tpu.memory_space<vmem>>, vector<1x1024x128xf32>
        %24 = vector.shape_cast %23 : vector<1x1024x128xf32> to vector<1024x128xf32>
        %25 = arith.mulf %24, %24 : vector<1024x128xf32>
        %26 = vector.shape_cast %25 : vector<1024x128xf32> to vector<128x8x128xf32>
        %cst_16 = arith.constant dense<0.000000e+00> : vector<8x128xf32>
        %27 = vector.multi_reduction <add>, %26, %cst_16 [0] : vector<128x8x128xf32> to vector<8x128xf32>
        %28 = arith.addf %arg6, %27 : vector<8x128xf32>
        scf.yield %28 : vector<8x128xf32>
      }
      %c8_i32_6 = arith.constant 8 : i32
      %c0 = arith.constant 0 : index
      %c0_7 = arith.constant 0 : index
      %c0_8 = arith.constant 0 : index
      %c0_9 = arith.constant 0 : index
      %14 = vector.load %arg4[%c0, %c0_7, %c0_8, %c0_9] : memref<1x1x8x128xf32, #tpu.memory_space<vmem>>, vector<1x1x8x128xf32>
      %15 = vector.shape_cast %14 : vector<1x1x8x128xf32> to vector<8x128xf32>
      %16 = arith.addf %15, %13 : vector<8x128xf32>
      %c0_10 = arith.constant 0 : index
      %c0_11 = arith.constant 0 : index
      %c0_12 = arith.constant 0 : index
      %c0_13 = arith.constant 0 : index
      %17 = vector.load %arg4[%c0_10, %c0_11, %c0_12, %c0_13] : memref<1x1x8x128xf32, #tpu.memory_space<vmem>>, vector<1x1x8x128xf32>
      %18 = vector.shape_cast %17 : vector<1x1x8x128xf32> to vector<8x128xf32>
      %19 = vector.shape_cast %16 : vector<8x128xf32> to vector<1x1x8x128xf32>
      tpu.vector_store %arg4[%c0_10, %c0_11, %c0_12, %c0_13], %19 {strides = array<i32>} : memref<1x1x8x128xf32, #tpu.memory_space<vmem>>, vector<1x1x8x128xf32>,
    } else {
    }
    %c1_i32_2 = arith.constant 1 : i32
    %8 = arith.cmpi sge, %1, %c1_i32_2 : i32
    %9 = arith.extui %8 : i1 to i32
    %c0_i32_3 = arith.constant 0 : i32
    %10 = arith.cmpi ne, %9, %c0_i32_3 : i32
    scf.if %10 {
      %c8192_i32 = arith.constant 8192 : i32
      %11 = arith.muli %1, %c8192_i32 : i32
      %c8492_i32 = arith.constant 8492 : i32
      %12 = arith.subi %c8492_i32, %11 : i32
      %cst = arith.constant 0.000000e+00 : f32
      %13 = vector.broadcast %cst : f32 to vector<8x128xf32>
      %c0_i32_4 = arith.constant 0 : i32
      %c8_i32 = arith.constant 8 : i32
      %14 = arith.addi %c0_i32_4, %c8_i32 : i32
      %c1_i32_5 = arith.constant 1 : i32
      %15 = scf.for %arg5 = %c0_i32_4 to %14 step %c1_i32_5 iter_args(%arg6 = %13) -> (vector<8x128xf32>)  : i32 {
        %c1024_i32 = arith.constant 1024 : i32
        %22 = arith.muli %arg5, %c1024_i32 : i32
        %23 = tpu.assume_multiple %22, 1024 : i32
        %c0_14 = arith.constant 0 : index
        %24 = arith.index_cast %23 : i32 to index
        %c0_15 = arith.constant 0 : index
        %25 = vector.load %arg3[%c0_14, %24, %c0_15] : memref<1x8192x128xf32, #tpu.memory_space<vmem>>, vector<1x1024x128xf32>
        %26 = vector.shape_cast %25 : vector<1x1024x128xf32> to vector<1024x128xf32>
        %27 = arith.mulf %26, %26 : vector<1024x128xf32>
        %28 = tpu.iota {dimensions = array<i32: 0>} : vector<1024x128xi32>
        %29 = vector.broadcast %23 : i32 to vector<1024x128xi32>
        %30 = arith.addi %29, %28 : vector<1024x128xi32>
        %31 = vector.broadcast %12 : i32 to vector<1024x128xi32>
        %32 = arith.cmpi slt, %30, %31 : vector<1024x128xi32>
        %cst_16 = arith.constant 0.000000e+00 : f32
        %33 = vector.broadcast %cst_16 : f32 to vector<1024x128xf32>
        %34 = arith.select %32, %27, %33 : vector<1024x128xi1>, vector<1024x128xf32>
        %35 = vector.shape_cast %34 : vector<1024x128xf32> to vector<128x8x128xf32>
        %cst_17 = arith.constant dense<0.000000e+00> : vector<8x128xf32>
        %36 = vector.multi_reduction <add>, %35, %cst_17 [0] : vector<128x8x128xf32> to vector<8x128xf32>
        %37 = arith.addf %arg6, %36 : vector<8x128xf32>
        scf.yield %37 : vector<8x128xf32>
      }
      %c8_i32_6 = arith.constant 8 : i32
      %c0 = arith.constant 0 : index
      %c0_7 = arith.constant 0 : index
      %c0_8 = arith.constant 0 : index
      %c0_9 = arith.constant 0 : index
      %16 = vector.load %arg4[%c0, %c0_7, %c0_8, %c0_9] : memref<1x1x8x128xf32, #tpu.memory_space<vmem>>, vector<1x1x8x128xf32>
      %17 = vector.shape_cast %16 : vector<1x1x8x128xf32> to vector<8x128xf32>
      %18 = arith.addf %17, %15 : vector<8x128xf32>
      %c0_10 = arith.constant 0 : index
      %c0_11 = arith.constant 0 : index
      %c0_12 = arith.constant 0 : index
      %c0_13 = arith.constant 0 : index
      %19 = vector.load %arg4[%c0_10, %c0_11, %c0_12, %c0_13] : memref<1x1x8x128xf32, #tpu.memory_space<vmem>>, vector<1x1x8x128xf32>
      %20 = vector.shape_cast %19 : vector<1x1x8x128xf32> to vector<8x128xf32>
      %21 = vector.shape_cast %18 : vector<8x128xf32> to vector<1x1x8x128xf32>
      tpu.vector_store %arg4[%c0_10, %c0_11, %c0_12, %c0_13], %21 {strides = array<i32>} : memref<1x1x8x128xf32, #tpu.memory_space<vmem>>, vector<1x1x8x128xf32>,
    } else {
    }
    return
  }
  func.func @transform_0(%arg0: i32, %arg1: i32, %arg2: i32) -> (i32, i32, i32) {
    %c2_i32 = arith.constant 2 : i32
    %0 = arith.muli %arg1, %c2_i32 : i32
    %1 = arith.addi %0, %arg2 : i32
    %c1_i32 = arith.constant 1 : i32
    %2 = arith.minsi %1, %c1_i32 : i32
    %c0_i32 = arith.constant 0 : i32
    %c0_i32_0 = arith.constant 0 : i32
    return %arg0, %2, %c0_i32 : i32, i32, i32
  }
  func.func @transform_1(%arg0: i32, %arg1: i32, %arg2: i32) -> (i32, i32, i32, i32) {
    %c0_i32 = arith.constant 0 : i32
    %c0_i32_0 = arith.constant 0 : i32
    %c0_i32_1 = arith.constant 0 : i32
    return %arg0, %arg1, %c0_i32, %c0_i32_0 : i32, i32, i32, i32
  }
}

</mosaic_0001>

<bundles_post_ra>
// kernel: tpu_custom_call.1
= control target key start
LH: loop header
LB: loop body
LE: loop exit
PB: predicated region body
PF: predicated region fallthrough
CT: control target
= control target key end

     0   :  { %6 = vsyncpa [#allocation3], 0  ;;  %s4234_s0 = inlined_call_operand.vmem [shape: f32[2,8492,128], index: 0, kind: input, shape index: {}]   ;;  %s4235_s1 = inlined_call_operand.hbm [shape: f32[2,1,8,128], index: 1, kind: output, shape index: {}]  }
   0x1   :  { %8 = vsyncpa [#allocation3 + $0x1], 0  ;;  %s1902_s6 = smov 0   ;;  %s1904_s7 = smov 0  }
   0x2   :  { %s1906_s8 = smov 0   ;;  %s1908_s9 = smov 0  }
   0x3   :  { %s1910_s10 = smov 0   ;;  %s1912_s11 = smov 0  }
   0x4   :  { %s1914_s12 = smov 0   ;;  %s1916_s13 = smov 0  }
   0x5 LB: > { %s1639_s14 = sadd.s32 4294967295, %s1872_s13   ;;  %s1640_s15 = sadd.s32 4294967294, %s1872_s13   ;;  %s1872_s13 = sphi %s1916_s13, %s14_s13   ;;  %s1868_s12 = sphi %s1914_s12, %s4940_s12   ;;  %s1864_s11 = sphi %s1912_s11, %s4939_s11   ;;  %s1860_s10 = sphi %s1910_s10, %s4938_s10   ;;  %s1856_s9 = sphi %s1908_s9, %s4937_s9   ;;  %s1852_s8 = sphi %s1906_s8, %s4936_s8   ;;  %s1848_s7 = sphi %s1904_s7, %s4935_s7   ;;  %s1844_s6 = sphi %s1902_s6, %s4934_s6  }
   0x6   : > { %s26_s16 = sadd.s32 1, %s1864_s11  ;;  %s33_s17 = sadd.s32 1, %s1868_s12 }
   0x7   : > { %p27_p0 = scmp.ge.s32.totalorder %s26_s16, 2  ;;  %p88_p1 = scmp.ne.s32.totalorder %s1852_s8, %s1848_s7 }
   0x8   : > { %p89_p2 = scmp.eq.s32.totalorder %s1639_s14, 3  ;;  %p94_p4 = scmp.ne.s32.totalorder %s1848_s7, %s1844_s6 }
   0x9   : > { %s4942_s16 = smov (%p27_p0, %s26_s16), 0  ;;  %s4944_s17 = smov (!%p27_p0, %s33_s17), %s1868_s12 }
   0xa   : > { %p1951_p3 = por %p89_p2, %p88_p1  ;;  %p35_p5 = scmp.ge.s32.totalorder %s4944_s17, 2 }
   0xb   : > { %p95_p6 = scmp.eq.s32.totalorder %s1640_s15, 3  ;;  %p1643_p7 = scmp.ge.s32.totalorder %s1872_s13, 1 }
   0xc   : > { %p142_p8 = scmp.lt.s32.totalorder %s1872_s13, 5  ;;  %s4946_s17 = smov (%p35_p5, %s4944_s17), 0 }
   0xd   : > { %p1961_p9 = por %p95_p6, %p94_p4  ;;  %s73_s20 = ssub.s32 %s1868_s12, %s4946_s17 }
   0xe   : > { %p143_p10 = pnand %p1643_p7, %p142_p8  ;;  %s78_s21 = sadd.s32 1, %s1852_s8 }
   0xf   : > { %p76_p11 = scmp.eq.s32.totalorder %s73_s20, 0  ;;  %s171_s23 = sand.u32 (!%p143_p10), 1, %s1848_s7  }
  0x10   : > { %146 = sbr.rel (%p143_p10) target bundleno = 765 (0x2fd), region = 24  ;;  %p176_p12 = scmp.lt.s32.totalorder (!%p143_p10), %s1856_s9, 1 }
  0x11   : > { %s1969_s22 = scalar_select %p76_p11, %s1852_s8, %s78_s21  }
  0x12   : > { %s1644_s24 = sshll.u32 (!%p143_p10), %s171_s23, 3  ;;  %p183_p13 = scmp.lt.s32.totalorder (!%p143_p10), %s1860_s10, 1 }
  0x13   : > { %s1985_s5 = scalar_lea.vmem (!%p143_p10), [#allocation2], %s1644_s24  ;;  %p1647_p1 = scmp.ne.s32.totalorder (!%p143_p10), %s1856_s9, 0 }
  0x17   : > { %s177_s25 = scalar_select %p176_p12, %s1856_s9, 1 }
  0x18   : > { %s184_s26 = scalar_select %p183_p13, %s1860_s10, 1 }
  0x19   : > { %s1645_s27 = sshll.u32 %s177_s25, 10  ;;  %205 = sbr.rel (%p1647_p1) target bundleno = 32 (0x20), region = 28  ;;  %v1890_v0 = vmov (!%p1647_p1), 0.0  }
  0x1a   : > { %p185_p0 = scmp.lt.s32.totalorder %s1645_s27, 1061  ;;  %s1657_s28 = smul.u32 1062, %s184_s26  ;;  %206 = vst [vmem:[%s1985_s5] sm:$0xff] (!%p1647_p1), %v1890_v0 }
  0x1c   : > { %s4948_s27 = smov (!%p185_p0, %s1645_s27), 1061 }
  0x1d   : > { %s188_s29 = sadd.s32 %s1657_s28, %s4948_s27 }
  0x1e   : > { %s1646_s30 = sshll.u32 %s188_s29, 3 }
  0x1f   : > { %s1983_s4 = scalar_lea.vmem %s4234_s0, %s1646_s30 }
  0x20 PF: > { %p1648_p2 = scmp.ge.s32.totalorder %s1856_s9, 1 }
  0x21   : > { %v1990_v1 = vmov (!%p1648_p2), 0.0   ;;  %s1992_s14 = smov (!%p1648_p2), 0  }
  0x22   : > { %210 = sbr.rel (%p1648_p2) target bundleno = 305 (0x131), region = 32 }
  0x29 LB: >> { %s1649_s15 = sshll.u32 %s1880_s14, 10  ;;  %s216_s14 = sadd.s32 1, %s1880_s14   ;;  %s1880_s14 = sphi %s1992_s14, %s216_s14   ;;  %v1876_v1 = vphi %v1990_v1, %v4302_v1  }
  0x2a   : >> { %s2002_s20 = scalar_lea.vmem %s1983_s4, %s1649_s15  ;;  %p213_p4 = scmp.ge.s32.totalorder %s216_s14, 8  }
  0x2b   : >> { %v220_v2 = vld [vmem:[%s2002_s20] sm:$0xff]  ;;  %v221_v3 = vld [vmem:[%s2002_s20 + $0x8] sm:$0xff]  ;;  %v222_v4 = vld [vmem:[%s2002_s20 + $0x10] sm:$0xff] }
  0x2c   : >> { %v223_v5 = vld [vmem:[%s2002_s20 + $0x18] sm:$0xff]  ;;  %v348_v6 = vmul.f32 %v220_v2, %v220_v2  ;;  %v349_v7 = vmul.f32 %v221_v3, %v221_v3  ;;  %v350_v8 = vmul.f32 %v222_v4, %v222_v4  ;;  %v224_v9 = vld [vmem:[%s2002_s20 + $0x20] sm:$0xff]  ;;  %v225_v12 = vld [vmem:[%s2002_s20 + $0x28] sm:$0xff] }
  0x2d   : >> { %v351_v10 = vmul.f32 %v223_v5, %v223_v5  ;;  %v352_v13 = vmul.f32 %v224_v9, %v224_v9  ;;  %v226_v15 = vld [vmem:[%s2002_s20 + $0x30] sm:$0xff]  ;;  %v353_v16 = vmul.f32 %v225_v12, %v225_v12  ;;  %v227_v18 = vld [vmem:[%s2002_s20 + $0x38] sm:$0xff]  ;;  %v228_v21 = vld [vmem:[%s2002_s20 + $0x40] sm:$0xff] }
  0x2e   : >> { %v476_v11 = vadd.f32 %v349_v7, %v348_v6  ;;  %v354_v19 = vmul.f32 %v226_v15, %v226_v15  ;;  %v355_v22 = vmul.f32 %v227_v18, %v227_v18  ;;  %v229_v24 = vld [vmem:[%s2002_s20 + $0x48] sm:$0xff]  ;;  %v356_v25 = vmul.f32 %v228_v21, %v228_v21  ;;  %v230_v27 = vld [vmem:[%s2002_s20 + $0x50] sm:$0xff]  ;;  %v231_v30 = vld [vmem:[%s2002_s20 + $0x58] sm:$0xff] }
  0x2f   : >> { %v357_v28 = vmul.f32 %v229_v24, %v229_v24  ;;  %v358_v31 = vmul.f32 %v230_v27, %v230_v27  ;;  %v232_v33 = vld [vmem:[%s2002_s20 + $0x60] sm:$0xff]  ;;  %v359_v34 = vmul.f32 %v231_v30, %v231_v30  ;;  %v233_v36 = vld [vmem:[%s2002_s20 + $0x68] sm:$0xff]  ;;  %v234_v39 = vld [vmem:[%s2002_s20 + $0x70] sm:$0xff] }
  0x30   : >> { %v477_v14 = vadd.f32 %v476_v11, %v350_v8  ;;  %v360_v37 = vmul.f32 %v232_v33, %v232_v33  ;;  %v361_v40 = vmul.f32 %v233_v36, %v233_v36  ;;  %v235_v42 = vld [vmem:[%s2002_s20 + $0x78] sm:$0xff]  ;;  %v362_v43 = vmul.f32 %v234_v39, %v234_v39  ;;  %v236_v45 = vld [vmem:[%s2002_s20 + $0x80] sm:$0xff]  ;;  %v237_v48 = vld [vmem:[%s2002_s20 + $0x88] sm:$0xff] }
  0x31   : >> { %v363_v46 = vmul.f32 %v235_v42, %v235_v42  ;;  %v364_v49 = vmul.f32 %v236_v45, %v236_v45  ;;  %v238_v51 = vld [vmem:[%s2002_s20 + $0x90] sm:$0xff]  ;;  %v365_v52 = vmul.f32 %v237_v48, %v237_v48  ;;  %v239_v54 = vld [vmem:[%s2002_s20 + $0x98] sm:$0xff]  ;;  %v240_v57 = vld [vmem:[%s2002_s20 + $0xa0] sm:$0xff] }
  0x32   : >> { %v478_v17 = vadd.f32 %v477_v14, %v351_v10  ;;  %v366_v55 = vmul.f32 %v238_v51, %v238_v51  ;;  %v367_v58 = vmul.f32 %v239_v54, %v239_v54  ;;  %v241_v60 = vld [vmem:[%s2002_s20 + $0xa8] sm:$0xff]  ;;  %v368_v61 = vmul.f32 %v240_v57, %v240_v57  ;;  %v242_v63 = vld [vmem:[%s2002_s20 + $0xb0] sm:$0xff]  ;;  %v243_v3 = vld [vmem:[%s2002_s20 + $0xb8] sm:$0xff] }
  0x33   : >> { %v369_v0 = vmul.f32 %v241_v60, %v241_v60  ;;  %v370_v4 = vmul.f32 %v242_v63, %v242_v63  ;;  %v244_v6 = vld [vmem:[%s2002_s20 + $0xc0] sm:$0xff]  ;;  %v371_v7 = vmul.f32 %v243_v3, %v243_v3  ;;  %v245_v9 = vld [vmem:[%s2002_s20 + $0xc8] sm:$0xff]  ;;  %v246_v12 = vld [vmem:[%s2002_s20 + $0xd0] sm:$0xff] }
  0x34   : >> { %v479_v20 = vadd.f32 %v478_v17, %v352_v13  ;;  %v372_v10 = vmul.f32 %v244_v6, %v244_v6  ;;  %v373_v13 = vmul.f32 %v245_v9, %v245_v9  ;;  %v247_v15 = vld [vmem:[%s2002_s20 + $0xd8] sm:$0xff]  ;;  %v248_v18 = vld [vmem:[%s2002_s20 + $0xe0] sm:$0xff]  ;;  %v249_v21 = vld [vmem:[%s2002_s20 + $0xe8] sm:$0xff] }
  0x35   : >> { %v250_v24 = vld [vmem:[%s2002_s20 + $0xf0] sm:$0xff]  ;;  %v251_v27 = vld [vmem:[%s2002_s20 + $0xf8] sm:$0xff]  ;;  %v252_v30 = vld [vmem:[%s2002_s20 + $0x100] sm:$0xff] }
  0x36   : >> { %v480_v23 = vadd.f32 %v479_v20, %v353_v16  ;;  %v374_v16 = vmul.f32 %v246_v12, %v246_v12  ;;  %v253_v33 = vld [vmem:[%s2002_s20 + $0x108] sm:$0xff]  ;;  %v254_v36 = vld [vmem:[%s2002_s20 + $0x110] sm:$0xff]  ;;  %v255_v39 = vld [vmem:[%s2002_s20 + $0x118] sm:$0xff] }
  0x37   : >> { %v256_v42 = vld [vmem:[%s2002_s20 + $0x120] sm:$0xff]  ;;  %v257_v45 = vld [vmem:[%s2002_s20 + $0x128] sm:$0xff]  ;;  %v258_v48 = vld [vmem:[%s2002_s20 + $0x130] sm:$0xff] }
  0x38   : >> { %v481_v26 = vadd.f32 %v480_v23, %v354_v19  ;;  %v375_v19 = vmul.f32 %v247_v15, %v247_v15  ;;  %v259_v51 = vld [vmem:[%s2002_s20 + $0x138] sm:$0xff]  ;;  %v260_v54 = vld [vmem:[%s2002_s20 + $0x140] sm:$0xff]  ;;  %v261_v57 = vld [vmem:[%s2002_s20 + $0x148] sm:$0xff] }
  0x39   : >> { %v262_v60 = vld [vmem:[%s2002_s20 + $0x150] sm:$0xff]  ;;  %v263_v63 = vld [vmem:[%s2002_s20 + $0x158] sm:$0xff]  ;;  %v264_v3 = vld [vmem:[%s2002_s20 + $0x160] sm:$0xff] }
  0x3a   : >> { %v482_v29 = vadd.f32 %v481_v26, %v355_v22  ;;  %v376_v22 = vmul.f32 %v248_v18, %v248_v18  ;;  %v265_v6 = vld [vmem:[%s2002_s20 + $0x168] sm:$0xff]  ;;  %v266_v9 = vld [vmem:[%s2002_s20 + $0x170] sm:$0xff]  ;;  %v267_v12 = vld [vmem:[%s2002_s20 + $0x178] sm:$0xff] }
  0x3b   : >> { %v268_v15 = vld [vmem:[%s2002_s20 + $0x180] sm:$0xff]  ;;  %v269_v18 = vld [vmem:[%s2002_s20 + $0x188] sm:$0xff] }
  0x3c   : >> { %v483_v32 = vadd.f32 %v482_v29, %v356_v25  ;;  %v377_v25 = vmul.f32 %v249_v21, %v249_v21  ;;  %v270_v21 = vld [vmem:[%s2002_s20 + $0x190] sm:$0xff] }
  0x3e   : >> { %v484_v35 = vadd.f32 %v483_v32, %v357_v28  ;;  %v378_v28 = vmul.f32 %v250_v24, %v250_v24  ;;  %v271_v24 = vld [vmem:[%s2002_s20 + $0x198] sm:$0xff] }
  0x40   : >> { %v485_v38 = vadd.f32 %v484_v35, %v358_v31  ;;  %v379_v31 = vmul.f32 %v251_v27, %v251_v27  ;;  %v272_v27 = vld [vmem:[%s2002_s20 + $0x1a0] sm:$0xff] }
  0x42   : >> { %v486_v41 = vadd.f32 %v485_v38, %v359_v34  ;;  %v380_v34 = vmul.f32 %v252_v30, %v252_v30  ;;  %v273_v30 = vld [vmem:[%s2002_s20 + $0x1a8] sm:$0xff] }
  0x44   : >> { %v487_v44 = vadd.f32 %v486_v41, %v360_v37  ;;  %v381_v37 = vmul.f32 %v253_v33, %v253_v33  ;;  %v274_v33 = vld [vmem:[%s2002_s20 + $0x1b0] sm:$0xff] }
  0x46   : >> { %v488_v47 = vadd.f32 %v487_v44, %v361_v40  ;;  %v382_v40 = vmul.f32 %v254_v36, %v254_v36  ;;  %v275_v36 = vld [vmem:[%s2002_s20 + $0x1b8] sm:$0xff] }
  0x48   : >> { %v489_v50 = vadd.f32 %v488_v47, %v362_v43  ;;  %v383_v43 = vmul.f32 %v255_v39, %v255_v39  ;;  %v276_v39 = vld [vmem:[%s2002_s20 + $0x1c0] sm:$0xff] }
  0x4a   : >> { %v490_v53 = vadd.f32 %v489_v50, %v363_v46  ;;  %v384_v46 = vmul.f32 %v256_v42, %v256_v42  ;;  %v277_v42 = vld [vmem:[%s2002_s20 + $0x1c8] sm:$0xff] }
  0x4c   : >> { %v491_v56 = vadd.f32 %v490_v53, %v364_v49  ;;  %v385_v49 = vmul.f32 %v257_v45, %v257_v45  ;;  %v278_v45 = vld [vmem:[%s2002_s20 + $0x1d0] sm:$0xff] }
  0x4e   : >> { %v492_v59 = vadd.f32 %v491_v56, %v365_v52  ;;  %v386_v52 = vmul.f32 %v258_v48, %v258_v48  ;;  %v279_v48 = vld [vmem:[%s2002_s20 + $0x1d8] sm:$0xff] }
  0x50   : >> { %v493_v62 = vadd.f32 %v492_v59, %v366_v55  ;;  %v387_v55 = vmul.f32 %v259_v51, %v259_v51  ;;  %v280_v51 = vld [vmem:[%s2002_s20 + $0x1e0] sm:$0xff] }
  0x52   : >> { %v494_v2 = vadd.f32 %v493_v62, %v367_v58  ;;  %v388_v58 = vmul.f32 %v260_v54, %v260_v54  ;;  %v281_v54 = vld [vmem:[%s2002_s20 + $0x1e8] sm:$0xff] }
  0x54   : >> { %v495_v5 = vadd.f32 %v494_v2, %v368_v61  ;;  %v389_v61 = vmul.f32 %v261_v57, %v261_v57  ;;  %v282_v57 = vld [vmem:[%s2002_s20 + $0x1f0] sm:$0xff] }
  0x56   : >> { %v496_v8 = vadd.f32 %v495_v5, %v369_v0  ;;  %v390_v0 = vmul.f32 %v262_v60, %v262_v60  ;;  %v283_v60 = vld [vmem:[%s2002_s20 + $0x1f8] sm:$0xff] }
  0x58   : >> { %v497_v11 = vadd.f32 %v496_v8, %v370_v4  ;;  %v391_v4 = vmul.f32 %v263_v63, %v263_v63  ;;  %v284_v63 = vld [vmem:[%s2002_s20 + $0x200] sm:$0xff] }
  0x5a   : >> { %v498_v14 = vadd.f32 %v497_v11, %v371_v7  ;;  %v392_v7 = vmul.f32 %v264_v3, %v264_v3  ;;  %v285_v3 = vld [vmem:[%s2002_s20 + $0x208] sm:$0xff] }
  0x5c   : >> { %v499_v17 = vadd.f32 %v498_v14, %v372_v10  ;;  %v393_v10 = vmul.f32 %v265_v6, %v265_v6  ;;  %v286_v6 = vld [vmem:[%s2002_s20 + $0x210] sm:$0xff] }
  0x5e   : >> { %v500_v20 = vadd.f32 %v499_v17, %v373_v13  ;;  %v394_v13 = vmul.f32 %v266_v9, %v266_v9  ;;  %v287_v9 = vld [vmem:[%s2002_s20 + $0x218] sm:$0xff] }
  0x60   : >> { %v501_v23 = vadd.f32 %v500_v20, %v374_v16  ;;  %v395_v16 = vmul.f32 %v267_v12, %v267_v12  ;;  %v288_v12 = vld [vmem:[%s2002_s20 + $0x220] sm:$0xff] }
  0x62   : >> { %v502_v26 = vadd.f32 %v501_v23, %v375_v19  ;;  %v396_v19 = vmul.f32 %v268_v15, %v268_v15  ;;  %v289_v15 = vld [vmem:[%s2002_s20 + $0x228] sm:$0xff] }
  0x64   : >> { %v503_v29 = vadd.f32 %v502_v26, %v376_v22  ;;  %v397_v22 = vmul.f32 %v269_v18, %v269_v18  ;;  %v290_v18 = vld [vmem:[%s2002_s20 + $0x230] sm:$0xff] }
  0x66   : >> { %v504_v32 = vadd.f32 %v503_v29, %v377_v25  ;;  %v398_v25 = vmul.f32 %v270_v21, %v270_v21  ;;  %v291_v21 = vld [vmem:[%s2002_s20 + $0x238] sm:$0xff] }
  0x68   : >> { %v505_v35 = vadd.f32 %v504_v32, %v378_v28  ;;  %v399_v28 = vmul.f32 %v271_v24, %v271_v24  ;;  %v292_v24 = vld [vmem:[%s2002_s20 + $0x240] sm:$0xff] }
  0x6a   : >> { %v506_v38 = vadd.f32 %v505_v35, %v379_v31  ;;  %v400_v31 = vmul.f32 %v272_v27, %v272_v27  ;;  %v293_v27 = vld [vmem:[%s2002_s20 + $0x248] sm:$0xff] }
  0x6c   : >> { %v507_v41 = vadd.f32 %v506_v38, %v380_v34  ;;  %v401_v34 = vmul.f32 %v273_v30, %v273_v30  ;;  %v294_v30 = vld [vmem:[%s2002_s20 + $0x250] sm:$0xff] }
  0x6e   : >> { %v508_v44 = vadd.f32 %v507_v41, %v381_v37  ;;  %v402_v37 = vmul.f32 %v274_v33, %v274_v33  ;;  %v295_v33 = vld [vmem:[%s2002_s20 + $0x258] sm:$0xff] }
  0x70   : >> { %v509_v47 = vadd.f32 %v508_v44, %v382_v40  ;;  %v403_v40 = vmul.f32 %v275_v36, %v275_v36  ;;  %v296_v36 = vld [vmem:[%s2002_s20 + $0x260] sm:$0xff] }
  0x72   : >> { %v510_v50 = vadd.f32 %v509_v47, %v383_v43  ;;  %v404_v43 = vmul.f32 %v276_v39, %v276_v39  ;;  %v297_v39 = vld [vmem:[%s2002_s20 + $0x268] sm:$0xff] }
  0x74   : >> { %v511_v53 = vadd.f32 %v510_v50, %v384_v46  ;;  %v405_v46 = vmul.f32 %v277_v42, %v277_v42  ;;  %v298_v42 = vld [vmem:[%s2002_s20 + $0x270] sm:$0xff] }
  0x76   : >> { %v512_v56 = vadd.f32 %v511_v53, %v385_v49  ;;  %v406_v49 = vmul.f32 %v278_v45, %v278_v45  ;;  %v299_v45 = vld [vmem:[%s2002_s20 + $0x278] sm:$0xff] }
  0x78   : >> { %v513_v59 = vadd.f32 %v512_v56, %v386_v52  ;;  %v407_v52 = vmul.f32 %v279_v48, %v279_v48  ;;  %v300_v48 = vld [vmem:[%s2002_s20 + $0x280] sm:$0xff] }
  0x7a   : >> { %v514_v62 = vadd.f32 %v513_v59, %v387_v55  ;;  %v408_v55 = vmul.f32 %v280_v51, %v280_v51  ;;  %v301_v51 = vld [vmem:[%s2002_s20 + $0x288] sm:$0xff] }
  0x7c   : >> { %v515_v2 = vadd.f32 %v514_v62, %v388_v58  ;;  %v409_v58 = vmul.f32 %v281_v54, %v281_v54  ;;  %v302_v54 = vld [vmem:[%s2002_s20 + $0x290] sm:$0xff] }
  0x7e   : >> { %v516_v5 = vadd.f32 %v515_v2, %v389_v61  ;;  %v410_v61 = vmul.f32 %v282_v57, %v282_v57  ;;  %v303_v57 = vld [vmem:[%s2002_s20 + $0x298] sm:$0xff] }
  0x80   : >> { %v517_v8 = vadd.f32 %v516_v5, %v390_v0  ;;  %v411_v0 = vmul.f32 %v283_v60, %v283_v60  ;;  %v304_v60 = vld [vmem:[%s2002_s20 + $0x2a0] sm:$0xff] }
  0x82   : >> { %v518_v11 = vadd.f32 %v517_v8, %v391_v4  ;;  %v412_v4 = vmul.f32 %v284_v63, %v284_v63  ;;  %v305_v63 = vld [vmem:[%s2002_s20 + $0x2a8] sm:$0xff] }
  0x84   : >> { %v519_v14 = vadd.f32 %v518_v11, %v392_v7  ;;  %v413_v7 = vmul.f32 %v285_v3, %v285_v3  ;;  %v306_v3 = vld [vmem:[%s2002_s20 + $0x2b0] sm:$0xff] }
  0x86   : >> { %v520_v17 = vadd.f32 %v519_v14, %v393_v10  ;;  %v414_v10 = vmul.f32 %v286_v6, %v286_v6  ;;  %v307_v6 = vld [vmem:[%s2002_s20 + $0x2b8] sm:$0xff] }
  0x88   : >> { %v521_v20 = vadd.f32 %v520_v17, %v394_v13  ;;  %v415_v13 = vmul.f32 %v287_v9, %v287_v9  ;;  %v308_v9 = vld [vmem:[%s2002_s20 + $0x2c0] sm:$0xff] }
  0x8a   : >> { %v522_v23 = vadd.f32 %v521_v20, %v395_v16  ;;  %v416_v16 = vmul.f32 %v288_v12, %v288_v12  ;;  %v309_v12 = vld [vmem:[%s2002_s20 + $0x2c8] sm:$0xff] }
  0x8c   : >> { %v523_v26 = vadd.f32 %v522_v23, %v396_v19  ;;  %v417_v19 = vmul.f32 %v289_v15, %v289_v15  ;;  %v310_v15 = vld [vmem:[%s2002_s20 + $0x2d0] sm:$0xff] }
  0x8e   : >> { %v524_v29 = vadd.f32 %v523_v26, %v397_v22  ;;  %v418_v22 = vmul.f32 %v290_v18, %v290_v18  ;;  %v311_v18 = vld [vmem:[%s2002_s20 + $0x2d8] sm:$0xff] }
  0x90   : >> { %v525_v32 = vadd.f32 %v524_v29, %v398_v25  ;;  %v419_v25 = vmul.f32 %v291_v21, %v291_v21  ;;  %v312_v21 = vld [vmem:[%s2002_s20 + $0x2e0] sm:$0xff] }
  0x92   : >> { %v526_v35 = vadd.f32 %v525_v32, %v399_v28  ;;  %v420_v28 = vmul.f32 %v292_v24, %v292_v24  ;;  %v313_v24 = vld [vmem:[%s2002_s20 + $0x2e8] sm:$0xff] }
  0x94   : >> { %v527_v38 = vadd.f32 %v526_v35, %v400_v31  ;;  %v421_v31 = vmul.f32 %v293_v27, %v293_v27  ;;  %v314_v27 = vld [vmem:[%s2002_s20 + $0x2f0] sm:$0xff] }
  0x96   : >> { %v528_v41 = vadd.f32 %v527_v38, %v401_v34  ;;  %v422_v34 = vmul.f32 %v294_v30, %v294_v30  ;;  %v315_v30 = vld [vmem:[%s2002_s20 + $0x2f8] sm:$0xff] }
  0x98   : >> { %v529_v44 = vadd.f32 %v528_v41, %v402_v37  ;;  %v423_v37 = vmul.f32 %v295_v33, %v295_v33  ;;  %v316_v33 = vld [vmem:[%s2002_s20 + $0x300] sm:$0xff] }
  0x9a   : >> { %v530_v47 = vadd.f32 %v529_v44, %v403_v40  ;;  %v424_v40 = vmul.f32 %v296_v36, %v296_v36  ;;  %v317_v36 = vld [vmem:[%s2002_s20 + $0x308] sm:$0xff] }
  0x9c   : >> { %v531_v50 = vadd.f32 %v530_v47, %v404_v43  ;;  %v425_v43 = vmul.f32 %v297_v39, %v297_v39  ;;  %v318_v39 = vld [vmem:[%s2002_s20 + $0x310] sm:$0xff] }
  0x9e   : >> { %v532_v53 = vadd.f32 %v531_v50, %v405_v46  ;;  %v426_v46 = vmul.f32 %v298_v42, %v298_v42  ;;  %v319_v42 = vld [vmem:[%s2002_s20 + $0x318] sm:$0xff] }
  0xa0   : >> { %v533_v56 = vadd.f32 %v532_v53, %v406_v49  ;;  %v427_v49 = vmul.f32 %v299_v45, %v299_v45  ;;  %v320_v45 = vld [vmem:[%s2002_s20 + $0x320] sm:$0xff] }
  0xa2   : >> { %v534_v59 = vadd.f32 %v533_v56, %v407_v52  ;;  %v428_v52 = vmul.f32 %v300_v48, %v300_v48  ;;  %v321_v48 = vld [vmem:[%s2002_s20 + $0x328] sm:$0xff] }
  0xa4   : >> { %v535_v62 = vadd.f32 %v534_v59, %v408_v55  ;;  %v429_v55 = vmul.f32 %v301_v51, %v301_v51  ;;  %v322_v51 = vld [vmem:[%s2002_s20 + $0x330] sm:$0xff] }
  0xa6   : >> { %v536_v2 = vadd.f32 %v535_v62, %v409_v58  ;;  %v430_v58 = vmul.f32 %v302_v54, %v302_v54  ;;  %v323_v54 = vld [vmem:[%s2002_s20 + $0x338] sm:$0xff] }
  0xa8   : >> { %v537_v5 = vadd.f32 %v536_v2, %v410_v61  ;;  %v431_v61 = vmul.f32 %v303_v57, %v303_v57  ;;  %v324_v57 = vld [vmem:[%s2002_s20 + $0x340] sm:$0xff] }
  0xaa   : >> { %v538_v8 = vadd.f32 %v537_v5, %v411_v0  ;;  %v432_v0 = vmul.f32 %v304_v60, %v304_v60  ;;  %v325_v60 = vld [vmem:[%s2002_s20 + $0x348] sm:$0xff] }
  0xac   : >> { %v539_v11 = vadd.f32 %v538_v8, %v412_v4  ;;  %v433_v4 = vmul.f32 %v305_v63, %v305_v63  ;;  %v326_v63 = vld [vmem:[%s2002_s20 + $0x350] sm:$0xff] }
  0xae   : >> { %v540_v14 = vadd.f32 %v539_v11, %v413_v7  ;;  %v434_v7 = vmul.f32 %v306_v3, %v306_v3  ;;  %v327_v3 = vld [vmem:[%s2002_s20 + $0x358] sm:$0xff] }
  0xb0   : >> { %v541_v17 = vadd.f32 %v540_v14, %v414_v10  ;;  %v435_v10 = vmul.f32 %v307_v6, %v307_v6  ;;  %v328_v6 = vld [vmem:[%s2002_s20 + $0x360] sm:$0xff] }
  0xb2   : >> { %v542_v20 = vadd.f32 %v541_v17, %v415_v13  ;;  %v436_v13 = vmul.f32 %v308_v9, %v308_v9  ;;  %v329_v9 = vld [vmem:[%s2002_s20 + $0x368] sm:$0xff] }
  0xb4   : >> { %v543_v23 = vadd.f32 %v542_v20, %v416_v16  ;;  %v437_v16 = vmul.f32 %v309_v12, %v309_v12  ;;  %v330_v12 = vld [vmem:[%s2002_s20 + $0x370] sm:$0xff] }
  0xb6   : >> { %v544_v26 = vadd.f32 %v543_v23, %v417_v19  ;;  %v438_v19 = vmul.f32 %v310_v15, %v310_v15  ;;  %v331_v15 = vld [vmem:[%s2002_s20 + $0x378] sm:$0xff] }
  0xb8   : >> { %v545_v29 = vadd.f32 %v544_v26, %v418_v22  ;;  %v439_v22 = vmul.f32 %v311_v18, %v311_v18  ;;  %v332_v18 = vld [vmem:[%s2002_s20 + $0x380] sm:$0xff] }
  0xba   : >> { %v546_v32 = vadd.f32 %v545_v29, %v419_v25  ;;  %v440_v25 = vmul.f32 %v312_v21, %v312_v21  ;;  %v333_v21 = vld [vmem:[%s2002_s20 + $0x388] sm:$0xff] }
  0xbc   : >> { %v547_v35 = vadd.f32 %v546_v32, %v420_v28  ;;  %v441_v28 = vmul.f32 %v313_v24, %v313_v24  ;;  %v334_v24 = vld [vmem:[%s2002_s20 + $0x390] sm:$0xff] }
  0xbe   : >> { %v548_v38 = vadd.f32 %v547_v35, %v421_v31  ;;  %v442_v31 = vmul.f32 %v314_v27, %v314_v27  ;;  %v335_v27 = vld [vmem:[%s2002_s20 + $0x398] sm:$0xff] }
  0xc0   : >> { %v549_v41 = vadd.f32 %v548_v38, %v422_v34  ;;  %v443_v34 = vmul.f32 %v315_v30, %v315_v30  ;;  %v336_v30 = vld [vmem:[%s2002_s20 + $0x3a0] sm:$0xff] }
  0xc2   : >> { %v550_v44 = vadd.f32 %v549_v41, %v423_v37  ;;  %v444_v37 = vmul.f32 %v316_v33, %v316_v33  ;;  %v337_v33 = vld [vmem:[%s2002_s20 + $0x3a8] sm:$0xff] }
  0xc4   : >> { %v551_v47 = vadd.f32 %v550_v44, %v424_v40  ;;  %v445_v40 = vmul.f32 %v317_v36, %v317_v36  ;;  %v338_v36 = vld [vmem:[%s2002_s20 + $0x3b0] sm:$0xff] }
  0xc6   : >> { %v552_v50 = vadd.f32 %v551_v47, %v425_v43  ;;  %v446_v43 = vmul.f32 %v318_v39, %v318_v39  ;;  %v339_v39 = vld [vmem:[%s2002_s20 + $0x3b8] sm:$0xff] }
  0xc8   : >> { %v553_v53 = vadd.f32 %v552_v50, %v426_v46  ;;  %v447_v46 = vmul.f32 %v319_v42, %v319_v42  ;;  %v340_v42 = vld [vmem:[%s2002_s20 + $0x3c0] sm:$0xff] }
  0xca   : >> { %v554_v56 = vadd.f32 %v553_v53, %v427_v49  ;;  %v448_v49 = vmul.f32 %v320_v45, %v320_v45  ;;  %v341_v45 = vld [vmem:[%s2002_s20 + $0x3c8] sm:$0xff] }
  0xcc   : >> { %v555_v59 = vadd.f32 %v554_v56, %v428_v52  ;;  %v449_v52 = vmul.f32 %v321_v48, %v321_v48  ;;  %v342_v48 = vld [vmem:[%s2002_s20 + $0x3d0] sm:$0xff] }
  0xce   : >> { %v556_v62 = vadd.f32 %v555_v59, %v429_v55  ;;  %v450_v55 = vmul.f32 %v322_v51, %v322_v51  ;;  %v343_v51 = vld [vmem:[%s2002_s20 + $0x3d8] sm:$0xff] }
  0xd0   : >> { %v557_v2 = vadd.f32 %v556_v62, %v430_v58  ;;  %v451_v58 = vmul.f32 %v323_v54, %v323_v54  ;;  %v344_v54 = vld [vmem:[%s2002_s20 + $0x3e0] sm:$0xff] }
  0xd2   : >> { %v558_v5 = vadd.f32 %v557_v2, %v431_v61  ;;  %v452_v61 = vmul.f32 %v324_v57, %v324_v57  ;;  %v345_v57 = vld [vmem:[%s2002_s20 + $0x3e8] sm:$0xff] }
  0xd4   : >> { %v559_v8 = vadd.f32 %v558_v5, %v432_v0  ;;  %v453_v0 = vmul.f32 %v325_v60, %v325_v60  ;;  %v346_v60 = vld [vmem:[%s2002_s20 + $0x3f0] sm:$0xff] }
  0xd6   : >> { %v560_v11 = vadd.f32 %v559_v8, %v433_v4  ;;  %v454_v4 = vmul.f32 %v326_v63, %v326_v63  ;;  %v347_v63 = vld [vmem:[%s2002_s20 + $0x3f8] sm:$0xff] }
  0xd8   : >> { %v561_v14 = vadd.f32 %v560_v11, %v434_v7  ;;  %v455_v7 = vmul.f32 %v327_v3, %v327_v3  ;;  %v475_v3 = vmul.f32 %v347_v63, %v347_v63 }
  0xda   : >> { %v562_v17 = vadd.f32 %v561_v14, %v435_v10  ;;  %v456_v10 = vmul.f32 %v328_v6, %v328_v6 }
  0xdc   : >> { %v563_v20 = vadd.f32 %v562_v17, %v436_v13  ;;  %v457_v13 = vmul.f32 %v329_v9, %v329_v9 }
  0xde   : >> { %v564_v23 = vadd.f32 %v563_v20, %v437_v16  ;;  %v458_v16 = vmul.f32 %v330_v12, %v330_v12 }
  0xe0   : >> { %v565_v26 = vadd.f32 %v564_v23, %v438_v19  ;;  %v459_v19 = vmul.f32 %v331_v15, %v331_v15 }
  0xe2   : >> { %v566_v29 = vadd.f32 %v565_v26, %v439_v22  ;;  %v460_v22 = vmul.f32 %v332_v18, %v332_v18 }
  0xe4   : >> { %v567_v32 = vadd.f32 %v566_v29, %v440_v25  ;;  %v461_v25 = vmul.f32 %v333_v21, %v333_v21 }
  0xe6   : >> { %v568_v35 = vadd.f32 %v567_v32, %v441_v28  ;;  %v462_v28 = vmul.f32 %v334_v24, %v334_v24 }
  0xe8   : >> { %v569_v38 = vadd.f32 %v568_v35, %v442_v31  ;;  %v463_v31 = vmul.f32 %v335_v27, %v335_v27 }
  0xea   : >> { %v570_v41 = vadd.f32 %v569_v38, %v443_v34  ;;  %v464_v34 = vmul.f32 %v336_v30, %v336_v30 }
  0xec   : >> { %v571_v44 = vadd.f32 %v570_v41, %v444_v37  ;;  %v465_v37 = vmul.f32 %v337_v33, %v337_v33 }
  0xee   : >> { %v572_v47 = vadd.f32 %v571_v44, %v445_v40  ;;  %v466_v40 = vmul.f32 %v338_v36, %v338_v36 }
  0xf0   : >> { %v573_v50 = vadd.f32 %v572_v47, %v446_v43  ;;  %v467_v43 = vmul.f32 %v339_v39, %v339_v39 }
  0xf2   : >> { %v574_v53 = vadd.f32 %v573_v50, %v447_v46  ;;  %v468_v46 = vmul.f32 %v340_v42, %v340_v42 }
  0xf4   : >> { %v575_v56 = vadd.f32 %v574_v53, %v448_v49  ;;  %v469_v49 = vmul.f32 %v341_v45, %v341_v45 }
  0xf6   : >> { %v576_v59 = vadd.f32 %v575_v56, %v449_v52  ;;  %v470_v52 = vmul.f32 %v342_v48, %v342_v48 }
  0xf8   : >> { %v577_v62 = vadd.f32 %v576_v59, %v450_v55  ;;  %v471_v55 = vmul.f32 %v343_v51, %v343_v51 }
  0xfa   : >> { %v578_v2 = vadd.f32 %v577_v62, %v451_v58  ;;  %v472_v58 = vmul.f32 %v344_v54, %v344_v54 }
  0xfc   : >> { %v579_v5 = vadd.f32 %v578_v2, %v452_v61  ;;  %v473_v61 = vmul.f32 %v345_v57, %v345_v57 }
  0xfe   : >> { %v580_v8 = vadd.f32 %v579_v5, %v453_v0  ;;  %v474_v0 = vmul.f32 %v346_v60, %v346_v60 }
 0x100   : >> { %v581_v11 = vadd.f32 %v580_v8, %v454_v4  ;;  %v604_v8 = vld [vmem:[%s1985_s5] sm:$0xff] (%p213_p4) }
 0x102   : >> { %v582_v14 = vadd.f32 %v581_v11, %v455_v7 }
 0x104   : >> { %v583_v17 = vadd.f32 %v582_v14, %v456_v10 }
 0x106   : >> { %v584_v20 = vadd.f32 %v583_v17, %v457_v13 }
 0x108   : >> { %v585_v23 = vadd.f32 %v584_v20, %v458_v16 }
 0x10a   : >> { %v586_v26 = vadd.f32 %v585_v23, %v459_v19 }
 0x10c   : >> { %v587_v29 = vadd.f32 %v586_v26, %v460_v22 }
 0x10e   : >> { %v588_v32 = vadd.f32 %v587_v29, %v461_v25 }
 0x110   : >> { %v589_v35 = vadd.f32 %v588_v32, %v462_v28 }
 0x112   : >> { %v590_v38 = vadd.f32 %v589_v35, %v463_v31 }
 0x114   : >> { %v591_v41 = vadd.f32 %v590_v38, %v464_v34 }
 0x116   : >> { %v592_v44 = vadd.f32 %v591_v41, %v465_v37 }
 0x118   : >> { %v593_v47 = vadd.f32 %v592_v44, %v466_v40 }
 0x11a   : >> { %v594_v50 = vadd.f32 %v593_v47, %v467_v43 }
 0x11c   : >> { %v595_v53 = vadd.f32 %v594_v50, %v468_v46 }
 0x11e   : >> { %v596_v56 = vadd.f32 %v595_v53, %v469_v49 }
 0x120   : >> { %v597_v59 = vadd.f32 %v596_v56, %v470_v52 }
 0x122   : >> { %v598_v62 = vadd.f32 %v597_v59, %v471_v55 }
 0x124   : >> { %v599_v2 = vadd.f32 %v598_v62, %v472_v58 }
 0x126   : >> { %v600_v4 = vadd.f32 %v599_v2, %v473_v61 }
 0x128   : >> { %v601_v5 = vadd.f32 %v600_v4, %v474_v0  ;;  %215 = sbr.rel (!%p213_p4) target bundleno = 41 (0x29), region = 87 }
 0x12a   : >> { %v602_v6 = vadd.f32 %v601_v5, %v475_v3 }
 0x12c   : >> { %v603_v7 = vadd.f32 %v1876_v1, %v602_v6  }
 0x12e   : >> { %v4302_v1 = vmov %v603_v7  ;;  %v605_v9 = vadd.f32 (%p213_p4), %v604_v8, %v603_v7 }
 0x130   : > { %606 = vst [vmem:[%s1985_s5] sm:$0xff] %v605_v9 }
 0x131 PF: > { %610 = sbr.rel (%p176_p12) target bundleno = 741 (0x2e5), region = 43  ;;  %s1651_s21 = sshll.u32 (!%p176_p12), %s1856_s9, 13  ;;  %v2145_v1 = vmov (!%p176_p12), 0.0  }
 0x132   : > { %s2143_s24 = ssub.s32 (!%p176_p12), 8492, %s1651_s21  ;;  %s2147_s25 = smov (!%p176_p12), 0  }
 0x138 LB: >> { %4303 = vst [vmem:[#allocation5_spill] sm:$0xff] %v1884_v1  ;;  %s1652_s26 = sshll.u32 %s1888_s25, 10  ;;  %v878_v10 = vlaneseq  ;;  %v2183_v28 = vstv %s2143_s24  ;;  %s618_s25 = sadd.s32 1, %s1888_s25   ;;  %s1888_s25 = sphi %s2147_s25, %s618_s25   ;;  %v1884_v1 = vphi %v2145_v1, %v4933_v1  }
 0x139   : >> { %s2157_s27 = scalar_lea.vmem %s1983_s4, %s1652_s26  ;;  %v2166_v17 = vstv %s1652_s26  ;;  %4307 = vst [vmem:[#allocation9_spill] sm:$0xff] %v2183_v28  ;;  %p615_p5 = scmp.ge.s32.totalorder %s618_s25, 8  }
 0x13a   : >> { %v2159_v11 = vshrl.u32 %v878_v10, 7  ;;  %v622_v12 = vld [vmem:[%s2157_s27] sm:$0xff]  ;;  %v623_v13 = vld [vmem:[%s2157_s27 + $0x8] sm:$0xff]  ;;  %v624_v14 = vld [vmem:[%s2157_s27 + $0x10] sm:$0xff] }
 0x13b   : >> { %v625_v15 = vld [vmem:[%s2157_s27 + $0x18] sm:$0xff]  ;;  %v626_v16 = vld [vmem:[%s2157_s27 + $0x20] sm:$0xff]  ;;  %v655_v18 = vld [vmem:[%s2157_s27 + $0x108] sm:$0xff]  ;;  %v2189_v33 = vmul.f32 %v622_v12, %v622_v12  ;;  %v2191_v34 = vmul.f32 %v623_v13, %v623_v13  ;;  %v2204_v41 = vmul.f32 %v624_v14, %v624_v14 }
 0x13c   : >> { %4304 = vst [vmem:[#allocation6_spill] sm:$0xff] %v2159_v11  ;;  %v656_v19 = vld [vmem:[%s2157_s27 + $0x110] sm:$0xff]  ;;  %v657_v20 = vld [vmem:[%s2157_s27 + $0x118] sm:$0xff]  ;;  %v658_v21 = vld [vmem:[%s2157_s27 + $0x120] sm:$0xff]  ;;  %v2177_v26 = vadd.s32 8, %v2159_v11  ;;  %v2180_v27 = vadd.s32 16, %v2159_v11  ;;  %v2198_v36 = vadd.s32 %v2166_v17, %v2159_v11  ;;  %v2206_v42 = vmul.f32 %v625_v15, %v625_v15 }
 0x13d   : >> { %v659_v22 = vld [vmem:[%s2157_s27 + $0x128] sm:$0xff]  ;;  %v660_v23 = vld [vmem:[%s2157_s27 + $0x130] sm:$0xff]  ;;  %v661_v24 = vld [vmem:[%s2157_s27 + $0x138] sm:$0xff]  ;;  %4308 = vst [vmem:[#allocation10_spill] sm:$0xff] %v2189_v33  ;;  %v2194_v35 = vadd.s32 24, %v2159_v11  ;;  %v2209_v43 = vadd.s32 32, %v2159_v11  ;;  %v2218_v49 = vmul.f32 %v626_v16, %v626_v16  ;;  %v2233_v57 = vmul.f32 %v655_v18, %v655_v18 }
 0x13e   : >> { %v662_v25 = vld [vmem:[%s2157_s27 + $0x140] sm:$0xff]  ;;  %4305 = vst [vmem:[#allocation7_spill] sm:$0xff] %v2177_v26  ;;  %4306 = vst [vmem:[#allocation8_spill] sm:$0xff] %v2180_v27  ;;  %v663_v29 = vld [vmem:[%s2157_s27 + $0x148] sm:$0xff]  ;;  %v2212_v44 = vadd.s32 40, %v2159_v11  ;;  %v2221_v50 = vadd.s32 48, %v2159_v11  ;;  %v2235_v58 = vmul.f32 %v656_v19, %v656_v19  ;;  %v2237_v59 = vmul.f32 %v657_v20, %v657_v20 }
 0x13f   : >> { %v664_v30 = vld [vmem:[%s2157_s27 + $0x150] sm:$0xff]  ;;  %v665_v31 = vld [vmem:[%s2157_s27 + $0x158] sm:$0xff]  ;;  %v666_v32 = vld [vmem:[%s2157_s27 + $0x160] sm:$0xff]  ;;  %4309 = vst [vmem:[#allocation11_spill] sm:$0xff] %v2191_v34  ;;  %v2224_v51 = vadd.s32 56, %v2159_v11  ;;  %v2227_v52 = vadd.s32 64, %v2159_v11  ;;  %v2239_v60 = vmul.f32 %v658_v21, %v658_v21  ;;  %v2245_v2 = vmul.f32 %v659_v22, %v659_v22 }
 0x140   : >> { %4310 = vst [vmem:[#allocation12_spill] sm:$0xff] %v2194_v35  ;;  %4311 = vst [vmem:[#allocation13_spill] sm:$0xff] %v2198_v36  ;;  %v667_v37 = vld [vmem:[%s2157_s27 + $0x168] sm:$0xff]  ;;  %v668_v38 = vld [vmem:[%s2157_s27 + $0x170] sm:$0xff]  ;;  %v2247_v3 = vmul.f32 %v660_v23, %v660_v23  ;;  %v2249_v4 = vmul.f32 %v661_v24, %v661_v24  ;;  %v2251_v5 = vmul.f32 %v662_v25, %v662_v25  ;;  %v2588_v34 = vadd.s32 680, %v2159_v11 }
 0x141   : >> { %v669_v39 = vld [vmem:[%s2157_s27 + $0x178] sm:$0xff]  ;;  %v670_v40 = vld [vmem:[%s2157_s27 + $0x180] sm:$0xff]  ;;  %4312 = vst [vmem:[#allocation14_spill] sm:$0xff] %v2204_v41  ;;  %4313 = vst [vmem:[#allocation15_spill] sm:$0xff] %v2206_v42  ;;  %v2257_v10 = vmul.f32 %v663_v29, %v663_v29  ;;  %v2259_v12 = vmul.f32 %v664_v30, %v664_v30  ;;  %v2261_v13 = vmul.f32 %v665_v31, %v665_v31  ;;  %v2585_v41 = vadd.s32 672, %v2159_v11 }
 0x142   : >> { %4314 = vst [vmem:[#allocation16_spill] sm:$0xff] %v2209_v43  ;;  %4315 = vst [vmem:[#allocation17_spill] sm:$0xff] %v2212_v44  ;;  %v671_v45 = vld [vmem:[%s2157_s27 + $0x188] sm:$0xff]  ;;  %v672_v46 = vld [vmem:[%s2157_s27 + $0x190] sm:$0xff]  ;;  %v2263_v14 = vmul.f32 %v666_v32, %v666_v32  ;;  %v2268_v19 = vmul.f32 %v667_v37, %v667_v37  ;;  %v2270_v20 = vmul.f32 %v668_v38, %v668_v38  ;;  %v2591_v33 = vadd.s32 688, %v2159_v11 }
 0x143   : >> { %v673_v47 = vld [vmem:[%s2157_s27 + $0x198] sm:$0xff]  ;;  %v674_v48 = vld [vmem:[%s2157_s27 + $0x1a0] sm:$0xff]  ;;  %4316 = vst [vmem:[#allocation18_spill] sm:$0xff] %v2218_v49  ;;  %4317 = vst [vmem:[#allocation19_spill] sm:$0xff] %v2221_v50  ;;  %v2272_v21 = vmul.f32 %v669_v39, %v669_v39  ;;  %v2274_v22 = vmul.f32 %v670_v40, %v670_v40  ;;  %v2279_v29 = vmul.f32 %v671_v45, %v671_v45  ;;  %v2594_v50 = vadd.s32 696, %v2159_v11 }
 0x144   : >> { %4318 = vst [vmem:[#allocation20_spill] sm:$0xff] %v2224_v51  ;;  %4319 = vst [vmem:[#allocation21_spill] sm:$0xff] %v2227_v52  ;;  %v675_v53 = vld [vmem:[%s2157_s27 + $0x1a8] sm:$0xff]  ;;  %v676_v54 = vld [vmem:[%s2157_s27 + $0x1b0] sm:$0xff]  ;;  %v2281_v30 = vmul.f32 %v672_v46, %v672_v46  ;;  %v2283_v31 = vmul.f32 %v673_v47, %v673_v47  ;;  %v2285_v32 = vmul.f32 %v674_v48, %v674_v48  ;;  %v2597_v44 = vadd.s32 704, %v2159_v11 }
 0x145   : >> { %v677_v55 = vld [vmem:[%s2157_s27 + $0x1b8] sm:$0xff]  ;;  %v678_v56 = vld [vmem:[%s2157_s27 + $0x1c0] sm:$0xff]  ;;  %4320 = vst [vmem:[#allocation22_spill] sm:$0xff] %v2233_v57  ;;  %4321 = vst [vmem:[#allocation23_spill] sm:$0xff] %v2235_v58  ;;  %v2290_v40 = vmul.f32 %v675_v53, %v675_v53  ;;  %v2292_v1 = vmul.f32 %v676_v54, %v676_v54  ;;  %v2579_v58 = vadd.s32 656, %v2159_v11  ;;  %v2582_v57 = vadd.s32 664, %v2159_v11 }
 0x146   : >> { %4322 = vst [vmem:[#allocation24_spill] sm:$0xff] %v2237_v59  ;;  %4323 = vst [vmem:[#allocation25_spill] sm:$0xff] %v2239_v60  ;;  %v679_v61 = vld [vmem:[%s2157_s27 + $0x1c8] sm:$0xff]  ;;  %v680_v62 = vld [vmem:[%s2157_s27 + $0x1d0] sm:$0xff]  ;;  %v2294_v52 = vmul.f32 %v677_v55, %v677_v55  ;;  %v2296_v45 = vmul.f32 %v678_v56, %v678_v56  ;;  %v2573_v60 = vadd.s32 640, %v2159_v11  ;;  %v2576_v59 = vadd.s32 648, %v2159_v11 }
 0x147   : >> { %v681_v63 = vld [vmem:[%s2157_s27 + $0x1d8] sm:$0xff]  ;;  %v682_v0 = vld [vmem:[%s2157_s27 + $0x1e0] sm:$0xff]  ;;  %4324 = vst [vmem:[#allocation26_spill] sm:$0xff] %v2245_v2  ;;  %4325 = vst [vmem:[#allocation27_spill] sm:$0xff] %v2247_v3  ;;  %v2301_v49 = vmul.f32 %v679_v61, %v679_v61  ;;  %v2303_v51 = vmul.f32 %v680_v62, %v680_v62  ;;  %v2567_v3 = vadd.s32 624, %v2159_v11  ;;  %v2570_v2 = vadd.s32 632, %v2159_v11 }
 0x148   : >> { %4326 = vst [vmem:[#allocation28_spill] sm:$0xff] %v2249_v4  ;;  %4327 = vst [vmem:[#allocation29_spill] sm:$0xff] %v2251_v5  ;;  %v683_v6 = vld [vmem:[%s2157_s27 + $0x1e8] sm:$0xff]  ;;  %v684_v7 = vld [vmem:[%s2157_s27 + $0x1f0] sm:$0xff]  ;;  %v2305_v42 = vmul.f32 %v681_v63, %v681_v63  ;;  %v2307_v53 = vmul.f32 %v682_v0, %v682_v0  ;;  %v2561_v5 = vadd.s32 608, %v2159_v11  ;;  %v2564_v4 = vadd.s32 616, %v2159_v11 }
 0x149   : >> { %v685_v8 = vld [vmem:[%s2157_s27 + $0x1f8] sm:$0xff]  ;;  %v686_v9 = vld [vmem:[%s2157_s27 + $0x200] sm:$0xff]  ;;  %4328 = vst [vmem:[#allocation30_spill] sm:$0xff] %v2257_v10  ;;  %4329 = vst [vmem:[#allocation31_spill] sm:$0xff] %v2259_v12  ;;  %v2555_v12 = vadd.s32 592, %v2159_v11  ;;  %v2558_v10 = vadd.s32 600, %v2159_v11 }
 0x14a   : >> { %4330 = vst [vmem:[#allocation32_spill] sm:$0xff] %v2261_v13  ;;  %4331 = vst [vmem:[#allocation33_spill] sm:$0xff] %v2263_v14  ;;  %v687_v15 = vld [vmem:[%s2157_s27 + $0x208] sm:$0xff]  ;;  %v688_v16 = vld [vmem:[%s2157_s27 + $0x210] sm:$0xff]  ;;  %v2318_v61 = vmul.f32 %v686_v9, %v686_v9  ;;  %v2549_v14 = vadd.s32 576, %v2159_v11  ;;  %v2552_v13 = vadd.s32 584, %v2159_v11 }
 0x14b   : >> { %v689_v18 = vld [vmem:[%s2157_s27 + $0x218] sm:$0xff]  ;;  %4332 = vst [vmem:[#allocation34_spill] sm:$0xff] %v2268_v19  ;;  %4333 = vst [vmem:[#allocation35_spill] sm:$0xff] %v2270_v20  ;;  %v690_v23 = vld [vmem:[%s2157_s27 + $0x220] sm:$0xff]  ;;  %v2543_v20 = vadd.s32 560, %v2159_v11  ;;  %v2546_v19 = vadd.s32 568, %v2159_v11 }
 0x14c   : >> { %4334 = vst [vmem:[#allocation36_spill] sm:$0xff] %v2272_v21  ;;  %4335 = vst [vmem:[#allocation37_spill] sm:$0xff] %v2274_v22  ;;  %v691_v24 = vld [vmem:[%s2157_s27 + $0x228] sm:$0xff]  ;;  %v692_v25 = vld [vmem:[%s2157_s27 + $0x230] sm:$0xff]  ;;  %v2537_v22 = vadd.s32 544, %v2159_v11  ;;  %v2540_v21 = vadd.s32 552, %v2159_v11 }
 0x14d   : >> { %4336 = vst [vmem:[#allocation38_spill] sm:$0xff] %v2279_v29  ;;  %4337 = vst [vmem:[#allocation39_spill] sm:$0xff] %v2281_v30  ;;  %v693_v37 = vld [vmem:[%s2157_s27 + $0x238] sm:$0xff]  ;;  %v694_v38 = vld [vmem:[%s2157_s27 + $0x240] sm:$0xff]  ;;  %v2531_v30 = vadd.s32 528, %v2159_v11  ;;  %v2534_v29 = vadd.s32 536, %v2159_v11 }
 0x14e   : >> { %4338 = vst [vmem:[#allocation40_spill] sm:$0xff] %v2283_v31  ;;  %4339 = vst [vmem:[#allocation41_spill] sm:$0xff] %v2285_v32  ;;  %v695_v39 = vld [vmem:[%s2157_s27 + $0x248] sm:$0xff]  ;;  %v696_v46 = vld [vmem:[%s2157_s27 + $0x250] sm:$0xff]  ;;  %v2525_v32 = vadd.s32 512, %v2159_v11  ;;  %v2528_v31 = vadd.s32 520, %v2159_v11 }
 0x14f   : >> { %4340 = vst [vmem:[#allocation42_spill] sm:$0xff] %v2290_v40  ;;  %4341 = vst [vmem:[#allocation43_spill] sm:$0xff] %v2292_v1  ;;  %v697_v47 = vld [vmem:[%s2157_s27 + $0x258] sm:$0xff]  ;;  %v698_v48 = vld [vmem:[%s2157_s27 + $0x260] sm:$0xff]  ;;  %v2316_v1 = vmul.f32 %v685_v8, %v685_v8  ;;  %v2522_v40 = vadd.s32 504, %v2159_v11  ;;  %v2600_v43 = vadd.s32 712, %v2159_v11 }
 0x150   : >> { %4342 = vst [vmem:[#allocation44_spill] sm:$0xff] %v2294_v52  ;;  %4343 = vst [vmem:[#allocation45_spill] sm:$0xff] %v2296_v45  ;;  %v699_v54 = vld [vmem:[%s2157_s27 + $0x268] sm:$0xff]  ;;  %v700_v55 = vld [vmem:[%s2157_s27 + $0x270] sm:$0xff]  ;;  %v2312_v45 = vmul.f32 %v683_v6, %v683_v6  ;;  %v2314_v52 = vmul.f32 %v684_v7, %v684_v7  ;;  %v2329_v6 = vmul.f32 %v690_v23, %v690_v23  ;;  %v2603_v35 = vadd.s32 720, %v2159_v11 }
 0x151   : >> { %4344 = vst [vmem:[#allocation46_spill] sm:$0xff] %v2301_v49  ;;  %4345 = vst [vmem:[#allocation47_spill] sm:$0xff] %v2303_v51  ;;  %v701_v56 = vld [vmem:[%s2157_s27 + $0x278] sm:$0xff]  ;;  %v702_v62 = vld [vmem:[%s2157_s27 + $0x280] sm:$0xff]  ;;  %v2327_v51 = vmul.f32 %v689_v18, %v689_v18  ;;  %v2519_v49 = vadd.s32 496, %v2159_v11  ;;  %v2606_v36 = vadd.s32 728, %v2159_v11 }
 0x152   : >> { %4346 = vst [vmem:[#allocation48_spill] sm:$0xff] %v2305_v42  ;;  %4347 = vst [vmem:[#allocation49_spill] sm:$0xff] %v2307_v53  ;;  %v703_v63 = vld [vmem:[%s2157_s27 + $0x288] sm:$0xff]  ;;  %v704_v0 = vld [vmem:[%s2157_s27 + $0x290] sm:$0xff]  ;;  %v2323_v53 = vmul.f32 %v687_v15, %v687_v15  ;;  %v2325_v42 = vmul.f32 %v688_v16, %v688_v16  ;;  %v2340_v15 = vmul.f32 %v694_v38, %v694_v38  ;;  %v2609_v27 = vadd.s32 736, %v2159_v11 }
 0x153   : >> { %4348 = vst [vmem:[#allocation50_spill] sm:$0xff] %v2312_v45  ;;  %4349 = vst [vmem:[#allocation51_spill] sm:$0xff] %v2314_v52  ;;  %v705_v7 = vld [vmem:[%s2157_s27 + $0x298] sm:$0xff]  ;;  %v706_v8 = vld [vmem:[%s2157_s27 + $0x2a0] sm:$0xff]  ;;  %v2338_v52 = vmul.f32 %v693_v37, %v693_v37  ;;  %v2516_v45 = vadd.s32 488, %v2159_v11  ;;  %v2612_v26 = vadd.s32 744, %v2159_v11 }
 0x154   : >> { %4350 = vst [vmem:[#allocation52_spill] sm:$0xff] %v2316_v1  ;;  %4351 = vst [vmem:[#allocation53_spill] sm:$0xff] %v2318_v61  ;;  %v707_v9 = vld [vmem:[%s2157_s27 + $0x2a8] sm:$0xff]  ;;  %v2334_v61 = vmul.f32 %v691_v24, %v691_v24  ;;  %v2336_v1 = vmul.f32 %v692_v25, %v692_v25  ;;  %v708_v16 = vld [vmem:[%s2157_s27 + $0x2b0] sm:$0xff]  ;;  %v2351_v24 = vmul.f32 %v698_v48, %v698_v48  ;;  %v2615_v28 = vadd.s32 752, %v2159_v11 }
 0x155   : >> { %4352 = vst [vmem:[#allocation54_spill] sm:$0xff] %v2323_v53  ;;  %4353 = vst [vmem:[#allocation55_spill] sm:$0xff] %v2325_v42  ;;  %v709_v18 = vld [vmem:[%s2157_s27 + $0x2b8] sm:$0xff]  ;;  %v710_v23 = vld [vmem:[%s2157_s27 + $0x2c0] sm:$0xff]  ;;  %v2349_v42 = vmul.f32 %v697_v47, %v697_v47  ;;  %v2513_v53 = vadd.s32 480, %v2159_v11 }
 0x156   : >> { %4354 = vst [vmem:[#allocation56_spill] sm:$0xff] %v2327_v51  ;;  %4355 = vst [vmem:[#allocation57_spill] sm:$0xff] %v2329_v6  ;;  %v2345_v6 = vmul.f32 %v695_v39, %v695_v39  ;;  %v2347_v51 = vmul.f32 %v696_v46, %v696_v46  ;;  %v711_v25 = vld [vmem:[%s2157_s27 + $0x2c8] sm:$0xff]  ;;  %v712_v37 = vld [vmem:[%s2157_s27 + $0x2d0] sm:$0xff]  ;;  %v2362_v39 = vmul.f32 %v702_v62, %v702_v62 }
 0x157   : >> { %4356 = vst [vmem:[#allocation58_spill] sm:$0xff] %v2334_v61  ;;  %4357 = vst [vmem:[#allocation59_spill] sm:$0xff] %v2336_v1  ;;  %v713_v38 = vld [vmem:[%s2157_s27 + $0x2d8] sm:$0xff]  ;;  %v2360_v1 = vmul.f32 %v701_v56, %v701_v56  ;;  %v714_v46 = vld [vmem:[%s2157_s27 + $0x2e0] sm:$0xff]  ;;  %v2510_v61 = vadd.s32 472, %v2159_v11 }
 0x158   : >> { %4358 = vst [vmem:[#allocation60_spill] sm:$0xff] %v2338_v52  ;;  %4359 = vst [vmem:[#allocation61_spill] sm:$0xff] %v2340_v15  ;;  %v2356_v15 = vmul.f32 %v699_v54, %v699_v54  ;;  %v2358_v52 = vmul.f32 %v700_v55, %v700_v55  ;;  %v715_v47 = vld [vmem:[%s2157_s27 + $0x2e8] sm:$0xff]  ;;  %v716_v48 = vld [vmem:[%s2157_s27 + $0x2f0] sm:$0xff]  ;;  %v2373_v54 = vmul.f32 %v706_v8, %v706_v8 }
 0x159   : >> { %4360 = vst [vmem:[#allocation62_spill] sm:$0xff] %v2345_v6  ;;  %4361 = vst [vmem:[#allocation63_spill] sm:$0xff] %v2347_v51  ;;  %v2371_v51 = vmul.f32 %v705_v7, %v705_v7  ;;  %v717_v55 = vld [vmem:[%s2157_s27 + $0x2f8] sm:$0xff]  ;;  %v718_v56 = vld [vmem:[%s2157_s27 + $0x300] sm:$0xff]  ;;  %v2507_v6 = vadd.s32 464, %v2159_v11 }
 0x15a   : >> { %4362 = vst [vmem:[#allocation64_spill] sm:$0xff] %v2349_v42  ;;  %4363 = vst [vmem:[#allocation65_spill] sm:$0xff] %v2351_v24  ;;  %v2367_v24 = vmul.f32 %v703_v63, %v703_v63  ;;  %v2369_v42 = vmul.f32 %v704_v0, %v704_v0  ;;  %v719_v62 = vld [vmem:[%s2157_s27 + $0x308] sm:$0xff]  ;;  %v2384_v63 = vmul.f32 %v710_v23, %v710_v23  ;;  %v720_v0 = vld [vmem:[%s2157_s27 + $0x310] sm:$0xff] }
 0x15b   : >> { %4364 = vst [vmem:[#allocation66_spill] sm:$0xff] %v2356_v15  ;;  %4365 = vst [vmem:[#allocation67_spill] sm:$0xff] %v2358_v52  ;;  %v2382_v52 = vmul.f32 %v709_v18, %v709_v18  ;;  %v721_v7 = vld [vmem:[%s2157_s27 + $0x318] sm:$0xff]  ;;  %v722_v8 = vld [vmem:[%s2157_s27 + $0x320] sm:$0xff]  ;;  %v2403_v23 = vmul.f32 %v715_v47, %v715_v47  ;;  %v2504_v15 = vadd.s32 456, %v2159_v11 }
 0x15c   : >> { %4366 = vst [vmem:[#allocation68_spill] sm:$0xff] %v2360_v1  ;;  %4367 = vst [vmem:[#allocation69_spill] sm:$0xff] %v2362_v39  ;;  %v2378_v39 = vmul.f32 %v707_v9, %v707_v9  ;;  %v2380_v1 = vmul.f32 %v708_v16, %v708_v16  ;;  %v2396_v9 = vadd.s32 264, %v2159_v11  ;;  %v723_v16 = vld [vmem:[%s2157_s27 + $0x328] sm:$0xff]  ;;  %v724_v18 = vld [vmem:[%s2157_s27 + $0x330] sm:$0xff]  ;;  %v2424_v47 = vmul.f32 %v721_v7, %v721_v7 }
 0x15d   : >> { %4368 = vst [vmem:[#allocation70_spill] sm:$0xff] %v2367_v24  ;;  %4369 = vst [vmem:[#allocation71_spill] sm:$0xff] %v2369_v42  ;;  %v2393_v42 = vmul.f32 %v713_v38, %v713_v38  ;;  %v2413_v38 = vmul.f32 %v717_v55, %v717_v55  ;;  %v2420_v24 = vadd.s32 280, %v2159_v11  ;;  %v2433_v55 = vmul.f32 %v724_v18, %v724_v18 }
 0x15e   : >> { %4370 = vst [vmem:[#allocation72_spill] sm:$0xff] %v2371_v51  ;;  %4371 = vst [vmem:[#allocation73_spill] sm:$0xff] %v2373_v54  ;;  %v2389_v54 = vmul.f32 %v711_v25, %v711_v25  ;;  %v2391_v51 = vmul.f32 %v712_v37, %v712_v37  ;;  %v726_v25 = vld [vmem:[%s2157_s27 + $0x340] sm:$0xff]  ;;  %v727_v37 = vld [vmem:[%s2157_s27 + $0x348] sm:$0xff]  ;;  %v2459_v18 = vadd.s32 336, %v2159_v11 }
 0x15f   : >> { %4372 = vst [vmem:[#allocation74_spill] sm:$0xff] %v2378_v39  ;;  %4373 = vst [vmem:[#allocation75_spill] sm:$0xff] %v2380_v1  ;;  %v2401_v1 = vmul.f32 %v714_v46, %v714_v46  ;;  %v2408_v39 = vadd.s32 272, %v2159_v11  ;;  %v2422_v46 = vmul.f32 %v720_v0, %v720_v0  ;;  %v2442_v0 = vmul.f32 %v727_v37, %v727_v37 }
 0x160   : >> { %4374 = vst [vmem:[#allocation76_spill] sm:$0xff] %v2382_v52  ;;  %4375 = vst [vmem:[#allocation77_spill] sm:$0xff] %v2384_v63  ;;  %v725_v52 = vld [vmem:[%s2157_s27 + $0x338] sm:$0xff]  ;;  %v2405_v63 = vmul.f32 %v716_v48, %v716_v48  ;;  %v2426_v48 = vmul.f32 %v722_v8, %v722_v8  ;;  %v2447_v8 = vadd.s32 304, %v2159_v11  ;;  %v2468_v37 = vadd.s32 360, %v2159_v11 }
 0x161   : >> { %4376 = vst [vmem:[#allocation78_spill] sm:$0xff] %v2389_v54  ;;  %4377 = vst [vmem:[#allocation79_spill] sm:$0xff] %v2391_v51  ;;  %v728_v51 = vld [vmem:[%s2157_s27 + $0x350] sm:$0xff]  ;;  %v2417_v54 = vmul.f32 %v719_v62, %v719_v62  ;;  %v2438_v62 = vadd.s32 296, %v2159_v11 }
 0x162   : >> { %4378 = vst [vmem:[#allocation80_spill] sm:$0xff] %v2393_v42  ;;  %4379 = vst [vmem:[#allocation81_spill] sm:$0xff] %v2401_v1  ;;  %v2415_v42 = vmul.f32 %v718_v56, %v718_v56  ;;  %v2435_v56 = vmul.f32 %v725_v52, %v725_v52  ;;  %v2444_v7 = vmul.f32 %v728_v51, %v728_v51  ;;  %v2456_v52 = vadd.s32 328, %v2159_v11 }
 0x163   : >> { %4380 = vst [vmem:[#allocation82_spill] sm:$0xff] %v2403_v23  ;;  %4381 = vst [vmem:[#allocation83_spill] sm:$0xff] %v2405_v63  ;;  %v2429_v63 = vadd.s32 288, %v2159_v11  ;;  %v2431_v23 = vmul.f32 %v723_v16, %v723_v16  ;;  %v2453_v16 = vadd.s32 320, %v2159_v11  ;;  %v2465_v51 = vadd.s32 352, %v2159_v11 }
 0x164   : >> { %4382 = vst [vmem:[#allocation84_spill] sm:$0xff] %v2413_v38  ;;  %4383 = vst [vmem:[#allocation85_spill] sm:$0xff] %v2415_v42  ;;  %v2495_v42 = vadd.s32 432, %v2159_v11  ;;  %v2498_v38 = vadd.s32 440, %v2159_v11  ;;  %v2501_v1 = vadd.s32 448, %v2159_v11 }
 0x165   : >> { %4384 = vst [vmem:[#allocation86_spill] sm:$0xff] %v2417_v54  ;;  %4385 = vst [vmem:[#allocation87_spill] sm:$0xff] %v2422_v46  ;;  %v2440_v54 = vmul.f32 %v726_v25, %v726_v25  ;;  %v2462_v25 = vadd.s32 344, %v2159_v11  ;;  %v2492_v46 = vadd.s32 424, %v2159_v11 }
 0x166   : >> { %4386 = vst [vmem:[#allocation88_spill] sm:$0xff] %v2424_v47  ;;  %4387 = vst [vmem:[#allocation89_spill] sm:$0xff] %v2426_v48  ;;  %v2450_v48 = vadd.s32 312, %v2159_v11  ;;  %v2489_v47 = vadd.s32 416, %v2159_v11 }
 0x167   : >> { %4388 = vst [vmem:[#allocation90_spill] sm:$0xff] %v2431_v23  ;;  %4389 = vst [vmem:[#allocation91_spill] sm:$0xff] %v2433_v55  ;;  %v2483_v55 = vadd.s32 400, %v2159_v11  ;;  %v2486_v23 = vadd.s32 408, %v2159_v11 }
 0x168   : >> { %4390 = vst [vmem:[#allocation92_spill] sm:$0xff] %v2435_v56  ;;  %4391 = vst [vmem:[#allocation93_spill] sm:$0xff] %v2440_v54  ;;  %v2477_v54 = vadd.s32 384, %v2159_v11  ;;  %v2480_v56 = vadd.s32 392, %v2159_v11 }
 0x169   : >> { %4392 = vst [vmem:[#allocation94_spill] sm:$0xff] %v2442_v0  ;;  %4393 = vst [vmem:[#allocation95_spill] sm:$0xff] %v2444_v7  ;;  %v2471_v7 = vadd.s32 368, %v2159_v11  ;;  %v2474_v0 = vadd.s32 376, %v2159_v11 }
 0x16a   : >> { %4394 = vst [vmem:[#allocation96_spill] sm:$0xff] %v2597_v44  ;;  %4395 = vst [vmem:[#allocation97_spill] sm:$0xff] %v2600_v43  ;;  %v2618_v44 = vadd.s32 760, %v2159_v11  ;;  %v2621_v43 = vadd.s32 768, %v2159_v11 }
 0x16b   : >> { %4396 = vst [vmem:[#allocation98_spill] sm:$0xff] %v2603_v35  ;;  %4397 = vst [vmem:[#allocation99_spill] sm:$0xff] %v2606_v36  ;;  %v2624_v35 = vadd.s32 776, %v2159_v11  ;;  %v2627_v36 = vadd.s32 784, %v2159_v11 }
 0x16c   : >> { %4398 = vst [vmem:[#allocation100_spill] sm:$0xff] %v2609_v27  ;;  %4399 = vst [vmem:[#allocation101_spill] sm:$0xff] %v2612_v26  ;;  %v2630_v27 = vadd.s32 792, %v2159_v11  ;;  %v2633_v26 = vadd.s32 800, %v2159_v11 }
 0x16d   : >> { %4400 = vst [vmem:[#allocation102_spill] sm:$0xff] %v2615_v28  ;;  %4401 = vst [vmem:[#allocation103_spill] sm:$0xff] %v2618_v44  ;;  %v2636_v28 = vadd.s32 808, %v2159_v11  ;;  %v2639_v44 = vadd.s32 816, %v2159_v11 }
 0x16e   : >> { %4402 = vst [vmem:[#allocation104_spill] sm:$0xff] %v2621_v43  ;;  %4403 = vst [vmem:[#allocation105_spill] sm:$0xff] %v2624_v35  ;;  %v2642_v43 = vadd.s32 824, %v2159_v11  ;;  %v2645_v35 = vadd.s32 832, %v2159_v11 }
 0x16f   : >> { %4404 = vst [vmem:[#allocation106_spill] sm:$0xff] %v2627_v36  ;;  %4405 = vst [vmem:[#allocation107_spill] sm:$0xff] %v2630_v27  ;;  %v2648_v36 = vadd.s32 840, %v2159_v11  ;;  %v2651_v27 = vadd.s32 848, %v2159_v11 }
 0x170   : >> { %4406 = vst [vmem:[#allocation108_spill] sm:$0xff] %v2633_v26  ;;  %4407 = vst [vmem:[#allocation109_spill] sm:$0xff] %v2636_v28  ;;  %v2654_v26 = vadd.s32 856, %v2159_v11  ;;  %v2657_v28 = vadd.s32 864, %v2159_v11 }
 0x171   : >> { %4408 = vst [vmem:[#allocation110_spill] sm:$0xff] %v2639_v44  ;;  %4409 = vst [vmem:[#allocation111_spill] sm:$0xff] %v2642_v43  ;;  %v2660_v44 = vadd.s32 872, %v2159_v11  ;;  %v2663_v43 = vadd.s32 880, %v2159_v11 }
 0x172   : >> { %4410 = vst [vmem:[#allocation112_spill] sm:$0xff] %v2645_v35  ;;  %4411 = vst [vmem:[#allocation113_spill] sm:$0xff] %v2648_v36  ;;  %v2666_v35 = vadd.s32 888, %v2159_v11  ;;  %v2669_v36 = vadd.s32 896, %v2159_v11 }
 0x173   : >> { %4412 = vst [vmem:[#allocation114_spill] sm:$0xff] %v2651_v27  ;;  %4413 = vst [vmem:[#allocation115_spill] sm:$0xff] %v2654_v26  ;;  %v2672_v27 = vadd.s32 904, %v2159_v11  ;;  %v2675_v26 = vadd.s32 912, %v2159_v11 }
 0x174   : >> { %4414 = vst [vmem:[#allocation116_spill] sm:$0xff] %v2657_v28  ;;  %4415 = vst [vmem:[#allocation117_spill] sm:$0xff] %v2660_v44  ;;  %v2678_v28 = vadd.s32 920, %v2159_v11  ;;  %v2681_v44 = vadd.s32 928, %v2159_v11 }
 0x175   : >> { %4416 = vst [vmem:[#allocation118_spill] sm:$0xff] %v2663_v43  ;;  %4417 = vst [vmem:[#allocation119_spill] sm:$0xff] %v2666_v35  ;;  %v2684_v43 = vadd.s32 936, %v2159_v11  ;;  %v2687_v35 = vadd.s32 944, %v2159_v11 }
 0x176   : >> { %4418 = vst [vmem:[#allocation120_spill] sm:$0xff] %v2669_v36  ;;  %4419 = vst [vmem:[#allocation121_spill] sm:$0xff] %v2672_v27  ;;  %v2690_v36 = vadd.s32 952, %v2159_v11  ;;  %v2693_v27 = vadd.s32 960, %v2159_v11 }
 0x177   : >> { %4420 = vst [vmem:[#allocation122_spill] sm:$0xff] %v2675_v26  ;;  %4421 = vst [vmem:[#allocation123_spill] sm:$0xff] %v2678_v28  ;;  %v2696_v26 = vadd.s32 968, %v2159_v11  ;;  %v2699_v28 = vadd.s32 976, %v2159_v11 }
 0x178   : >> { %4422 = vst [vmem:[#allocation124_spill] sm:$0xff] %v2681_v44  ;;  %4423 = vst [vmem:[#allocation125_spill] sm:$0xff] %v2684_v43  ;;  %v2702_v44 = vadd.s32 984, %v2159_v11  ;;  %v2705_v43 = vadd.s32 992, %v2159_v11 }
 0x179   : >> { %4424 = vst [vmem:[#allocation126_spill] sm:$0xff] %v2687_v35  ;;  %4425 = vst [vmem:[#allocation127_spill] sm:$0xff] %v2690_v36  ;;  %v2708_v35 = vadd.s32 1000, %v2159_v11  ;;  %v2711_v36 = vadd.s32 1008, %v2159_v11 }
 0x17a   : >> { %4426 = vst [vmem:[#allocation128_spill] sm:$0xff] %v2693_v27  ;;  %4427 = vst [vmem:[#allocation129_spill] sm:$0xff] %v2696_v26  ;;  %v2714_v27 = vadd.s32 1016, %v2159_v11  ;;  %v2718_v26 = vadd.s32 %v2166_v17, %v2396_v9  ;;  %v2734_v11 = vadd.s32 %v2166_v17, %v2438_v62  ;;  %v2738_v9 = vadd.s32 %v2166_v17, %v2447_v8 }
 0x17b   : >> { %4428 = vst [vmem:[#allocation130_spill] sm:$0xff] %v2699_v28  ;;  %4429 = vst [vmem:[#allocation131_spill] sm:$0xff] %v2705_v43  ;;  %v2722_v28 = vadd.s32 %v2166_v17, %v2408_v39  ;;  %v2726_v43 = vadd.s32 %v2166_v17, %v2420_v24  ;;  %v2742_v39 = vadd.s32 %v2166_v17, %v2450_v48 }
 0x17c   : >> { %4430 = vst [vmem:[#allocation132_spill] sm:$0xff] %v2708_v35  ;;  %v2730_v35 = vadd.s32 %v2166_v17, %v2429_v63  ;;  %v2746_v24 = vadd.s32 %v2166_v17, %v2453_v16  ;;  %v2750_v63 = vadd.s32 %v2166_v17, %v2456_v52  ;;  %v2754_v62 = vadd.s32 %v2166_v17, %v2459_v18 }
 0x17d   : >> { %v2758_v8 = vadd.s32 %v2166_v17, %v2462_v25  ;;  %v2762_v48 = vadd.s32 %v2166_v17, %v2465_v51  ;;  %v2766_v16 = vadd.s32 %v2166_v17, %v2468_v37  ;;  %v2770_v52 = vadd.s32 %v2166_v17, %v2471_v7 }
 0x17e   : >> { %v2774_v18 = vadd.s32 %v2166_v17, %v2474_v0  ;;  %v2778_v25 = vadd.s32 %v2166_v17, %v2477_v54  ;;  %v2782_v51 = vadd.s32 %v2166_v17, %v2480_v56  ;;  %v2786_v37 = vadd.s32 %v2166_v17, %v2483_v55 }
 0x17f   : >> { %v2790_v7 = vadd.s32 %v2166_v17, %v2486_v23  ;;  %v2794_v0 = vadd.s32 %v2166_v17, %v2489_v47  ;;  %v2798_v54 = vadd.s32 %v2166_v17, %v2492_v46  ;;  %v2802_v56 = vadd.s32 %v2166_v17, %v2495_v42 }
 0x180   : >> { %v2806_v55 = vadd.s32 %v2166_v17, %v2498_v38  ;;  %v2810_v23 = vadd.s32 %v2166_v17, %v2501_v1  ;;  %v2814_v47 = vadd.s32 %v2166_v17, %v2504_v15  ;;  %v2818_v46 = vadd.s32 %v2166_v17, %v2507_v6 }
 0x181   : >> { %v2822_v42 = vadd.s32 %v2166_v17, %v2510_v61  ;;  %v2826_v38 = vadd.s32 %v2166_v17, %v2513_v53  ;;  %v2830_v1 = vadd.s32 %v2166_v17, %v2516_v45  ;;  %v2834_v15 = vadd.s32 %v2166_v17, %v2519_v49 }
 0x182   : >> { %v2838_v6 = vadd.s32 %v2166_v17, %v2522_v40  ;;  %v2842_v61 = vadd.s32 %v2166_v17, %v2525_v32  ;;  %v2846_v53 = vadd.s32 %v2166_v17, %v2528_v31  ;;  %v2850_v45 = vadd.s32 %v2166_v17, %v2531_v30 }
 0x183   : >> { %v2854_v49 = vadd.s32 %v2166_v17, %v2534_v29  ;;  %v2858_v40 = vadd.s32 %v2166_v17, %v2537_v22  ;;  %v2862_v32 = vadd.s32 %v2166_v17, %v2540_v21  ;;  %v2866_v31 = vadd.s32 %v2166_v17, %v2543_v20 }
 0x184   : >> { %v2870_v30 = vadd.s32 %v2166_v17, %v2546_v19  ;;  %v2874_v29 = vadd.s32 %v2166_v17, %v2549_v14  ;;  %v2878_v22 = vadd.s32 %v2166_v17, %v2552_v13  ;;  %v2882_v21 = vadd.s32 %v2166_v17, %v2555_v12 }
 0x185   : >> { %4431 = vst [vmem:[#allocation133_spill] sm:$0xff] %v2854_v49  ;;  %4432 = vst [vmem:[#allocation134_spill] sm:$0xff] %v2858_v40  ;;  %v2886_v20 = vadd.s32 %v2166_v17, %v2558_v10  ;;  %v2890_v19 = vadd.s32 %v2166_v17, %v2561_v5  ;;  %v2894_v14 = vadd.s32 %v2166_v17, %v2564_v4  ;;  %v749_v49 = vld [vmem:[%s2157_s27 + $0x3f8] sm:$0xff] }
 0x186   : >> { %4433 = vst [vmem:[#allocation135_spill] sm:$0xff] %v2862_v32  ;;  %4434 = vst [vmem:[#allocation136_spill] sm:$0xff] %v2866_v31  ;;  %v2898_v13 = vadd.s32 %v2166_v17, %v2567_v3  ;;  %v2902_v12 = vadd.s32 %v2166_v17, %v2570_v2  ;;  %v2906_v10 = vadd.s32 %v2166_v17, %v2573_v60 }
 0x187   : >> { %4435 = vst [vmem:[#allocation137_spill] sm:$0xff] %v2870_v30  ;;  %4436 = vst [vmem:[#allocation138_spill] sm:$0xff] %v2874_v29  ;;  %v2910_v5 = vadd.s32 %v2166_v17, %v2576_v59  ;;  %v2914_v4 = vadd.s32 %v2166_v17, %v2579_v58  ;;  %v2918_v3 = vadd.s32 %v2166_v17, %v2582_v57  ;;  %v745_v29 = vld [vmem:[%s2157_s27 + $0x3d8] sm:$0xff] }
 0x188   : >> { %4437 = vst [vmem:[#allocation139_spill] sm:$0xff] %v2878_v22  ;;  %4438 = vst [vmem:[#allocation140_spill] sm:$0xff] %v2882_v21  ;;  %v2922_v2 = vadd.s32 %v2166_v17, %v2585_v41  ;;  %v2926_v60 = vadd.s32 %v2166_v17, %v2588_v34  ;;  %v2930_v59 = vadd.s32 %v2166_v17, %v2591_v33 }
 0x189   : >> { %4439 = vst [vmem:[#allocation141_spill] sm:$0xff] %v2886_v20  ;;  %4440 = vst [vmem:[#allocation142_spill] sm:$0xff] %v2890_v19  ;;  %v2934_v58 = vadd.s32 %v2166_v17, %v2594_v50  ;;  %v737_v19 = vld [vmem:[%s2157_s27 + $0x398] sm:$0xff] }
 0x18a   : >> { %4441 = vst [vmem:[#allocation143_spill] sm:$0xff] %v2894_v14  ;;  %4442 = vst [vmem:[#allocation144_spill] sm:$0xff] %v2898_v13  ;;  %v733_v13 = vld [vmem:[%s2157_s27 + $0x378] sm:$0xff]  ;;  %v734_v14 = vld [vmem:[%s2157_s27 + $0x380] sm:$0xff]  ;;  %v3326_v40 = vmul.f32 %v737_v19, %v737_v19  ;;  %v3347_v19 = vmul.f32 %v745_v29, %v745_v29 }
 0x18b   : >> { %4443 = vst [vmem:[#allocation145_spill] sm:$0xff] %v2902_v12  ;;  %4444 = vst [vmem:[#allocation146_spill] sm:$0xff] %v2906_v10  ;;  %v731_v12 = vld [vmem:[%s2157_s27 + $0x368] sm:$0xff]  ;;  %v736_v10 = vld [vmem:[%s2157_s27 + $0x390] sm:$0xff]  ;;  %v3317_v31 = vmul.f32 %v734_v14, %v734_v14 }
 0x18c   : >> { %4445 = vst [vmem:[#allocation147_spill] sm:$0xff] %v2910_v5  ;;  %4446 = vst [vmem:[#allocation148_spill] sm:$0xff] %v2914_v4  ;;  %v4452_v4 = vld [vmem:[#allocation96_spill] sm:$0xff]  ;;  %v3305_v21 = vmul.f32 %v731_v12, %v731_v12 }
 0x18d   : >> { %4447 = vst [vmem:[#allocation149_spill] sm:$0xff] %v2918_v3  ;;  %4448 = vst [vmem:[#allocation150_spill] sm:$0xff] %v2922_v2  ;;  %v2938_v57 = vadd.s32 %v2166_v17, %v4452_v4  ;;  %v4454_v3 = vld [vmem:[#allocation97_spill] sm:$0xff]  ;;  %v4456_v2 = vld [vmem:[#allocation98_spill] sm:$0xff] }
 0x18e   : >> { %4449 = vst [vmem:[#allocation151_spill] sm:$0xff] %v2926_v60  ;;  %4450 = vst [vmem:[#allocation152_spill] sm:$0xff] %v2930_v59  ;;  %v2942_v41 = vadd.s32 %v2166_v17, %v4454_v3  ;;  %v2946_v34 = vadd.s32 %v2166_v17, %v4456_v2  ;;  %v4458_v60 = vld [vmem:[#allocation99_spill] sm:$0xff]  ;;  %v4460_v59 = vld [vmem:[#allocation100_spill] sm:$0xff] }
 0x18f   : >> { %4451 = vst [vmem:[#allocation153_spill] sm:$0xff] %v2934_v58  ;;  %4453 = vst [vmem:[#allocation96_spill] sm:$0xff] %v2938_v57  ;;  %v2950_v33 = vadd.s32 %v2166_v17, %v4458_v60  ;;  %v2954_v50 = vadd.s32 %v2166_v17, %v4460_v59  ;;  %v4462_v58 = vld [vmem:[#allocation101_spill] sm:$0xff]  ;;  %v4464_v57 = vld [vmem:[#allocation102_spill] sm:$0xff] }
 0x190   : >> { %4455 = vst [vmem:[#allocation97_spill] sm:$0xff] %v2942_v41  ;;  %4457 = vst [vmem:[#allocation98_spill] sm:$0xff] %v2946_v34  ;;  %v2958_v4 = vadd.s32 %v2166_v17, %v4462_v58  ;;  %v2962_v3 = vadd.s32 %v2166_v17, %v4464_v57  ;;  %v4466_v41 = vld [vmem:[#allocation103_spill] sm:$0xff]  ;;  %v4468_v34 = vld [vmem:[#allocation104_spill] sm:$0xff] }
 0x191   : >> { %4459 = vst [vmem:[#allocation99_spill] sm:$0xff] %v2950_v33  ;;  %4461 = vst [vmem:[#allocation100_spill] sm:$0xff] %v2954_v50  ;;  %v2966_v2 = vadd.s32 %v2166_v17, %v4466_v41  ;;  %v2970_v60 = vadd.s32 %v2166_v17, %v4468_v34  ;;  %v4470_v33 = vld [vmem:[#allocation105_spill] sm:$0xff]  ;;  %v4472_v50 = vld [vmem:[#allocation106_spill] sm:$0xff] }
 0x192   : >> { %4463 = vst [vmem:[#allocation101_spill] sm:$0xff] %v2958_v4  ;;  %4465 = vst [vmem:[#allocation102_spill] sm:$0xff] %v2962_v3  ;;  %v2974_v59 = vadd.s32 %v2166_v17, %v4470_v33  ;;  %v2978_v58 = vadd.s32 %v2166_v17, %v4472_v50  ;;  %v4474_v4 = vld [vmem:[#allocation107_spill] sm:$0xff]  ;;  %v4476_v3 = vld [vmem:[#allocation108_spill] sm:$0xff] }
 0x193   : >> { %4467 = vst [vmem:[#allocation103_spill] sm:$0xff] %v2966_v2  ;;  %4469 = vst [vmem:[#allocation104_spill] sm:$0xff] %v2970_v60  ;;  %v2982_v57 = vadd.s32 %v2166_v17, %v4474_v4  ;;  %v2986_v41 = vadd.s32 %v2166_v17, %v4476_v3  ;;  %v4478_v2 = vld [vmem:[#allocation109_spill] sm:$0xff]  ;;  %v4480_v60 = vld [vmem:[#allocation110_spill] sm:$0xff] }
 0x194   : >> { %4471 = vst [vmem:[#allocation105_spill] sm:$0xff] %v2974_v59  ;;  %4473 = vst [vmem:[#allocation106_spill] sm:$0xff] %v2978_v58  ;;  %v2990_v34 = vadd.s32 %v2166_v17, %v4478_v2  ;;  %v2994_v33 = vadd.s32 %v2166_v17, %v4480_v60  ;;  %v4482_v59 = vld [vmem:[#allocation111_spill] sm:$0xff]  ;;  %v4484_v58 = vld [vmem:[#allocation112_spill] sm:$0xff] }
 0x195   : >> { %4475 = vst [vmem:[#allocation107_spill] sm:$0xff] %v2982_v57  ;;  %4477 = vst [vmem:[#allocation108_spill] sm:$0xff] %v2986_v41  ;;  %v2998_v50 = vadd.s32 %v2166_v17, %v4482_v59  ;;  %v3002_v4 = vadd.s32 %v2166_v17, %v4484_v58  ;;  %v4486_v57 = vld [vmem:[#allocation113_spill] sm:$0xff]  ;;  %v4488_v41 = vld [vmem:[#allocation114_spill] sm:$0xff] }
 0x196   : >> { %4479 = vst [vmem:[#allocation109_spill] sm:$0xff] %v2990_v34  ;;  %4481 = vst [vmem:[#allocation110_spill] sm:$0xff] %v2994_v33  ;;  %v3006_v3 = vadd.s32 %v2166_v17, %v4486_v57  ;;  %v3010_v2 = vadd.s32 %v2166_v17, %v4488_v41  ;;  %v4490_v34 = vld [vmem:[#allocation115_spill] sm:$0xff]  ;;  %v4492_v33 = vld [vmem:[#allocation116_spill] sm:$0xff] }
 0x197   : >> { %4483 = vst [vmem:[#allocation111_spill] sm:$0xff] %v2998_v50  ;;  %4485 = vst [vmem:[#allocation112_spill] sm:$0xff] %v3002_v4  ;;  %v3014_v60 = vadd.s32 %v2166_v17, %v4490_v34  ;;  %v3018_v59 = vadd.s32 %v2166_v17, %v4492_v33  ;;  %v4494_v50 = vld [vmem:[#allocation117_spill] sm:$0xff]  ;;  %v4496_v4 = vld [vmem:[#allocation118_spill] sm:$0xff] }
 0x198   : >> { %4487 = vst [vmem:[#allocation113_spill] sm:$0xff] %v3006_v3  ;;  %4489 = vst [vmem:[#allocation114_spill] sm:$0xff] %v3010_v2  ;;  %v3022_v58 = vadd.s32 %v2166_v17, %v4494_v50  ;;  %v3026_v57 = vadd.s32 %v2166_v17, %v4496_v4  ;;  %v4498_v3 = vld [vmem:[#allocation119_spill] sm:$0xff]  ;;  %v4500_v2 = vld [vmem:[#allocation120_spill] sm:$0xff] }
 0x199   : >> { %4491 = vst [vmem:[#allocation115_spill] sm:$0xff] %v3014_v60  ;;  %4493 = vst [vmem:[#allocation116_spill] sm:$0xff] %v3018_v59  ;;  %v3030_v41 = vadd.s32 %v2166_v17, %v4498_v3  ;;  %v3034_v34 = vadd.s32 %v2166_v17, %v4500_v2  ;;  %v4502_v60 = vld [vmem:[#allocation121_spill] sm:$0xff]  ;;  %v4504_v59 = vld [vmem:[#allocation122_spill] sm:$0xff] }
 0x19a   : >> { %4495 = vst [vmem:[#allocation117_spill] sm:$0xff] %v3022_v58  ;;  %4497 = vst [vmem:[#allocation118_spill] sm:$0xff] %v3026_v57  ;;  %v3038_v33 = vadd.s32 %v2166_v17, %v4502_v60  ;;  %v3042_v50 = vadd.s32 %v2166_v17, %v4504_v59  ;;  %v4506_v58 = vld [vmem:[#allocation123_spill] sm:$0xff]  ;;  %v4508_v57 = vld [vmem:[#allocation124_spill] sm:$0xff] }
 0x19b   : >> { %4499 = vst [vmem:[#allocation119_spill] sm:$0xff] %v3030_v41  ;;  %4501 = vst [vmem:[#allocation120_spill] sm:$0xff] %v3034_v34  ;;  %v3046_v4 = vadd.s32 %v2166_v17, %v4506_v58  ;;  %v3050_v3 = vadd.s32 %v2166_v17, %v4508_v57  ;;  %v4510_v41 = vld [vmem:[#allocation125_spill] sm:$0xff]  ;;  %v4512_v34 = vld [vmem:[#allocation126_spill] sm:$0xff] }
 0x19c   : >> { %4503 = vst [vmem:[#allocation121_spill] sm:$0xff] %v3038_v33  ;;  %4505 = vst [vmem:[#allocation122_spill] sm:$0xff] %v3042_v50  ;;  %v3054_v2 = vadd.s32 %v2166_v17, %v4510_v41  ;;  %v3058_v60 = vadd.s32 %v2166_v17, %v4512_v34  ;;  %v4514_v33 = vld [vmem:[#allocation127_spill] sm:$0xff]  ;;  %v4516_v50 = vld [vmem:[#allocation128_spill] sm:$0xff]  ;;  %v3078_v34 = vadd.s32 %v2166_v17, %v2702_v44 }
 0x19d   : >> { %4507 = vst [vmem:[#allocation123_spill] sm:$0xff] %v3046_v4  ;;  %4509 = vst [vmem:[#allocation124_spill] sm:$0xff] %v3050_v3  ;;  %v3062_v59 = vadd.s32 %v2166_v17, %v4514_v33  ;;  %v3066_v58 = vadd.s32 %v2166_v17, %v4516_v50  ;;  %v4518_v4 = vld [vmem:[#allocation129_spill] sm:$0xff]  ;;  %v4520_v3 = vld [vmem:[#allocation130_spill] sm:$0xff] }
 0x19e   : >> { %4511 = vst [vmem:[#allocation125_spill] sm:$0xff] %v3054_v2  ;;  %4513 = vst [vmem:[#allocation126_spill] sm:$0xff] %v3058_v60  ;;  %v3070_v57 = vadd.s32 %v2166_v17, %v4518_v4  ;;  %v3074_v41 = vadd.s32 %v2166_v17, %v4520_v3  ;;  %v4523_v60 = vld [vmem:[#allocation131_spill] sm:$0xff]  ;;  %v3090_v4 = vadd.s32 %v2166_v17, %v2711_v36  ;;  %v732_v44 = vld [vmem:[%s2157_s27 + $0x370] sm:$0xff] }
 0x19f   : >> { %4515 = vst [vmem:[#allocation127_spill] sm:$0xff] %v3062_v59  ;;  %4517 = vst [vmem:[#allocation128_spill] sm:$0xff] %v3066_v58  ;;  %v3082_v33 = vadd.s32 %v2166_v17, %v4523_v60  ;;  %v4525_v59 = vld [vmem:[#allocation132_spill] sm:$0xff]  ;;  %v3094_v3 = vadd.s32 %v2166_v17, %v2714_v27  ;;  %v738_v58 = vld [vmem:[%s2157_s27 + $0x3a0] sm:$0xff]  ;;  %v3313_v30 = vmul.f32 %v732_v44, %v732_v44 }
 0x1a0   : >> { %4519 = vst [vmem:[#allocation129_spill] sm:$0xff] %v3070_v57  ;;  %4521 = vst [vmem:[#allocation130_spill] sm:$0xff] %v3074_v41  ;;  %v3086_v50 = vadd.s32 %v2166_v17, %v4525_v59  ;;  %v4529_v41 = vld [vmem:[#allocation9_spill] sm:$0xff]  ;;  %v4540_v60 = vld [vmem:[#allocation100_spill] sm:$0xff] }
 0x1a1   : >> { %4522 = vst [vmem:[#allocation154_spill] sm:$0xff] %v3078_v34  ;;  %4524 = vst [vmem:[#allocation131_spill] sm:$0xff] %v3082_v33  ;;  %vm1170_vm0 = vcmp.lt.s32.totalorder %v2718_v26, %v4529_v41  ;;  %vm1171_vm1 = vcmp.lt.s32.totalorder %v2722_v28, %v4529_v41  ;;  %vm1172_vm2 = vcmp.lt.s32.totalorder %v2726_v43, %v4529_v41  ;;  %v4555_v59 = vld [vmem:[#allocation115_spill] sm:$0xff]  ;;  %v735_v5 = vld [vmem:[%s2157_s27 + $0x388] sm:$0xff] }
 0x1a2   : >> { %4526 = vst [vmem:[#allocation132_spill] sm:$0xff] %v3086_v50  ;;  %4527 = vst [vmem:[#allocation155_spill] sm:$0xff] %v3090_v4  ;;  %vm1173_vm3 = vcmp.lt.s32.totalorder %v2730_v35, %v4529_v41  ;;  %vm1174_vm4 = vcmp.lt.s32.totalorder %v2734_v11, %v4529_v41  ;;  %vm1175_vm5 = vcmp.lt.s32.totalorder %v2738_v9, %v4529_v41  ;;  %v739_v36 = vld [vmem:[%s2157_s27 + $0x3a8] sm:$0xff]  ;;  %v740_v27 = vld [vmem:[%s2157_s27 + $0x3b0] sm:$0xff] }
 0x1a3   : >> { %4528 = vst [vmem:[#allocation156_spill] sm:$0xff] %v3094_v3  ;;  %vm1176_vm6 = vcmp.lt.s32.totalorder %v2742_v39, %v4529_v41  ;;  %vm1177_vm7 = vcmp.lt.s32.totalorder %v2746_v24, %v4529_v41  ;;  %vm1178_vm8 = vcmp.lt.s32.totalorder %v2750_v63, %v4529_v41  ;;  %vm1229_vm10 = vcmp.lt.s32.totalorder %v4540_v60, %v4529_v41  ;;  %v729_v60 = vld [vmem:[%s2157_s27 + $0x358] sm:$0xff]  ;;  %v743_v2 = vld [vmem:[%s2157_s27 + $0x3c8] sm:$0xff]  ;;  %v744_v4 = vld [vmem:[%s2157_s27 + $0x3d0] sm:$0xff] }
 0x1a4   : >> { %vm1244_vm13 = vcmp.lt.s32.totalorder %v4555_v59, %v4529_v41  ;;  %v730_v59 = vld [vmem:[%s2157_s27 + $0x360] sm:$0xff]  ;;  %vm1258_vm11 = vcmp.lt.s32.totalorder %v3070_v57, %v4529_v41  ;;  %vm1261_vm15 = vcmp.lt.s32.totalorder %v3082_v33, %v4529_v41  ;;  %v3292_v20 = vmul.f32 %v729_v60, %v729_v60  ;;  %v741_v34 = vld [vmem:[%s2157_s27 + $0x3b8] sm:$0xff]  ;;  %4570 = vst [vmem:[#allocation158_spill] sm:$0xff] %v3305_v21  ;;  %v747_v12 = vld [vmem:[%s2157_s27 + $0x3e8] sm:$0xff] }
 0x1a5   : >> { %v742_v33 = vld [vmem:[%s2157_s27 + $0x3c0] sm:$0xff]  ;;  %v3303_v57 = vmul.f32 %v730_v59, %v730_v59  ;;  %v3315_v3 = vmul.f32 %v733_v13, %v733_v13  ;;  %v3319_v32 = vmul.f32 %v735_v5, %v735_v5  ;;  %v748_v21 = vld [vmem:[%s2157_s27 + $0x3f0] sm:$0xff]  ;;  %v3333_v44 = vmul.f32 %v740_v27, %v740_v27  ;;  %v4590_v26 = vld [vmem:[#allocation26_spill] sm:$0xff] }
 0x1a6   : >> { %4568 = vst [vmem:[#allocation9_spill] sm:$0xff] %v3292_v20  ;;  %v4571_v60 = vld [vmem:[#allocation7_spill] sm:$0xff]  ;;  %v4572_v20 = vld [vmem:[#allocation8_spill] sm:$0xff]  ;;  %v3335_v13 = vmul.f32 %v741_v34, %v741_v34  ;;  %v3337_v14 = vmul.f32 %v742_v33, %v742_v33  ;;  %v3339_v5 = vmul.f32 %v743_v2, %v743_v2  ;;  %v3351_v27 = vmul.f32 %v747_v12, %v747_v12  ;;  %v4593_v35 = vld [vmem:[#allocation29_spill] sm:$0xff] }
 0x1a7   : >> { %4569 = vst [vmem:[#allocation157_spill] sm:$0xff] %v3303_v57  ;;  %v1009_v50 = vadd.s32 %v2166_v17, %v4571_v60  ;;  %v1010_v22 = vadd.s32 %v2166_v17, %v4572_v20  ;;  %4573 = vst [vmem:[#allocation7_spill] sm:$0xff] %v3319_v32  ;;  %v746_v59 = vld [vmem:[%s2157_s27 + $0x3e0] sm:$0xff]  ;;  %v3324_v57 = vmul.f32 %v736_v10, %v736_v10  ;;  %v4574_v10 = vld [vmem:[#allocation13_spill] sm:$0xff] }
 0x1a8   : >> { %v3328_v60 = vmul.f32 %v738_v58, %v738_v58  ;;  %v3330_v20 = vmul.f32 %v739_v36, %v739_v36  ;;  %v3341_v32 = vmul.f32 %v744_v4, %v744_v4  ;;  %vm1137_vm14 = vcmp.lt.s32.totalorder %v4574_v10, %v4529_v41  ;;  %4575 = vst [vmem:[#allocation8_spill] sm:$0xff] %v3351_v27  ;;  %v4578_v2 = vld [vmem:[#allocation12_spill] sm:$0xff]  ;;  %v4586_v27 = vld [vmem:[#allocation22_spill] sm:$0xff]  ;;  %v4591_v28 = vld [vmem:[#allocation27_spill] sm:$0xff] }
 0x1a9   : >> { %vm1138_vm12 = vcmp.lt.s32.totalorder %v1009_v50, %v4529_v41  ;;  %vm1139_vm9 = vcmp.lt.s32.totalorder %v1010_v22, %v4529_v41  ;;  %v3349_v58 = vmul.f32 %v746_v59, %v746_v59  ;;  %v3353_v34 = vmul.f32 %v748_v21, %v748_v21  ;;  %v4579_v36 = vld [vmem:[#allocation16_spill] sm:$0xff]  ;;  %v4580_v50 = vld [vmem:[#allocation17_spill] sm:$0xff]  ;;  %v4581_v22 = vld [vmem:[#allocation19_spill] sm:$0xff] }
 0x1aa   : >> { %v3355_v33 = vmul.f32 %v749_v49, %v749_v49  ;;  %v3359_v4 = vadd.s32 %v2166_v17, %v4578_v2  ;;  %v3363_v10 = vadd.s32 %v2166_v17, %v4579_v36  ;;  %v3367_v29 = vadd.s32 %v2166_v17, %v4580_v50  ;;  %v4583_v21 = vld [vmem:[#allocation10_spill] sm:$0xff]  ;;  %v4584_v49 = vld [vmem:[#allocation11_spill] sm:$0xff]  ;;  %v4592_v43 = vld [vmem:[#allocation28_spill] sm:$0xff] }
 0x1ab   : >> { %4576 = vst [vmem:[#allocation13_spill] sm:$0xff] %v3353_v34  ;;  %v3371_v59 = vadd.s32 %v2166_v17, %v4581_v22  ;;  %v3374_v12 = vsel %vm1137_vm14, %v4583_v21, 0.0  ;;  %v4585_v2 = vld [vmem:[#allocation14_spill] sm:$0xff]  ;;  %v3386_v36 = vsel %vm1170_vm0, %v4586_v27, 0.0  ;;  %v4587_v50 = vld [vmem:[#allocation23_spill] sm:$0xff]  ;;  %v4588_v21 = vld [vmem:[#allocation24_spill] sm:$0xff]  ;;  %vm4596_vm0 = vcmp.lt.s32.totalorder %v2754_v62, %v4529_v41 }
 0x1ac   : >> { %4577 = vst [vmem:[#allocation159_spill] sm:$0xff] %v3355_v33  ;;  %v3377_v33 = vsel %vm1138_vm12, %v4584_v49, 0.0  ;;  %v3380_v34 = vsel %vm1139_vm9, %v4585_v2, 0.0  ;;  %v3392_v22 = vsel %vm1171_vm1, %v4587_v50, 0.0  ;;  %v3398_v49 = vsel %vm1172_vm2, %v4588_v21, 0.0  ;;  %v4589_v2 = vld [vmem:[#allocation25_spill] sm:$0xff] }
 0x1ad   : >> { %4582 = vst [vmem:[#allocation12_spill] sm:$0xff] %v3371_v59  ;;  %v3404_v59 = vsel %vm1173_vm3, %v4589_v2, 0.0  ;;  %v3410_v27 = vsel %vm1174_vm4, %v4590_v26, 0.0  ;;  %v3416_v50 = vsel %vm1175_vm5, %v4591_v28, 0.0  ;;  %v3422_v21 = vsel %vm1176_vm6, %v4592_v43, 0.0  ;;  %v4594_v11 = vld [vmem:[#allocation30_spill] sm:$0xff] }
 0x1ae   : >> { %v3428_v2 = vsel %vm1177_vm7, %v4593_v35, 0.0  ;;  %v3434_v26 = vsel %vm1178_vm8, %v4594_v11, 0.0  ;;  %v4595_v9 = vld [vmem:[#allocation31_spill] sm:$0xff]  ;;  %v4597_v39 = vld [vmem:[#allocation32_spill] sm:$0xff]  ;;  %vm4598_vm1 = vcmp.lt.s32.totalorder %v2758_v8, %v4529_v41  ;;  %v4599_v24 = vld [vmem:[#allocation33_spill] sm:$0xff]  ;;  %vm4600_vm2 = vcmp.lt.s32.totalorder %v2762_v48, %v4529_v41 }
 0x1af   : >> { %v3440_v28 = vsel %vm4596_vm0, %v4595_v9, 0.0  ;;  %v3446_v43 = vsel %vm4598_vm1, %v4597_v39, 0.0  ;;  %v3452_v35 = vsel %vm4600_vm2, %v4599_v24, 0.0  ;;  %v4601_v63 = vld [vmem:[#allocation34_spill] sm:$0xff]  ;;  %vm4602_vm3 = vcmp.lt.s32.totalorder %v2766_v16, %v4529_v41  ;;  %v4603_v62 = vld [vmem:[#allocation35_spill] sm:$0xff]  ;;  %v4605_v8 = vld [vmem:[#allocation36_spill] sm:$0xff] }
 0x1b0   : >> { %v3458_v11 = vsel %vm4602_vm3, %v4601_v63, 0.0  ;;  %vm4604_vm4 = vcmp.lt.s32.totalorder %v2770_v52, %v4529_v41  ;;  %vm4606_vm5 = vcmp.lt.s32.totalorder %v2774_v18, %v4529_v41  ;;  %v4607_v48 = vld [vmem:[#allocation37_spill] sm:$0xff]  ;;  %vm4608_vm6 = vcmp.lt.s32.totalorder %v2778_v25, %v4529_v41  ;;  %v4609_v16 = vld [vmem:[#allocation38_spill] sm:$0xff]  ;;  %v4611_v52 = vld [vmem:[#allocation39_spill] sm:$0xff] }
 0x1b1   : >> { %v3464_v9 = vsel %vm4604_vm4, %v4603_v62, 0.0  ;;  %v3470_v39 = vsel %vm4606_vm5, %v4605_v8, 0.0  ;;  %v3476_v24 = vsel %vm4608_vm6, %v4607_v48, 0.0  ;;  %vm4610_vm7 = vcmp.lt.s32.totalorder %v2782_v51, %v4529_v41  ;;  %v4613_v18 = vld [vmem:[#allocation40_spill] sm:$0xff]  ;;  %v4615_v25 = vld [vmem:[#allocation41_spill] sm:$0xff]  ;;  %v4617_v51 = vld [vmem:[#allocation42_spill] sm:$0xff] }
 0x1b2   : >> { %v3482_v63 = vsel %vm4610_vm7, %v4609_v16, 0.0  ;;  %vm4612_vm8 = vcmp.lt.s32.totalorder %v2786_v37, %v4529_v41  ;;  %vm4614_vm9 = vcmp.lt.s32.totalorder %v2790_v7, %v4529_v41  ;;  %vm4616_vm12 = vcmp.lt.s32.totalorder %v2794_v0, %v4529_v41  ;;  %v4619_v37 = vld [vmem:[#allocation43_spill] sm:$0xff]  ;;  %v4621_v7 = vld [vmem:[#allocation44_spill] sm:$0xff]  ;;  %v4623_v0 = vld [vmem:[#allocation45_spill] sm:$0xff] }
 0x1b3   : >> { %v3488_v62 = vsel %vm4612_vm8, %v4611_v52, 0.0  ;;  %v3494_v8 = vsel %vm4614_vm9, %v4613_v18, 0.0  ;;  %v3500_v48 = vsel %vm4616_vm12, %v4615_v25, 0.0  ;;  %vm4618_vm14 = vcmp.lt.s32.totalorder %v2798_v54, %v4529_v41  ;;  %v4625_v54 = vld [vmem:[#allocation46_spill] sm:$0xff] }
 0x1b4   : >> { %v3506_v16 = vsel %vm4618_vm14, %v4617_v51, 0.0  ;;  %vm4620_vm0 = vcmp.lt.s32.totalorder %v2802_v56, %v4529_v41  ;;  %vm4622_vm1 = vcmp.lt.s32.totalorder %v2806_v55, %v4529_v41  ;;  %vm4624_vm2 = vcmp.lt.s32.totalorder %v2810_v23, %v4529_v41  ;;  %v4627_v56 = vld [vmem:[#allocation47_spill] sm:$0xff]  ;;  %v4629_v55 = vld [vmem:[#allocation48_spill] sm:$0xff]  ;;  %v4631_v23 = vld [vmem:[#allocation49_spill] sm:$0xff] }
 0x1b5   : >> { %v3512_v52 = vsel %vm4620_vm0, %v4619_v37, 0.0  ;;  %v3518_v18 = vsel %vm4622_vm1, %v4621_v7, 0.0  ;;  %v3524_v25 = vsel %vm4624_vm2, %v4623_v0, 0.0  ;;  %vm4626_vm3 = vcmp.lt.s32.totalorder %v2814_v47, %v4529_v41  ;;  %v4633_v47 = vld [vmem:[#allocation50_spill] sm:$0xff] }
 0x1b6   : >> { %v3530_v51 = vsel %vm4626_vm3, %v4625_v54, 0.0  ;;  %vm4628_vm4 = vcmp.lt.s32.totalorder %v2818_v46, %v4529_v41  ;;  %vm4630_vm5 = vcmp.lt.s32.totalorder %v2822_v42, %v4529_v41  ;;  %vm4632_vm6 = vcmp.lt.s32.totalorder %v2826_v38, %v4529_v41  ;;  %v4635_v46 = vld [vmem:[#allocation51_spill] sm:$0xff]  ;;  %v4637_v42 = vld [vmem:[#allocation52_spill] sm:$0xff]  ;;  %v4640_v38 = vld [vmem:[#allocation53_spill] sm:$0xff] }
 0x1b7   : >> { %v3536_v37 = vsel %vm4628_vm4, %v4627_v56, 0.0  ;;  %v3542_v7 = vsel %vm4630_vm5, %v4629_v55, 0.0  ;;  %v3548_v0 = vsel %vm4632_vm6, %v4631_v23, 0.0  ;;  %vm4634_vm7 = vcmp.lt.s32.totalorder %v2830_v1, %v4529_v41  ;;  %v4643_v1 = vld [vmem:[#allocation54_spill] sm:$0xff] }
 0x1b8   : >> { %v3554_v54 = vsel %vm4634_vm7, %v4633_v47, 0.0  ;;  %vm4636_vm8 = vcmp.lt.s32.totalorder %v2834_v15, %v4529_v41  ;;  %vm4638_vm9 = vcmp.lt.s32.totalorder %v2838_v6, %v4529_v41  ;;  %vm4641_vm12 = vcmp.lt.s32.totalorder %v2842_v61, %v4529_v41  ;;  %v4646_v15 = vld [vmem:[#allocation55_spill] sm:$0xff]  ;;  %v4649_v6 = vld [vmem:[#allocation56_spill] sm:$0xff]  ;;  %v4653_v61 = vld [vmem:[#allocation57_spill] sm:$0xff] }
 0x1b9   : >> { %v3560_v56 = vsel %vm4636_vm8, %v4635_v46, 0.0  ;;  %v3566_v55 = vsel %vm4638_vm9, %v4637_v42, 0.0  ;;  %v3572_v23 = vsel %vm4641_vm12, %v4640_v38, 0.0  ;;  %vm4644_vm14 = vcmp.lt.s32.totalorder %v2846_v53, %v4529_v41  ;;  %v4650_v42 = vld [vmem:[#allocation133_spill] sm:$0xff]  ;;  %v4654_v38 = vld [vmem:[#allocation134_spill] sm:$0xff] }
 0x1ba   : >> { %4639 = vst [vmem:[#allocation16_spill] sm:$0xff] %v3566_v55  ;;  %4642 = vst [vmem:[#allocation17_spill] sm:$0xff] %v3572_v23  ;;  %v3578_v47 = vsel %vm4644_vm14, %v4643_v1, 0.0  ;;  %vm4647_vm0 = vcmp.lt.s32.totalorder %v2850_v45, %v4529_v41  ;;  %vm4651_vm1 = vcmp.lt.s32.totalorder %v4650_v42, %v4529_v41  ;;  %vm4655_vm2 = vcmp.lt.s32.totalorder %v4654_v38, %v4529_v41  ;;  %v4657_v53 = vld [vmem:[#allocation58_spill] sm:$0xff]  ;;  %v4658_v1 = vld [vmem:[#allocation135_spill] sm:$0xff] }
 0x1bb   : >> { %4645 = vst [vmem:[#allocation19_spill] sm:$0xff] %v3578_v47  ;;  %v3584_v46 = vsel %vm4647_vm0, %v4646_v15, 0.0  ;;  %v3590_v55 = vsel %vm4651_vm1, %v4649_v6, 0.0  ;;  %v3596_v23 = vsel %vm4655_vm2, %v4653_v61, 0.0  ;;  %vm4659_vm3 = vcmp.lt.s32.totalorder %v4658_v1, %v4529_v41  ;;  %v4661_v45 = vld [vmem:[#allocation59_spill] sm:$0xff]  ;;  %v4662_v15 = vld [vmem:[#allocation136_spill] sm:$0xff] }
 0x1bc   : >> { %4648 = vst [vmem:[#allocation10_spill] sm:$0xff] %v3584_v46  ;;  %4652 = vst [vmem:[#allocation11_spill] sm:$0xff] %v3590_v55  ;;  %v3602_v47 = vsel %vm4659_vm3, %v4657_v53, 0.0  ;;  %vm4663_vm4 = vcmp.lt.s32.totalorder %v4662_v15, %v4529_v41  ;;  %v4665_v6 = vld [vmem:[#allocation60_spill] sm:$0xff]  ;;  %v4666_v42 = vld [vmem:[#allocation137_spill] sm:$0xff] }
 0x1bd   : >> { %4656 = vst [vmem:[#allocation14_spill] sm:$0xff] %v3596_v23  ;;  %4660 = vst [vmem:[#allocation22_spill] sm:$0xff] %v3602_v47  ;;  %v3608_v46 = vsel %vm4663_vm4, %v4661_v45, 0.0  ;;  %vm4667_vm5 = vcmp.lt.s32.totalorder %v4666_v42, %v4529_v41  ;;  %v4669_v61 = vld [vmem:[#allocation61_spill] sm:$0xff]  ;;  %v4670_v38 = vld [vmem:[#allocation138_spill] sm:$0xff] }
 0x1be   : >> { %4664 = vst [vmem:[#allocation23_spill] sm:$0xff] %v3608_v46  ;;  %v3614_v55 = vsel %vm4667_vm5, %v4665_v6, 0.0  ;;  %vm4671_vm6 = vcmp.lt.s32.totalorder %v4670_v38, %v4529_v41  ;;  %v4673_v53 = vld [vmem:[#allocation62_spill] sm:$0xff]  ;;  %v4674_v1 = vld [vmem:[#allocation139_spill] sm:$0xff]  ;;  %v4678_v15 = vld [vmem:[#allocation140_spill] sm:$0xff] }
 0x1bf   : >> { %4668 = vst [vmem:[#allocation24_spill] sm:$0xff] %v3614_v55  ;;  %v3620_v23 = vsel %vm4671_vm6, %v4669_v61, 0.0  ;;  %vm4675_vm7 = vcmp.lt.s32.totalorder %v4674_v1, %v4529_v41  ;;  %v4677_v45 = vld [vmem:[#allocation63_spill] sm:$0xff]  ;;  %vm4679_vm8 = vcmp.lt.s32.totalorder %v4678_v15, %v4529_v41  ;;  %v4681_v6 = vld [vmem:[#allocation64_spill] sm:$0xff]  ;;  %v4682_v42 = vld [vmem:[#allocation141_spill] sm:$0xff] }
 0x1c0   : >> { %4672 = vst [vmem:[#allocation25_spill] sm:$0xff] %v3620_v23  ;;  %v3626_v47 = vsel %vm4675_vm7, %v4673_v53, 0.0  ;;  %v3632_v46 = vsel %vm4679_vm8, %v4677_v45, 0.0  ;;  %vm4683_vm9 = vcmp.lt.s32.totalorder %v4682_v42, %v4529_v41  ;;  %v4685_v61 = vld [vmem:[#allocation65_spill] sm:$0xff]  ;;  %v4686_v38 = vld [vmem:[#allocation142_spill] sm:$0xff]  ;;  %v4690_v1 = vld [vmem:[#allocation143_spill] sm:$0xff]  ;;  %vm1140_vm7 = vcmp.lt.s32.totalorder %v3359_v4, %v4529_v41 }
 0x1c1   : >> { %4676 = vst [vmem:[#allocation26_spill] sm:$0xff] %v3626_v47  ;;  %4680 = vst [vmem:[#allocation27_spill] sm:$0xff] %v3632_v46  ;;  %v3638_v55 = vsel %vm4683_vm9, %v4681_v6, 0.0  ;;  %vm4687_vm12 = vcmp.lt.s32.totalorder %v4686_v38, %v4529_v41  ;;  %v4689_v53 = vld [vmem:[#allocation66_spill] sm:$0xff]  ;;  %vm4691_vm14 = vcmp.lt.s32.totalorder %v4690_v1, %v4529_v41  ;;  %v4693_v45 = vld [vmem:[#allocation67_spill] sm:$0xff] }
 0x1c2   : >> { %4684 = vst [vmem:[#allocation28_spill] sm:$0xff] %v3638_v55  ;;  %v3644_v23 = vsel %vm4687_vm12, %v4685_v61, 0.0  ;;  %v3650_v47 = vsel %vm4691_vm14, %v4689_v53, 0.0  ;;  %v4694_v15 = vld [vmem:[#allocation144_spill] sm:$0xff]  ;;  %v4698_v42 = vld [vmem:[#allocation145_spill] sm:$0xff]  ;;  %v4702_v38 = vld [vmem:[#allocation146_spill] sm:$0xff] }
 0x1c3   : >> { %4688 = vst [vmem:[#allocation29_spill] sm:$0xff] %v3644_v23  ;;  %4692 = vst [vmem:[#allocation30_spill] sm:$0xff] %v3650_v47  ;;  %vm4695_vm0 = vcmp.lt.s32.totalorder %v4694_v15, %v4529_v41  ;;  %v4697_v6 = vld [vmem:[#allocation68_spill] sm:$0xff]  ;;  %vm4699_vm1 = vcmp.lt.s32.totalorder %v4698_v42, %v4529_v41  ;;  %v4701_v61 = vld [vmem:[#allocation69_spill] sm:$0xff]  ;;  %vm4703_vm2 = vcmp.lt.s32.totalorder %v4702_v38, %v4529_v41 }
 0x1c4   : >> { %v3656_v46 = vsel %vm4695_vm0, %v4693_v45, 0.0  ;;  %v3662_v55 = vsel %vm4699_vm1, %v4697_v6, 0.0  ;;  %v3668_v23 = vsel %vm4703_vm2, %v4701_v61, 0.0  ;;  %v4705_v53 = vld [vmem:[#allocation70_spill] sm:$0xff]  ;;  %v4706_v1 = vld [vmem:[#allocation147_spill] sm:$0xff]  ;;  %v4710_v15 = vld [vmem:[#allocation148_spill] sm:$0xff] }
 0x1c5   : >> { %4696 = vst [vmem:[#allocation31_spill] sm:$0xff] %v3656_v46  ;;  %4700 = vst [vmem:[#allocation32_spill] sm:$0xff] %v3662_v55  ;;  %vm4707_vm3 = vcmp.lt.s32.totalorder %v4706_v1, %v4529_v41  ;;  %v4709_v45 = vld [vmem:[#allocation71_spill] sm:$0xff]  ;;  %vm4711_vm4 = vcmp.lt.s32.totalorder %v4710_v15, %v4529_v41  ;;  %v4713_v6 = vld [vmem:[#allocation72_spill] sm:$0xff] }
 0x1c6   : >> { %4704 = vst [vmem:[#allocation33_spill] sm:$0xff] %v3668_v23  ;;  %v3674_v47 = vsel %vm4707_vm3, %v4705_v53, 0.0  ;;  %v3680_v46 = vsel %vm4711_vm4, %v4709_v45, 0.0  ;;  %v4714_v42 = vld [vmem:[#allocation149_spill] sm:$0xff]  ;;  %v4718_v38 = vld [vmem:[#allocation150_spill] sm:$0xff]  ;;  %v4722_v1 = vld [vmem:[#allocation151_spill] sm:$0xff]  ;;  %vm1141_vm3 = vcmp.lt.s32.totalorder %v3363_v10, %v4529_v41 }
 0x1c7   : >> { %4708 = vst [vmem:[#allocation34_spill] sm:$0xff] %v3674_v47  ;;  %4712 = vst [vmem:[#allocation35_spill] sm:$0xff] %v3680_v46  ;;  %vm4715_vm5 = vcmp.lt.s32.totalorder %v4714_v42, %v4529_v41  ;;  %v4717_v61 = vld [vmem:[#allocation73_spill] sm:$0xff]  ;;  %vm4719_vm6 = vcmp.lt.s32.totalorder %v4718_v38, %v4529_v41  ;;  %v4721_v53 = vld [vmem:[#allocation74_spill] sm:$0xff]  ;;  %vm4723_vm8 = vcmp.lt.s32.totalorder %v4722_v1, %v4529_v41 }
 0x1c8   : >> { %v3686_v55 = vsel %vm4715_vm5, %v4713_v6, 0.0  ;;  %v3692_v23 = vsel %vm4719_vm6, %v4717_v61, 0.0  ;;  %v3700_v45 = vsel %vm4723_vm8, %v4721_v53, 0.0  ;;  %v4725_v15 = vld [vmem:[#allocation75_spill] sm:$0xff]  ;;  %v4726_v46 = vld [vmem:[#allocation152_spill] sm:$0xff]  ;;  %v4733_v38 = vld [vmem:[#allocation77_spill] sm:$0xff] }
 0x1c9   : >> { %4716 = vst [vmem:[#allocation36_spill] sm:$0xff] %v3686_v55  ;;  %4720 = vst [vmem:[#allocation37_spill] sm:$0xff] %v3692_v23  ;;  %vm4727_vm9 = vcmp.lt.s32.totalorder %v4726_v46, %v4529_v41  ;;  %v4729_v42 = vld [vmem:[#allocation76_spill] sm:$0xff]  ;;  %v4730_v55 = vld [vmem:[#allocation153_spill] sm:$0xff] }
 0x1ca   : >> { %4724 = vst [vmem:[#allocation38_spill] sm:$0xff] %v3700_v45  ;;  %v3706_v6 = vsel %vm4727_vm9, %v4725_v15, 0.0  ;;  %vm4731_vm12 = vcmp.lt.s32.totalorder %v4730_v55, %v4529_v41  ;;  %v4734_v23 = vld [vmem:[#allocation96_spill] sm:$0xff]  ;;  %v4737_v53 = vld [vmem:[#allocation78_spill] sm:$0xff]  ;;  %v4738_v1 = vld [vmem:[#allocation97_spill] sm:$0xff] }
 0x1cb   : >> { %4728 = vst [vmem:[#allocation39_spill] sm:$0xff] %v3706_v6  ;;  %v3712_v61 = vsel %vm4731_vm12, %v4729_v42, 0.0  ;;  %vm4735_vm14 = vcmp.lt.s32.totalorder %v4734_v23, %v4529_v41  ;;  %vm4739_vm0 = vcmp.lt.s32.totalorder %v4738_v1, %v4529_v41  ;;  %v4741_v46 = vld [vmem:[#allocation79_spill] sm:$0xff]  ;;  %v4742_v15 = vld [vmem:[#allocation98_spill] sm:$0xff]  ;;  %v4745_v55 = vld [vmem:[#allocation80_spill] sm:$0xff] }
 0x1cc   : >> { %4732 = vst [vmem:[#allocation40_spill] sm:$0xff] %v3712_v61  ;;  %v3718_v47 = vsel %vm4735_vm14, %v4733_v38, 0.0  ;;  %v3724_v45 = vsel %vm4739_vm0, %v4737_v53, 0.0  ;;  %vm4743_vm1 = vcmp.lt.s32.totalorder %v4742_v15, %v4529_v41  ;;  %v4746_v42 = vld [vmem:[#allocation99_spill] sm:$0xff]  ;;  %v4749_v23 = vld [vmem:[#allocation81_spill] sm:$0xff]  ;;  %v4752_v53 = vld [vmem:[#allocation82_spill] sm:$0xff] }
 0x1cd   : >> { %4736 = vst [vmem:[#allocation41_spill] sm:$0xff] %v3718_v47  ;;  %4740 = vst [vmem:[#allocation42_spill] sm:$0xff] %v3724_v45  ;;  %v3730_v6 = vsel %vm4743_vm1, %v4741_v46, 0.0  ;;  %vm4747_vm2 = vcmp.lt.s32.totalorder %v4746_v42, %v4529_v41  ;;  %v3742_v47 = vsel %vm1229_vm10, %v4749_v23, 0.0  ;;  %v4753_v1 = vld [vmem:[#allocation101_spill] sm:$0xff]  ;;  %v4756_v15 = vld [vmem:[#allocation83_spill] sm:$0xff] }
 0x1ce   : >> { %4744 = vst [vmem:[#allocation43_spill] sm:$0xff] %v3730_v6  ;;  %v3736_v61 = vsel %vm4747_vm2, %v4745_v55, 0.0  ;;  %4751 = vst [vmem:[#allocation45_spill] sm:$0xff] %v3742_v47  ;;  %vm4754_vm4 = vcmp.lt.s32.totalorder %v4753_v1, %v4529_v41  ;;  %v4757_v6 = vld [vmem:[#allocation102_spill] sm:$0xff]  ;;  %v4760_v42 = vld [vmem:[#allocation84_spill] sm:$0xff] }
 0x1cf   : >> { %4748 = vst [vmem:[#allocation44_spill] sm:$0xff] %v3736_v61  ;;  %v3750_v46 = vsel %vm4754_vm4, %v4752_v53, 0.0  ;;  %vm4758_vm5 = vcmp.lt.s32.totalorder %v4757_v6, %v4529_v41  ;;  %v4761_v61 = vld [vmem:[#allocation103_spill] sm:$0xff]  ;;  %v4764_v38 = vld [vmem:[#allocation85_spill] sm:$0xff]  ;;  %v4765_v47 = vld [vmem:[#allocation104_spill] sm:$0xff] }
 0x1d0   : >> { %4755 = vst [vmem:[#allocation46_spill] sm:$0xff] %v3750_v46  ;;  %v3756_v55 = vsel %vm4758_vm5, %v4756_v15, 0.0  ;;  %vm4762_vm10 = vcmp.lt.s32.totalorder %v4761_v61, %v4529_v41  ;;  %vm4766_vm6 = vcmp.lt.s32.totalorder %v4765_v47, %v4529_v41  ;;  %v4768_v53 = vld [vmem:[#allocation86_spill] sm:$0xff]  ;;  %v4769_v1 = vld [vmem:[#allocation105_spill] sm:$0xff]  ;;  %v4772_v6 = vld [vmem:[#allocation87_spill] sm:$0xff] }
 0x1d1   : >> { %4759 = vst [vmem:[#allocation47_spill] sm:$0xff] %v3756_v55  ;;  %v3762_v23 = vsel %vm4762_vm10, %v4760_v42, 0.0  ;;  %v3768_v45 = vsel %vm4766_vm6, %v4764_v38, 0.0  ;;  %vm4770_vm8 = vcmp.lt.s32.totalorder %v4769_v1, %v4529_v41  ;;  %v4773_v15 = vld [vmem:[#allocation106_spill] sm:$0xff]  ;;  %v4776_v61 = vld [vmem:[#allocation88_spill] sm:$0xff]  ;;  %v4777_v42 = vld [vmem:[#allocation107_spill] sm:$0xff] }
 0x1d2   : >> { %4763 = vst [vmem:[#allocation48_spill] sm:$0xff] %v3762_v23  ;;  %4767 = vst [vmem:[#allocation49_spill] sm:$0xff] %v3768_v45  ;;  %v3774_v46 = vsel %vm4770_vm8, %v4768_v53, 0.0  ;;  %vm4774_vm9 = vcmp.lt.s32.totalorder %v4773_v15, %v4529_v41  ;;  %vm4778_vm12 = vcmp.lt.s32.totalorder %v4777_v42, %v4529_v41  ;;  %v4780_v47 = vld [vmem:[#allocation89_spill] sm:$0xff]  ;;  %v4781_v38 = vld [vmem:[#allocation108_spill] sm:$0xff] }
 0x1d3   : >> { %4771 = vst [vmem:[#allocation50_spill] sm:$0xff] %v3774_v46  ;;  %v3780_v55 = vsel %vm4774_vm9, %v4772_v6, 0.0  ;;  %v3786_v23 = vsel %vm4778_vm12, %v4776_v61, 0.0  ;;  %vm4782_vm14 = vcmp.lt.s32.totalorder %v4781_v38, %v4529_v41  ;;  %v4784_v53 = vld [vmem:[#allocation90_spill] sm:$0xff]  ;;  %v4785_v1 = vld [vmem:[#allocation109_spill] sm:$0xff]  ;;  %v4788_v6 = vld [vmem:[#allocation91_spill] sm:$0xff] }
 0x1d4   : >> { %4775 = vst [vmem:[#allocation51_spill] sm:$0xff] %v3780_v55  ;;  %4779 = vst [vmem:[#allocation52_spill] sm:$0xff] %v3786_v23  ;;  %v3792_v45 = vsel %vm4782_vm14, %v4780_v47, 0.0  ;;  %vm4786_vm0 = vcmp.lt.s32.totalorder %v4785_v1, %v4529_v41  ;;  %v4789_v15 = vld [vmem:[#allocation110_spill] sm:$0xff]  ;;  %v4792_v61 = vld [vmem:[#allocation92_spill] sm:$0xff] }
 0x1d5   : >> { %4783 = vst [vmem:[#allocation53_spill] sm:$0xff] %v3792_v45  ;;  %v3798_v46 = vsel %vm4786_vm0, %v4784_v53, 0.0  ;;  %vm4790_vm1 = vcmp.lt.s32.totalorder %v4789_v15, %v4529_v41  ;;  %v4793_v23 = vld [vmem:[#allocation111_spill] sm:$0xff]  ;;  %v4796_v47 = vld [vmem:[#allocation93_spill] sm:$0xff]  ;;  %v4797_v45 = vld [vmem:[#allocation112_spill] sm:$0xff] }
 0x1d6   : >> { %4787 = vst [vmem:[#allocation54_spill] sm:$0xff] %v3798_v46  ;;  %v3804_v42 = vsel %vm4790_vm1, %v4788_v6, 0.0  ;;  %vm4794_vm2 = vcmp.lt.s32.totalorder %v4793_v23, %v4529_v41  ;;  %vm4798_vm4 = vcmp.lt.s32.totalorder %v4797_v45, %v4529_v41  ;;  %v4800_v53 = vld [vmem:[#allocation94_spill] sm:$0xff]  ;;  %v4801_v46 = vld [vmem:[#allocation113_spill] sm:$0xff]  ;;  %v4804_v6 = vld [vmem:[#allocation95_spill] sm:$0xff] }
 0x1d7   : >> { %4791 = vst [vmem:[#allocation55_spill] sm:$0xff] %v3804_v42  ;;  %v3810_v38 = vsel %vm4794_vm2, %v4792_v61, 0.0  ;;  %v3816_v1 = vsel %vm4798_vm4, %v4796_v47, 0.0  ;;  %vm4802_vm5 = vcmp.lt.s32.totalorder %v4801_v46, %v4529_v41  ;;  %v4805_v42 = vld [vmem:[#allocation114_spill] sm:$0xff]  ;;  %v4807_v23 = vld [vmem:[#allocation9_spill] sm:$0xff]  ;;  %v4810_v47 = vld [vmem:[#allocation116_spill] sm:$0xff] }
 0x1d8   : >> { %4795 = vst [vmem:[#allocation56_spill] sm:$0xff] %v3810_v38  ;;  %4799 = vst [vmem:[#allocation133_spill] sm:$0xff] %v3816_v1  ;;  %v3822_v15 = vsel %vm4802_vm5, %v4800_v53, 0.0  ;;  %vm4806_vm10 = vcmp.lt.s32.totalorder %v4805_v42, %v4529_v41  ;;  %v3834_v38 = vsel %vm1244_vm13, %v4807_v23, 0.0  ;;  %v4809_v45 = vld [vmem:[#allocation157_spill] sm:$0xff]  ;;  %vm4811_vm6 = vcmp.lt.s32.totalorder %v4810_v47, %v4529_v41  ;;  %v4812_v46 = vld [vmem:[#allocation158_spill] sm:$0xff] }
 0x1d9   : >> { %4803 = vst [vmem:[#allocation57_spill] sm:$0xff] %v3822_v15  ;;  %v3828_v55 = vsel %vm4806_vm10, %v4804_v6, 0.0  ;;  %v3840_v1 = vsel %vm4811_vm6, %v4809_v45, 0.0  ;;  %v4813_v53 = vld [vmem:[#allocation117_spill] sm:$0xff]  ;;  %v4815_v42 = vld [vmem:[#allocation118_spill] sm:$0xff]  ;;  %v4817_v23 = vld [vmem:[#allocation119_spill] sm:$0xff] }
 0x1da   : >> { %vm4814_vm8 = vcmp.lt.s32.totalorder %v4813_v53, %v4529_v41  ;;  %vm4816_vm9 = vcmp.lt.s32.totalorder %v4815_v42, %v4529_v41  ;;  %vm4818_vm13 = vcmp.lt.s32.totalorder %v4817_v23, %v4529_v41  ;;  %v4820_v45 = vld [vmem:[#allocation120_spill] sm:$0xff]  ;;  %v4823_v53 = vld [vmem:[#allocation121_spill] sm:$0xff] }
 0x1db   : >> { %v3846_v15 = vsel %vm4814_vm8, %v4812_v46, 0.0  ;;  %v3852_v6 = vsel %vm4816_vm9, %v3313_v30, 0.0  ;;  %v3858_v61 = vsel %vm4818_vm13, %v3315_v3, 0.0  ;;  %vm4821_vm12 = vcmp.lt.s32.totalorder %v4820_v45, %v4529_v41  ;;  %v4822_v46 = vld [vmem:[#allocation7_spill] sm:$0xff]  ;;  %v4825_v30 = vld [vmem:[#allocation122_spill] sm:$0xff] }
 0x1dc   : >> { %4819 = vst [vmem:[#allocation134_spill] sm:$0xff] %v3858_v61  ;;  %v3864_v47 = vsel %vm4821_vm12, %v3317_v31, 0.0  ;;  %vm4824_vm14 = vcmp.lt.s32.totalorder %v4823_v53, %v4529_v41  ;;  %vm4826_vm0 = vcmp.lt.s32.totalorder %v4825_v30, %v4529_v41  ;;  %v4828_v3 = vld [vmem:[#allocation123_spill] sm:$0xff]  ;;  %v4831_v31 = vld [vmem:[#allocation124_spill] sm:$0xff]  ;;  %v4834_v53 = vld [vmem:[#allocation125_spill] sm:$0xff] }
 0x1dd   : >> { %v3870_v42 = vsel %vm4824_vm14, %v4822_v46, 0.0  ;;  %v3876_v23 = vsel %vm4826_vm0, %v3324_v57, 0.0  ;;  %vm4829_vm1 = vcmp.lt.s32.totalorder %v4828_v3, %v4529_v41  ;;  %vm4832_vm2 = vcmp.lt.s32.totalorder %v4831_v31, %v4529_v41  ;;  %v627_v46 = vld [vmem:[%s2157_s27 + $0x28] sm:$0xff]  ;;  %v4837_v30 = vld [vmem:[#allocation126_spill] sm:$0xff]  ;;  %v4840_v3 = vld [vmem:[#allocation127_spill] sm:$0xff] }
 0x1de   : >> { %4827 = vst [vmem:[#allocation58_spill] sm:$0xff] %v3876_v23  ;;  %v3882_v61 = vsel %vm4829_vm1, %v3326_v40, 0.0  ;;  %v3888_v45 = vsel %vm4832_vm2, %v3328_v60, 0.0  ;;  %vm4835_vm4 = vcmp.lt.s32.totalorder %v4834_v53, %v4529_v41  ;;  %vm4838_vm5 = vcmp.lt.s32.totalorder %v4837_v30, %v4529_v41  ;;  %v4843_v31 = vld [vmem:[#allocation128_spill] sm:$0xff] }
 0x1df   : >> { %4830 = vst [vmem:[#allocation135_spill] sm:$0xff] %v3882_v61  ;;  %4833 = vst [vmem:[#allocation59_spill] sm:$0xff] %v3888_v45  ;;  %v3895_v57 = vsel %vm4835_vm4, %v3330_v20, 0.0  ;;  %v3901_v40 = vsel %vm4838_vm5, %v3333_v44, 0.0  ;;  %vm4841_vm10 = vcmp.lt.s32.totalorder %v4840_v3, %v4529_v41  ;;  %vm4844_vm6 = vcmp.lt.s32.totalorder %v4843_v31, %v4529_v41  ;;  %v4848_v44 = vld [vmem:[#allocation130_spill] sm:$0xff]  ;;  %v4856_v20 = vld [vmem:[#allocation8_spill] sm:$0xff] }
 0x1e0   : >> { %4836 = vst [vmem:[#allocation136_spill] sm:$0xff] %v3895_v57  ;;  %4839 = vst [vmem:[#allocation60_spill] sm:$0xff] %v3901_v40  ;;  %v3907_v60 = vsel %vm4841_vm10, %v3335_v13, 0.0  ;;  %v3913_v53 = vsel %vm4844_vm6, %v3337_v14, 0.0  ;;  %v3919_v57 = vsel %vm1258_vm11, %v3339_v5, 0.0  ;;  %vm4849_vm8 = vcmp.lt.s32.totalorder %v4848_v44, %v4529_v41  ;;  %v4851_v13 = vld [vmem:[#allocation154_spill] sm:$0xff] }
 0x1e1   : >> { %4842 = vst [vmem:[#allocation137_spill] sm:$0xff] %v3907_v60  ;;  %4845 = vst [vmem:[#allocation61_spill] sm:$0xff] %v3913_v53  ;;  %v3925_v30 = vsel %vm4849_vm8, %v3341_v32, 0.0  ;;  %vm4852_vm9 = vcmp.lt.s32.totalorder %v4851_v13, %v4529_v41  ;;  %v3937_v31 = vsel %vm1261_vm15, %v3349_v58, 0.0  ;;  %v628_v5 = vld [vmem:[%s2157_s27 + $0x30] sm:$0xff]  ;;  %v4864_v13 = vld [vmem:[#allocation159_spill] sm:$0xff]  ;;  %v1393_v58 = vadd.f32 %v3377_v33, %v3374_v12 }
 0x1e2   : >> { %4847 = vst [vmem:[#allocation138_spill] sm:$0xff] %v3919_v57  ;;  %4850 = vst [vmem:[#allocation62_spill] sm:$0xff] %v3925_v30  ;;  %v3931_v3 = vsel %vm4852_vm9, %v3347_v19, 0.0  ;;  %v4857_v57 = vld [vmem:[#allocation132_spill] sm:$0xff]  ;;  %v4860_v44 = vld [vmem:[#allocation13_spill] sm:$0xff]  ;;  %vm1142_vm15 = vcmp.lt.s32.totalorder %v3367_v29, %v4529_v41 }
 0x1e3   : >> { %4853 = vst [vmem:[#allocation139_spill] sm:$0xff] %v3931_v3  ;;  %4855 = vst [vmem:[#allocation63_spill] sm:$0xff] %v3937_v31  ;;  %vm4858_vm11 = vcmp.lt.s32.totalorder %v4857_v57, %v4529_v41  ;;  %v4861_v30 = vld [vmem:[#allocation155_spill] sm:$0xff]  ;;  %v4865_v3 = vld [vmem:[#allocation156_spill] sm:$0xff]  ;;  %v755_v31 = vmul.f32 %v627_v46, %v627_v46 }
 0x1e4   : >> { %v3944_v32 = vsel %vm4858_vm11, %v4856_v20, 0.0  ;;  %vm4862_vm13 = vcmp.lt.s32.totalorder %v4861_v30, %v4529_v41  ;;  %vm4866_vm12 = vcmp.lt.s32.totalorder %v4865_v3, %v4529_v41  ;;  %v4868_v53 = vld [vmem:[#allocation15_spill] sm:$0xff]  ;;  %v629_v20 = vld [vmem:[%s2157_s27 + $0x38] sm:$0xff]  ;;  %v1394_v3 = vadd.f32 %v1393_v58, %v3380_v34  ;;  %v632_v61 = vld [vmem:[%s2157_s27 + $0x50] sm:$0xff] }
 0x1e5   : >> { %4859 = vst [vmem:[#allocation140_spill] sm:$0xff] %v3944_v32  ;;  %v3950_v19 = vsel %vm4862_vm13, %v4860_v44, 0.0  ;;  %v3956_v14 = vsel %vm4866_vm12, %v4864_v13, 0.0  ;;  %v1268_v57 = vsel %vm1140_vm7, %v4868_v53, 0.0  ;;  %v4869_v30 = vld [vmem:[#allocation6_spill] sm:$0xff]  ;;  %v756_v13 = vmul.f32 %v628_v5, %v628_v5  ;;  %v630_v12 = vld [vmem:[%s2157_s27 + $0x40] sm:$0xff] }
 0x1e6   : >> { %4863 = vst [vmem:[#allocation64_spill] sm:$0xff] %v3950_v19  ;;  %4867 = vst [vmem:[#allocation141_spill] sm:$0xff] %v3956_v14  ;;  %v888_v44 = vadd.s32 72, %v4869_v30  ;;  %v4870_v19 = vld [vmem:[#allocation20_spill] sm:$0xff]  ;;  %v4871_v33 = vld [vmem:[#allocation18_spill] sm:$0xff]  ;;  %v889_v46 = vadd.s32 80, %v4869_v30  ;;  %v1395_v60 = vadd.f32 %v1394_v3, %v1268_v57  ;;  %v757_v29 = vmul.f32 %v629_v20, %v629_v20 }
 0x1e7   : >> { %v1015_v32 = vadd.s32 %v2166_v17, %v4870_v19  ;;  %v1269_v4 = vsel %vm1141_vm3, %v4871_v33, 0.0  ;;  %v4872_v53 = vld [vmem:[#allocation21_spill] sm:$0xff]  ;;  %v4873_v19 = vld [vmem:[#allocation12_spill] sm:$0xff]  ;;  %v1270_v34 = vsel %vm1142_vm15, %v755_v31, 0.0  ;;  %v890_v58 = vadd.s32 88, %v4869_v30  ;;  %v633_v3 = vld [vmem:[%s2157_s27 + $0x58] sm:$0xff] }
 0x1e8   : >> { %v1016_v14 = vadd.s32 %v2166_v17, %v4872_v53  ;;  %vm1143_vm7 = vcmp.lt.s32.totalorder %v4873_v19, %v4529_v41  ;;  %v631_v5 = vld [vmem:[%s2157_s27 + $0x48] sm:$0xff]  ;;  %v1017_v10 = vadd.s32 %v2166_v17, %v888_v44  ;;  %v1396_v33 = vadd.f32 %v1395_v60, %v1269_v4 }
 0x1e9   : >> { %vm1144_vm3 = vcmp.lt.s32.totalorder %v1015_v32, %v4529_v41  ;;  %v758_v40 = vmul.f32 %v630_v12, %v630_v12  ;;  %v1271_v45 = vsel %vm1143_vm7, %v756_v13, 0.0  ;;  %v891_v53 = vadd.s32 96, %v4869_v30  ;;  %v634_v12 = vld [vmem:[%s2157_s27 + $0x60] sm:$0xff] }
 0x1ea   : >> { %v1018_v19 = vadd.s32 %v2166_v17, %v889_v46  ;;  %vm1145_vm14 = vcmp.lt.s32.totalorder %v1016_v14, %v4529_v41  ;;  %v1397_v57 = vadd.f32 %v1396_v33, %v1270_v34  ;;  %v759_v31 = vmul.f32 %v631_v5, %v631_v5  ;;  %v635_v33 = vld [vmem:[%s2157_s27 + $0x68] sm:$0xff] }
 0x1eb   : >> { %v1272_v20 = vsel %vm1144_vm3, %v757_v29, 0.0  ;;  %v892_v44 = vadd.s32 104, %v4869_v30  ;;  %v1019_v32 = vadd.s32 %v2166_v17, %v890_v58  ;;  %vm1146_vm0 = vcmp.lt.s32.totalorder %v1017_v10, %v4529_v41 }
 0x1ec   : >> { %v1398_v60 = vadd.f32 %v1397_v57, %v1271_v45  ;;  %v760_v13 = vmul.f32 %v632_v61, %v632_v61  ;;  %v1273_v4 = vsel %vm1145_vm14, %v758_v40, 0.0  ;;  %v893_v46 = vadd.s32 112, %v4869_v30  ;;  %v636_v57 = vld [vmem:[%s2157_s27 + $0x70] sm:$0xff] }
 0x1ed   : >> { %v1020_v14 = vadd.s32 %v2166_v17, %v891_v53  ;;  %vm1147_vm1 = vcmp.lt.s32.totalorder %v1018_v19, %v4529_v41  ;;  %v761_v29 = vmul.f32 %v633_v3, %v633_v3  ;;  %v1274_v5 = vsel %vm1146_vm0, %v759_v31, 0.0 }
 0x1ee   : >> { %v1399_v34 = vadd.f32 %v1398_v60, %v1272_v20  ;;  %v894_v58 = vadd.s32 120, %v4869_v30  ;;  %v1021_v10 = vadd.s32 %v2166_v17, %v892_v44  ;;  %vm1148_vm2 = vcmp.lt.s32.totalorder %v1019_v32, %v4529_v41  ;;  %v637_v60 = vld [vmem:[%s2157_s27 + $0x78] sm:$0xff] }
 0x1ef   : >> { %v762_v45 = vmul.f32 %v634_v12, %v634_v12  ;;  %v1275_v40 = vsel %vm1147_vm1, %v760_v13, 0.0  ;;  %v895_v53 = vadd.s32 128, %v4869_v30  ;;  %v1022_v19 = vadd.s32 %v2166_v17, %v893_v46 }
 0x1f0   : >> { %v1400_v61 = vadd.f32 %v1399_v34, %v1273_v4  ;;  %vm1149_vm4 = vcmp.lt.s32.totalorder %v1020_v14, %v4529_v41  ;;  %v763_v31 = vmul.f32 %v635_v33, %v635_v33  ;;  %v1276_v3 = vsel %vm1148_vm2, %v761_v29, 0.0  ;;  %v638_v34 = vld [vmem:[%s2157_s27 + $0x80] sm:$0xff] }
 0x1f1   : >> { %v896_v44 = vadd.s32 136, %v4869_v30  ;;  %v1023_v32 = vadd.s32 %v2166_v17, %v894_v58  ;;  %vm1150_vm5 = vcmp.lt.s32.totalorder %v1021_v10, %v4529_v41  ;;  %v764_v13 = vmul.f32 %v636_v57, %v636_v57 }
 0x1f2   : >> { %v1401_v20 = vadd.f32 %v1400_v61, %v1274_v5  ;;  %v1277_v12 = vsel %vm1149_vm4, %v762_v45, 0.0  ;;  %v897_v46 = vadd.s32 144, %v4869_v30  ;;  %v1024_v14 = vadd.s32 %v2166_v17, %v895_v53  ;;  %v639_v61 = vld [vmem:[%s2157_s27 + $0x88] sm:$0xff] }
 0x1f3   : >> { %vm1151_vm10 = vcmp.lt.s32.totalorder %v1022_v19, %v4529_v41  ;;  %v765_v29 = vmul.f32 %v637_v60, %v637_v60  ;;  %v1278_v33 = vsel %vm1150_vm5, %v763_v31, 0.0  ;;  %v898_v58 = vadd.s32 152, %v4869_v30 }
 0x1f4   : >> { %v1402_v4 = vadd.f32 %v1401_v20, %v1275_v40  ;;  %v1025_v10 = vadd.s32 %v2166_v17, %v896_v44  ;;  %vm1152_vm6 = vcmp.lt.s32.totalorder %v1023_v32, %v4529_v41  ;;  %v766_v45 = vmul.f32 %v638_v34, %v638_v34  ;;  %v640_v20 = vld [vmem:[%s2157_s27 + $0x90] sm:$0xff] }
 0x1f5   : >> { %v1279_v57 = vsel %vm1151_vm10, %v764_v13, 0.0  ;;  %v899_v53 = vadd.s32 160, %v4869_v30  ;;  %v1026_v19 = vadd.s32 %v2166_v17, %v897_v46  ;;  %vm1153_vm8 = vcmp.lt.s32.totalorder %v1024_v14, %v4529_v41 }
 0x1f6   : >> { %v1403_v5 = vadd.f32 %v1402_v4, %v1276_v3  ;;  %v767_v31 = vmul.f32 %v639_v61, %v639_v61  ;;  %v1280_v60 = vsel %vm1152_vm6, %v765_v29, 0.0  ;;  %v641_v4 = vld [vmem:[%s2157_s27 + $0x98] sm:$0xff]  ;;  %v900_v44 = vadd.s32 168, %v4869_v30 }
 0x1f7   : >> { %v1027_v32 = vadd.s32 %v2166_v17, %v898_v58  ;;  %vm1154_vm9 = vcmp.lt.s32.totalorder %v1025_v10, %v4529_v41  ;;  %v768_v13 = vmul.f32 %v640_v20, %v640_v20  ;;  %v1281_v34 = vsel %vm1153_vm8, %v766_v45, 0.0 }
 0x1f8   : >> { %v1404_v40 = vadd.f32 %v1403_v5, %v1277_v12  ;;  %v642_v5 = vld [vmem:[%s2157_s27 + $0xa0] sm:$0xff]  ;;  %v901_v46 = vadd.s32 176, %v4869_v30  ;;  %v1028_v14 = vadd.s32 %v2166_v17, %v899_v53  ;;  %vm1155_vm11 = vcmp.lt.s32.totalorder %v1026_v19, %v4529_v41 }
 0x1f9   : >> { %v769_v29 = vmul.f32 %v641_v4, %v641_v4  ;;  %v1282_v61 = vsel %vm1154_vm9, %v767_v31, 0.0  ;;  %v902_v58 = vadd.s32 184, %v4869_v30  ;;  %v1029_v10 = vadd.s32 %v2166_v17, %v900_v44 }
 0x1fa   : >> { %v1405_v3 = vadd.f32 %v1404_v40, %v1278_v33  ;;  %v643_v40 = vld [vmem:[%s2157_s27 + $0xa8] sm:$0xff]  ;;  %vm1156_vm13 = vcmp.lt.s32.totalorder %v1027_v32, %v4529_v41  ;;  %v770_v45 = vmul.f32 %v642_v5, %v642_v5  ;;  %v1283_v20 = vsel %vm1155_vm11, %v768_v13, 0.0 }
 0x1fb   : >> { %v903_v53 = vadd.s32 192, %v4869_v30  ;;  %v1030_v19 = vadd.s32 %v2166_v17, %v901_v46  ;;  %vm1157_vm12 = vcmp.lt.s32.totalorder %v1028_v14, %v4529_v41  ;;  %v771_v31 = vmul.f32 %v643_v40, %v643_v40 }
 0x1fc   : >> { %v1406_v12 = vadd.f32 %v1405_v3, %v1279_v57  ;;  %v644_v3 = vld [vmem:[%s2157_s27 + $0xb0] sm:$0xff]  ;;  %v1284_v4 = vsel %vm1156_vm13, %v769_v29, 0.0  ;;  %v904_v44 = vadd.s32 200, %v4869_v30  ;;  %v1031_v32 = vadd.s32 %v2166_v17, %v902_v58 }
 0x1fd   : >> { %vm1158_vm15 = vcmp.lt.s32.totalorder %v1029_v10, %v4529_v41  ;;  %v772_v13 = vmul.f32 %v644_v3, %v644_v3  ;;  %v1285_v5 = vsel %vm1157_vm12, %v770_v45, 0.0  ;;  %v905_v46 = vadd.s32 208, %v4869_v30 }
 0x1fe   : >> { %v1407_v33 = vadd.f32 %v1406_v12, %v1280_v60  ;;  %v645_v12 = vld [vmem:[%s2157_s27 + $0xb8] sm:$0xff]  ;;  %v1032_v14 = vadd.s32 %v2166_v17, %v903_v53  ;;  %vm1159_vm7 = vcmp.lt.s32.totalorder %v1030_v19, %v4529_v41  ;;  %v1286_v40 = vsel %vm1158_vm15, %v771_v31, 0.0 }
 0x1ff   : >> { %v773_v29 = vmul.f32 %v645_v12, %v645_v12  ;;  %v906_v58 = vadd.s32 216, %v4869_v30  ;;  %v1033_v10 = vadd.s32 %v2166_v17, %v904_v44  ;;  %vm1160_vm3 = vcmp.lt.s32.totalorder %v1031_v32, %v4529_v41 }
 0x200   : >> { %v1408_v57 = vadd.f32 %v1407_v33, %v1281_v34  ;;  %v646_v33 = vld [vmem:[%s2157_s27 + $0xc0] sm:$0xff]  ;;  %v1287_v3 = vsel %vm1159_vm7, %v772_v13, 0.0  ;;  %v907_v53 = vadd.s32 224, %v4869_v30  ;;  %v1034_v19 = vadd.s32 %v2166_v17, %v905_v46 }
 0x201   : >> { %v774_v45 = vmul.f32 %v646_v33, %v646_v33  ;;  %vm1161_vm14 = vcmp.lt.s32.totalorder %v1032_v14, %v4529_v41  ;;  %v1288_v12 = vsel %vm1160_vm3, %v773_v29, 0.0  ;;  %v908_v44 = vadd.s32 232, %v4869_v30 }
 0x202   : >> { %v1409_v60 = vadd.f32 %v1408_v57, %v1282_v61  ;;  %v647_v57 = vld [vmem:[%s2157_s27 + $0xc8] sm:$0xff]  ;;  %v1035_v32 = vadd.s32 %v2166_v17, %v906_v58  ;;  %vm1162_vm0 = vcmp.lt.s32.totalorder %v1033_v10, %v4529_v41  ;;  %v909_v46 = vadd.s32 240, %v4869_v30 }
 0x203   : >> { %v775_v31 = vmul.f32 %v647_v57, %v647_v57  ;;  %v1289_v33 = vsel %vm1161_vm14, %v774_v45, 0.0  ;;  %v1036_v14 = vadd.s32 %v2166_v17, %v907_v53  ;;  %vm1163_vm1 = vcmp.lt.s32.totalorder %v1034_v19, %v4529_v41 }
 0x204   : >> { %v1410_v34 = vadd.f32 %v1409_v60, %v1283_v20  ;;  %v648_v60 = vld [vmem:[%s2157_s27 + $0xd0] sm:$0xff]  ;;  %v910_v58 = vadd.s32 248, %v4869_v30  ;;  %v1037_v10 = vadd.s32 %v2166_v17, %v908_v44  ;;  %vm1164_vm2 = vcmp.lt.s32.totalorder %v1035_v32, %v4529_v41 }
 0x205   : >> { %v776_v13 = vmul.f32 %v648_v60, %v648_v60  ;;  %v1290_v57 = vsel %vm1162_vm0, %v775_v31, 0.0  ;;  %v911_v53 = vadd.s32 256, %v4869_v30  ;;  %v1038_v19 = vadd.s32 %v2166_v17, %v909_v46 }
 0x206   : >> { %v1411_v61 = vadd.f32 %v1410_v34, %v1284_v4  ;;  %v649_v34 = vld [vmem:[%s2157_s27 + $0xd8] sm:$0xff]  ;;  %vm1165_vm4 = vcmp.lt.s32.totalorder %v1036_v14, %v4529_v41  ;;  %v1039_v23 = vadd.s32 %v2166_v17, %v910_v58  ;;  %vm1166_vm5 = vcmp.lt.s32.totalorder %v1037_v10, %v4529_v41 }
 0x207   : >> { %v777_v29 = vmul.f32 %v649_v34, %v649_v34  ;;  %v1291_v60 = vsel %vm1163_vm1, %v776_v13, 0.0  ;;  %v1040_v13 = vadd.s32 %v2166_v17, %v911_v53  ;;  %vm1167_vm10 = vcmp.lt.s32.totalorder %v1038_v19, %v4529_v41 }
 0x208   : >> { %v1412_v20 = vadd.f32 %v1411_v61, %v1285_v5  ;;  %v650_v61 = vld [vmem:[%s2157_s27 + $0xe0] sm:$0xff]  ;;  %vm1168_vm6 = vcmp.lt.s32.totalorder %v1039_v23, %v4529_v41 }
 0x209   : >> { %v778_v45 = vmul.f32 %v650_v61, %v650_v61  ;;  %v1292_v34 = vsel %vm1164_vm2, %v777_v29, 0.0  ;;  %v654_v61 = vld [vmem:[%s2157_s27 + $0x100] sm:$0xff]  ;;  %vm1169_vm8 = vcmp.lt.s32.totalorder %v1040_v13, %v4529_v41 }
 0x20a   : >> { %v1413_v4 = vadd.f32 %v1412_v20, %v1286_v40  ;;  %v651_v20 = vld [vmem:[%s2157_s27 + $0xe8] sm:$0xff]  ;;  %v782_v29 = vmul.f32 %v654_v61, %v654_v61  ;;  %v4877_v61 = vld [vmem:[#allocation10_spill] sm:$0xff]  ;;  %v4878_v13 = vld [vmem:[#allocation11_spill] sm:$0xff] }
 0x20b   : >> { %v779_v31 = vmul.f32 %v651_v20, %v651_v20 }
 0x20c   : >> { %v1414_v5 = vadd.f32 %v1413_v4, %v1287_v3  ;;  %v652_v4 = vld [vmem:[%s2157_s27 + $0xf0] sm:$0xff] }
 0x20d   : >> { %v780_v32 = vmul.f32 %v652_v4, %v652_v4 }
 0x20e   : >> { %v1415_v40 = vadd.f32 %v1414_v5, %v1288_v12  ;;  %v653_v5 = vld [vmem:[%s2157_s27 + $0xf8] sm:$0xff] }
 0x20f   : >> { %v781_v46 = vmul.f32 %v653_v5, %v653_v5 }
 0x210   : >> { %v1416_v3 = vadd.f32 %v1415_v40, %v1289_v33  ;;  %v1293_v33 = vsel %vm1165_vm4, %v778_v45, 0.0  ;;  %v1294_v40 = vsel %vm1166_vm5, %v779_v31, 0.0 }
 0x211   : >> { %v1296_v58 = vsel %vm1168_vm6, %v781_v46, 0.0  ;;  %v4880_v46 = vld [vmem:[#allocation22_spill] sm:$0xff] }
 0x212   : >> { %v1417_v12 = vadd.f32 %v1416_v3, %v1290_v57  ;;  %v1295_v57 = vsel %vm1167_vm10, %v780_v32, 0.0  ;;  %v1297_v3 = vsel %vm1169_vm8, %v782_v29, 0.0  ;;  %v4875_v32 = vld [vmem:[#allocation17_spill] sm:$0xff] }
 0x213   : >> { %v4883_v29 = vld [vmem:[#allocation25_spill] sm:$0xff] }
 0x214   : >> { %v1418_v44 = vadd.f32 %v1417_v12, %v1291_v60 }
 0x216   : >> { %v1419_v30 = vadd.f32 %v1418_v44, %v1292_v34  ;;  %v4874_v44 = vld [vmem:[#allocation16_spill] sm:$0xff] }
 0x218   : >> { %v1420_v14 = vadd.f32 %v1419_v30, %v1293_v33  ;;  %v4876_v33 = vld [vmem:[#allocation19_spill] sm:$0xff]  ;;  %v4879_v30 = vld [vmem:[#allocation14_spill] sm:$0xff] }
 0x21a   : >> { %v1421_v20 = vadd.f32 %v1420_v14, %v1294_v40  ;;  %v4881_v40 = vld [vmem:[#allocation23_spill] sm:$0xff]  ;;  %v4882_v14 = vld [vmem:[#allocation24_spill] sm:$0xff] }
 0x21c   : >> { %v1422_v10 = vadd.f32 %v1421_v20, %v1295_v57  ;;  %v4884_v57 = vld [vmem:[#allocation26_spill] sm:$0xff] }
 0x21e   : >> { %v1423_v45 = vadd.f32 %v1422_v10, %v1296_v58  ;;  %v4885_v58 = vld [vmem:[#allocation27_spill] sm:$0xff] }
 0x220   : >> { %v1424_v60 = vadd.f32 %v1423_v45, %v1297_v3  ;;  %v4886_v3 = vld [vmem:[#allocation28_spill] sm:$0xff] }
 0x222   : >> { %v1425_v17 = vadd.f32 %v1424_v60, %v3386_v36  ;;  %v4887_v60 = vld [vmem:[#allocation29_spill] sm:$0xff] }
 0x224   : >> { %v1426_v4 = vadd.f32 %v1425_v17, %v3392_v22 }
 0x226   : >> { %v1427_v53 = vadd.f32 %v1426_v4, %v3398_v49  ;;  %v4888_v4 = vld [vmem:[#allocation30_spill] sm:$0xff] }
 0x228   : >> { %v1428_v19 = vadd.f32 %v1427_v53, %v3404_v59 }
 0x22a   : >> { %v1429_v23 = vadd.f32 %v1428_v19, %v3410_v27  ;;  %v4889_v19 = vld [vmem:[#allocation31_spill] sm:$0xff] }
 0x22c   : >> { %v1430_v12 = vadd.f32 %v1429_v23, %v3416_v50 }
 0x22e   : >> { %v1431_v41 = vadd.f32 %v1430_v12, %v3422_v21  ;;  %v4890_v12 = vld [vmem:[#allocation32_spill] sm:$0xff] }
 0x230   : >> { %v1432_v31 = vadd.f32 %v1431_v41, %v3428_v2 }
 0x232   : >> { %v1433_v34 = vadd.f32 %v1432_v31, %v3434_v26  ;;  %v4891_v31 = vld [vmem:[#allocation33_spill] sm:$0xff] }
 0x234   : >> { %v1434_v5 = vadd.f32 %v1433_v34, %v3440_v28 }
 0x236   : >> { %v1435_v36 = vadd.f32 %v1434_v5, %v3446_v43  ;;  %v4892_v5 = vld [vmem:[#allocation34_spill] sm:$0xff] }
 0x238   : >> { %v1436_v22 = vadd.f32 %v1435_v36, %v3452_v35 }
 0x23a   : >> { %v1437_v49 = vadd.f32 %v1436_v22, %v3458_v11  ;;  %v4893_v22 = vld [vmem:[#allocation35_spill] sm:$0xff] }
 0x23c   : >> { %v1438_v59 = vadd.f32 %v1437_v49, %v3464_v9 }
 0x23e   : >> { %v1439_v27 = vadd.f32 %v1438_v59, %v3470_v39  ;;  %v4894_v59 = vld [vmem:[#allocation36_spill] sm:$0xff] }
 0x240   : >> { %v1440_v50 = vadd.f32 %v1439_v27, %v3476_v24 }
 0x242   : >> { %v1441_v21 = vadd.f32 %v1440_v50, %v3482_v63  ;;  %v4895_v50 = vld [vmem:[#allocation37_spill] sm:$0xff] }
 0x244   : >> { %v1442_v2 = vadd.f32 %v1441_v21, %v3488_v62 }
 0x246   : >> { %v1443_v26 = vadd.f32 %v1442_v2, %v3494_v8  ;;  %v4896_v2 = vld [vmem:[#allocation38_spill] sm:$0xff] }
 0x248   : >> { %v1444_v28 = vadd.f32 %v1443_v26, %v3500_v48 }
 0x24a   : >> { %v1445_v43 = vadd.f32 %v1444_v28, %v3506_v16  ;;  %v4897_v28 = vld [vmem:[#allocation39_spill] sm:$0xff] }
 0x24c   : >> { %v1446_v35 = vadd.f32 %v1445_v43, %v3512_v52 }
 0x24e   : >> { %v1447_v11 = vadd.f32 %v1446_v35, %v3518_v18  ;;  %v4898_v35 = vld [vmem:[#allocation40_spill] sm:$0xff] }
 0x250   : >> { %v1448_v9 = vadd.f32 %v1447_v11, %v3524_v25 }
 0x252   : >> { %v1449_v39 = vadd.f32 %v1448_v9, %v3530_v51  ;;  %v4899_v9 = vld [vmem:[#allocation41_spill] sm:$0xff] }
 0x254   : >> { %v1450_v24 = vadd.f32 %v1449_v39, %v3536_v37 }
 0x256   : >> { %v1451_v63 = vadd.f32 %v1450_v24, %v3542_v7  ;;  %v4900_v24 = vld [vmem:[#allocation42_spill] sm:$0xff] }
 0x258   : >> { %v1452_v62 = vadd.f32 %v1451_v63, %v3548_v0 }
 0x25a   : >> { %v1453_v8 = vadd.f32 %v1452_v62, %v3554_v54  ;;  %v4901_v62 = vld [vmem:[#allocation43_spill] sm:$0xff] }
 0x25c   : >> { %v1454_v48 = vadd.f32 %v1453_v8, %v3560_v56 }
 0x25e   : >> { %v1455_v16 = vadd.f32 %v1454_v48, %v4874_v44  ;;  %v4902_v48 = vld [vmem:[#allocation44_spill] sm:$0xff] }
 0x260   : >> { %v1456_v52 = vadd.f32 %v1455_v16, %v4875_v32  ;;  %v4903_v16 = vld [vmem:[#allocation45_spill] sm:$0xff] }
 0x262   : >> { %v1457_v18 = vadd.f32 %v1456_v52, %v4876_v33  ;;  %v4904_v52 = vld [vmem:[#allocation46_spill] sm:$0xff] }
 0x264   : >> { %v1458_v25 = vadd.f32 %v1457_v18, %v4877_v61  ;;  %v4905_v18 = vld [vmem:[#allocation47_spill] sm:$0xff] }
 0x266   : >> { %v1459_v51 = vadd.f32 %v1458_v25, %v4878_v13  ;;  %v4906_v25 = vld [vmem:[#allocation48_spill] sm:$0xff] }
 0x268   : >> { %v1460_v37 = vadd.f32 %v1459_v51, %v4879_v30  ;;  %v4907_v51 = vld [vmem:[#allocation49_spill] sm:$0xff] }
 0x26a   : >> { %v1461_v7 = vadd.f32 %v1460_v37, %v4880_v46  ;;  %v4908_v37 = vld [vmem:[#allocation50_spill] sm:$0xff] }
 0x26c   : >> { %v1462_v0 = vadd.f32 %v1461_v7, %v4881_v40  ;;  %v4909_v7 = vld [vmem:[#allocation51_spill] sm:$0xff] }
 0x26e   : >> { %v1463_v54 = vadd.f32 %v1462_v0, %v4882_v14  ;;  %v4910_v0 = vld [vmem:[#allocation52_spill] sm:$0xff] }
 0x270   : >> { %v1464_v56 = vadd.f32 %v1463_v54, %v4883_v29  ;;  %v4911_v54 = vld [vmem:[#allocation53_spill] sm:$0xff] }
 0x272   : >> { %v1465_v20 = vadd.f32 %v1464_v56, %v4884_v57  ;;  %v4912_v56 = vld [vmem:[#allocation54_spill] sm:$0xff] }
 0x274   : >> { %v1466_v10 = vadd.f32 %v1465_v20, %v4885_v58  ;;  %v4913_v20 = vld [vmem:[#allocation55_spill] sm:$0xff] }
 0x276   : >> { %v1467_v45 = vadd.f32 %v1466_v10, %v4886_v3  ;;  %v4914_v10 = vld [vmem:[#allocation56_spill] sm:$0xff] }
 0x278   : >> { %v1468_v17 = vadd.f32 %v1467_v45, %v4887_v60  ;;  %v4915_v45 = vld [vmem:[#allocation133_spill] sm:$0xff] }
 0x27a   : >> { %v1469_v53 = vadd.f32 %v1468_v17, %v4888_v4  ;;  %v4916_v17 = vld [vmem:[#allocation57_spill] sm:$0xff] }
 0x27c   : >> { %v1470_v23 = vadd.f32 %v1469_v53, %v4889_v19 }
 0x27e   : >> { %v1471_v41 = vadd.f32 %v1470_v23, %v4890_v12 }
 0x280   : >> { %v1472_v34 = vadd.f32 %v1471_v41, %v4891_v31  ;;  %v4917_v31 = vld [vmem:[#allocation134_spill] sm:$0xff] }
 0x282   : >> { %v1473_v36 = vadd.f32 %v1472_v34, %v4892_v5 }
 0x284   : >> { %v1474_v49 = vadd.f32 %v1473_v36, %v4893_v22  ;;  %v4918_v22 = vld [vmem:[#allocation58_spill] sm:$0xff] }
 0x286   : >> { %v1475_v27 = vadd.f32 %v1474_v49, %v4894_v59  ;;  %v4919_v59 = vld [vmem:[#allocation135_spill] sm:$0xff] }
 0x288   : >> { %v1476_v21 = vadd.f32 %v1475_v27, %v4895_v50  ;;  %v4920_v50 = vld [vmem:[#allocation59_spill] sm:$0xff] }
 0x28a   : >> { %v1477_v26 = vadd.f32 %v1476_v21, %v4896_v2  ;;  %v4921_v21 = vld [vmem:[#allocation136_spill] sm:$0xff] }
 0x28b   : >> { %v4922_v2 = vld [vmem:[#allocation60_spill] sm:$0xff] }
 0x28c   : >> { %v1478_v43 = vadd.f32 %v1477_v26, %v4897_v28  ;;  %v4923_v26 = vld [vmem:[#allocation137_spill] sm:$0xff] }
 0x28d   : >> { %v4924_v28 = vld [vmem:[#allocation61_spill] sm:$0xff] }
 0x28e   : >> { %v1479_v11 = vadd.f32 %v1478_v43, %v4898_v35  ;;  %v4925_v43 = vld [vmem:[#allocation138_spill] sm:$0xff] }
 0x290   : >> { %v1480_v39 = vadd.f32 %v1479_v11, %v4899_v9  ;;  %v4926_v11 = vld [vmem:[#allocation62_spill] sm:$0xff]  ;;  %v4927_v9 = vld [vmem:[#allocation139_spill] sm:$0xff] }
 0x292   : >> { %v1481_v63 = vadd.f32 %v1480_v39, %v4900_v24  ;;  %v4928_v39 = vld [vmem:[#allocation63_spill] sm:$0xff] }
 0x294   : >> { %v1482_v8 = vadd.f32 %v1481_v63, %v4901_v62  ;;  %v4929_v63 = vld [vmem:[#allocation140_spill] sm:$0xff] }
 0x296   : >> { %v1483_v44 = vadd.f32 %v1482_v8, %v4902_v48  ;;  %v4930_v8 = vld [vmem:[#allocation64_spill] sm:$0xff] }
 0x298   : >> { %v1484_v32 = vadd.f32 %v1483_v44, %v4903_v16  ;;  %v4931_v44 = vld [vmem:[#allocation141_spill] sm:$0xff] }
 0x29a   : >> { %v1485_v33 = vadd.f32 %v1484_v32, %v4904_v52  ;;  %v4932_v32 = vld [vmem:[#allocation5_spill] sm:$0xff] }
 0x29c   : >> { %v1486_v61 = vadd.f32 %v1485_v33, %v4905_v18  ;;  %v1521_v33 = vld [vmem:[%s1985_s5] sm:$0xff] (%p615_p5) }
 0x29e   : >> { %v1487_v13 = vadd.f32 %v1486_v61, %v4906_v25 }
 0x2a0   : >> { %v1488_v30 = vadd.f32 %v1487_v13, %v4907_v51 }
 0x2a2   : >> { %v1489_v46 = vadd.f32 %v1488_v30, %v4908_v37 }
 0x2a4   : >> { %v1490_v40 = vadd.f32 %v1489_v46, %v4909_v7 }
 0x2a6   : >> { %v1491_v14 = vadd.f32 %v1490_v40, %v4910_v0 }
 0x2a8   : >> { %v1492_v29 = vadd.f32 %v1491_v14, %v4911_v54 }
 0x2aa   : >> { %v1493_v57 = vadd.f32 %v1492_v29, %v4912_v56 }
 0x2ac   : >> { %v1494_v58 = vadd.f32 %v1493_v57, %v4913_v20 }
 0x2ae   : >> { %v1495_v3 = vadd.f32 %v1494_v58, %v4914_v10 }
 0x2b0   : >> { %v1496_v60 = vadd.f32 %v1495_v3, %v4915_v45 }
 0x2b2   : >> { %v1497_v4 = vadd.f32 %v1496_v60, %v4916_v17 }
 0x2b4   : >> { %v1498_v53 = vadd.f32 %v1497_v4, %v3828_v55 }
 0x2b6   : >> { %v1499_v19 = vadd.f32 %v1498_v53, %v3834_v38 }
 0x2b8   : >> { %v1500_v23 = vadd.f32 %v1499_v19, %v3840_v1 }
 0x2ba   : >> { %v1501_v12 = vadd.f32 %v1500_v23, %v3846_v15 }
 0x2bc   : >> { %v1502_v41 = vadd.f32 %v1501_v12, %v3852_v6 }
 0x2be   : >> { %v1503_v34 = vadd.f32 %v1502_v41, %v4917_v31 }
 0x2c0   : >> { %v1504_v5 = vadd.f32 %v1503_v34, %v3864_v47 }
 0x2c2   : >> { %v1505_v36 = vadd.f32 %v1504_v5, %v3870_v42 }
 0x2c4   : >> { %v1506_v49 = vadd.f32 %v1505_v36, %v4918_v22 }
 0x2c6   : >> { %v1507_v27 = vadd.f32 %v1506_v49, %v4919_v59 }
 0x2c8   : >> { %v1508_v55 = vadd.f32 %v1507_v27, %v4920_v50 }
 0x2ca   : >> { %v1509_v38 = vadd.f32 %v1508_v55, %v4921_v21 }
 0x2cc   : >> { %v1510_v1 = vadd.f32 %v1509_v38, %v4922_v2 }
 0x2ce   : >> { %v1511_v15 = vadd.f32 %v1510_v1, %v4923_v26 }
 0x2d0   : >> { %v1512_v6 = vadd.f32 %v1511_v15, %v4924_v28 }
 0x2d2   : >> { %v1513_v35 = vadd.f32 %v1512_v6, %v4925_v43 }
 0x2d4   : >> { %v1514_v47 = vadd.f32 %v1513_v35, %v4926_v11 }
 0x2d6   : >> { %v1515_v42 = vadd.f32 %v1514_v47, %v4927_v9 }
 0x2d8   : >> { %v1516_v24 = vadd.f32 %v1515_v42, %v4928_v39 }
 0x2da   : >> { %v1517_v62 = vadd.f32 %v1516_v24, %v4929_v63 }
 0x2dc   : >> { %v1518_v48 = vadd.f32 %v1517_v62, %v4930_v8  ;;  %617 = sbr.rel (!%p615_p5) target bundleno = 312 (0x138), region = 98 }
 0x2de   : >> { %v1519_v16 = vadd.f32 %v1518_v48, %v4931_v44 }
 0x2e0   : >> { %v1520_v52 = vadd.f32 %v4932_v32, %v1519_v16  }
 0x2e2   : >> { %v4933_v1 = vmov %v1520_v52  ;;  %v1522_v18 = vadd.f32 (%p615_p5), %v1521_v33, %v1520_v52 }
 0x2e4   : > { %1523 = vst [vmem:[%s1985_s5] sm:$0xff] %v1522_v18 }
 0x2e5 PF: > { %s1654_s9 = sshll.u32 %s1860_s10, 7  ;;  %s1539_s2 = sshll.u32 %s1985_s5, 4  ;;  %s1540_s2 = int_to_ptr.vmem [resolvable:$true] %s1539_s2 }
 0x2e6   : > { %s4184_s30 = scalar_lea.hbm %s4235_s1, %s1654_s9  ;;  %s1525_s3 = scalar_lea.sflag [#allocation3], %s171_s23 }
 0x2e7   : > { %s1762_s4 = scalar_lea.vmem %s1540_s2, 128  ;;  %s1891_s14 = smov [#allocation2]  }
 0x2e8   : > { %p1763_p6 = scmp.ne.s32.totalorder %s1540_s2, %s1762_s4  ;;  %s1766_s15 = sshll.u32 %s1891_s14, 4  ;;  %s1767_s15 = int_to_ptr.vmem [resolvable:$false] %s1766_s15 }
 0x2e9   : > { %s1768_s20 = scalar_lea.vmem %s1767_s15, 256  ;;  %p1769_p10 = scmp.lt.s32.totalorder %s1540_s2, %s1767_s15 }
 0x2ea   : > { %p1764_p7 = pnand %p1763_p6, %p1951_p3  ;;  %p1770_p11 = scmp.lt.s32.totalorder %s1768_s20, %s1762_s4 }
 0x2ec   : > { %p1765_p8 = pneg %p1764_p7  ;;  %p1771_p12 = por %p1770_p11, %p1769_p10 }
 0x2ee   : > { %p1772_p13 = pnand %p1771_p12, %p1765_p8 }
 0x2f0   : > { %1775 = shalt.err (!%p1772_p13)
}
 0x2f1   : > { %s1776_s10 = scalar_lea.hbm %s4184_s30, 128  ;;  %s1780_s21 = scalar_lea.hbm %s4235_s1, 256 }
 0x2f2   : > { %p1777_p0 = scmp.ne.s32.totalorder %s4184_s30, %s1776_s10  ;;  %p1781_p4 = scmp.lt.u32.totalorder %s4184_s30, %s4235_s1 }
 0x2f3   : > { %p1782_p5 = scmp.lt.u32.totalorder %s1780_s21, %s1776_s10  ;;  %p1784_p7 = scmp.lt.u32.totalorder %s1776_s10, %s4184_s30 }
 0x2f4   : > { %p1778_p1 = pnand %p1777_p0, %p1951_p3 }
 0x2f5   : > { %p1783_p6 = por %p1782_p5, %p1781_p4 }
 0x2f6   : > { %p1779_p2 = pneg %p1778_p1 }
 0x2f7   : > { %p1785_p8 = por %p1784_p7, %p1783_p6 }
 0x2f9   : > { %p1786_p10 = pnand %p1785_p8, %p1779_p2 }
 0x2fb   : > { %1789 = shalt.err (!%p1786_p10)
}
 0x2fc   : > { %1658 = dma.vmem_to_hbm [thread:$0]  (%p1951_p3), %s1540_s2, 128, %s4184_s30, %s1525_s3  }
 0x2fd PF: > { %p1664_p11 = scmp.ge.s32.totalorder %s1872_s13, 2  ;;  %s1551_s26 = sand.u32 1, %s1844_s6  }
 0x2fe   : > { %s1552_s27 = scalar_lea.sflag [#allocation3], %s1551_s26 }
 0x2ff   : > { %p1661_p12 = pnand %p1664_p11, %p1961_p9 }
 0x301   : > { %1839 = dma.done.wait (!%p1661_p12), %s1552_s27, 128  }
 0x302   : > { %1841 = vsyncadd (!%p1661_p12), %s1552_s27, 4294967168  ;;  %s14_s13 = sadd.s32 1, %s1872_s13   ;;  %s4934_s6 = smov %s1848_s7 }
 0x303   : > { %p11_p13 = scmp.ge.s32.totalorder %s14_s13, 6   ;;  %s4935_s7 = smov %s1852_s8 }
 0x304   : > { %s4936_s8 = smov %s1969_s22  ;;  %s4937_s9 = smov %s1864_s11 }
 0x305   : > { %s4938_s10 = smov %s1868_s12  ;;  %s4939_s11 = smov %s4942_s16 }
 0x306   : > { %s4940_s12 = smov %s4946_s17  ;;  %13 = sbr.rel (!%p11_p13) target bundleno = 5 (0x5), region = 109 }
 0x30d   :  { %1557 = vsyncpa [#allocation3], 1 }
 0x30e   :  { %1559 = vsyncpa [#allocation3 + $0x1], 1 }

</bundles_post_ra>
